<compile_context>
chip_gen: v7x
topology: tpu7x:2x2x1
jax: 0.10.0
libtpu: 0.0.40
codegen_flags: <defaults>
</compile_context>

<pallas_src>
import numpy as np
import jax
import jax.numpy as jnp
from jax import lax
from jax.experimental import pallas as pl
from jax.experimental.pallas import tpu as pltpu


# ------------------------------ Pallas kernel -------------------------------

def _eyenet_kernel(x_ref, w1_ref, b1_ref, w2_ref, b2_ref, w3_ref, b3_ref,
                   wfc_ref, bfc_ref, o_ref, a1_ref, a2_ref, a3_ref):
    """Whole EyeNet forward for one image (grid over batch)."""

    def conv_lrelu_pool(read_band, w_ref, b_ref, out_ref, ph, pw, cout):
        # w_ref[di] : (W_in*Cin, ncols) block-structured weights (dj folded in).
        half = pw * cout                       # pooled-width * channels
        half_pad = ((half + 127) // 128) * 128 # 128-aligned start of odd half
        acc = jnp.dot(read_band(0), w_ref[0], preferred_element_type=jnp.float32)
        for di in (1, 2):
            acc = acc + jnp.dot(read_band(di), w_ref[di],
                                preferred_element_type=jnp.float32)
        acc = acc + b_ref[...]                             # bias (broadcast)
        acc = jnp.maximum(acc, 0.01 * acc)                 # LeakyReLU(0.01)
        # maxpool over width: even columns vs odd columns (aligned halves)
        colmax = jnp.maximum(acc[:, :half], acc[:, half_pad:])
        # maxpool over height: static row-pair max, written lane-dense
        for p in range(ph):
            out_ref[pl.ds(p, 1), :] = jnp.maximum(
                colmax[2 * p:2 * p + 1, :], colmax[2 * p + 1:2 * p + 2, :])

    # conv1 + pool: (26, 26, 1) -> (12, 12, 24)   [a1 layout (12, 12*24)]
    conv_lrelu_pool(lambda di: x_ref[0, di:di + 24, :],
                    w1_ref, b1_ref, a1_ref, ph=12, pw=12, cout=24)
    # conv2 + pool: (12, 12, 24) -> (5, 5, 48)    [a2 layout (5, 5*48)]
    conv_lrelu_pool(lambda di: a1_ref[di:di + 10, :],
                    w2_ref, b2_ref, a2_ref, ph=5, pw=5, cout=48)
    # conv3 + pool: (5, 5, 48) -> (1, 1, 128)     [a3 layout (1, 128)]
    conv_lrelu_pool(lambda di: a2_ref[di:di + 2, :],
                    w3_ref, b3_ref, a3_ref, ph=1, pw=1, cout=128)
    # dropout(0.1): identity at inference.  fc1: (1,128)@(128,2)+(1,2)
    o_ref[0] = (jnp.dot(a3_ref[...], wfc_ref[...],
                        preferred_element_type=jnp.float32) + bfc_ref[...])


# ------------------------------- weight prep --------------------------------

def _conv_layer_consts(w, b, w_in, pw):
    """Fold a 3x3 conv (+ even/odd pooled-column layout) into 3 matrices.

    Activations use layout (H, W*Cin), column = j*Cin + c.
    Returns:
      wbd:  (3, w_in*Cin, ncols), indexed by di (vertical tap); the horizontal
            taps dj and the channel contraction are absorbed into the matrix.
      bias: (1, ncols)
    Output column layout: conv column ow=2q   -> q*Cout + co
                          conv column ow=2q+1 -> half_pad + q*Cout + co
    with half = pw*Cout, half_pad = roundup(half, 128), ncols = half_pad+half.
    """
    cout, cin, kh, kw = w.shape
    ow2 = 2 * pw
    half = pw * cout
    half_pad = ((half + 127) // 128) * 128
    ncols = half_pad + half

    # A[dj, j, ow] = 1  iff  j == ow + dj      (horizontal tap placement)
    A = np.zeros((kw, w_in, ow2), np.float32)
    for dj in range(kw):
        for ow in range(ow2):
            A[dj, ow + dj, ow] = 1.0
    # E[ow, co, col] = 1  iff  col == base(ow) + co   (even/odd column layout)
    E = np.zeros((ow2, cout, ncols), np.float32)
    for ow in range(ow2):
        base = (ow // 2) * cout + (0 if ow % 2 == 0 else half_pad)
        E[ow, :, base:base + cout] = np.eye(cout, dtype=np.float32)

    wt = jnp.transpose(w.astype(jnp.float32), (2, 3, 1, 0))   # (3,3,Cin,Cout)
    wbd = jnp.einsum("hwcx,wjo,oxl->hjcl", wt, jnp.asarray(A), jnp.asarray(E))
    wbd = wbd.reshape(kh, w_in * cin, ncols)

    b = b.astype(jnp.float32)
    bias = jnp.concatenate(
        [jnp.tile(b, pw), jnp.zeros((half_pad - half,), jnp.float32),
         jnp.tile(b, pw)])[None, :]
    return wbd, bias


def _fixed_spec(shape):
    zeros = (0,) * len(shape)
    return pl.BlockSpec(shape, lambda i: zeros)


# ------------------------------- forward pass --------------------------------

def eyenet_forward(x_nchw, params):
    n, c, h, w = x_nchw.shape
    assert (c, h, w) == (1, 26, 26), (c, h, w)
    x = x_nchw.astype(jnp.float32).reshape(n, 26, 26)

    w1, b1 = _conv_layer_consts(params["w1"], params["b1"], w_in=26, pw=12)
    w2, b2 = _conv_layer_consts(params["w2"], params["b2"], w_in=12, pw=5)
    w3, b3 = _conv_layer_consts(params["w3"], params["b3"], w_in=5, pw=1)
    wfc = params["wfc"].T.astype(jnp.float32)                  # (128, 2)
    bfc = params["bfc"].astype(jnp.float32)[None, :]           # (1, 2)

    out = pl.pallas_call(
        _eyenet_kernel,
        out_shape=jax.ShapeDtypeStruct((n, 1, 2), jnp.float32),
        grid=(n,),
        in_specs=[
            pl.BlockSpec((1, 26, 26), lambda i: (i, 0, 0)),
            _fixed_spec(w1.shape), _fixed_spec(b1.shape),
            _fixed_spec(w2.shape), _fixed_spec(b2.shape),
            _fixed_spec(w3.shape), _fixed_spec(b3.shape),
            _fixed_spec(wfc.shape), _fixed_spec(bfc.shape),
        ],
        out_specs=pl.BlockSpec((1, 1, 2), lambda i: (i, 0, 0)),
        scratch_shapes=[
            pltpu.VMEM((12, 288), jnp.float32),   # pooled conv1 (12, 12*24)
            pltpu.VMEM((5, 240), jnp.float32),    # pooled conv2 (5, 5*48)
            pltpu.VMEM((1, 128), jnp.float32),    # pooled conv3 (1, 128)
        ],
        compiler_params=pltpu.CompilerParams(
            dimension_semantics=("parallel",),
            vmem_limit_bytes=32 * 1024 * 1024),
    )(x, w1, b1, w2, b2, w3, b3, wfc, bfc)
    return out[:, 0, :]


# --------------------------- pure-JAX reference ------------------------------

def eyenet_reference(x_nchw, params):
    def conv(x, w, b):
        y = lax.conv_general_dilated(
            x, w, window_strides=(1, 1), padding="VALID",
            dimension_numbers=("NCHW", "OIHW", "NCHW"))
        return y + b.reshape(1, -1, 1, 1)

    def lrelu(x):
        return jnp.where(x >= 0, x, 0.01 * x)

    def pool(x):
        return lax.reduce_window(x, -jnp.inf, lax.max,
                                 (1, 1, 2, 2), (1, 1, 2, 2), "VALID")

    x = x_nchw.astype(jnp.float32)
    x = pool(lrelu(conv(x, params["w1"], params["b1"])))
    x = pool(lrelu(conv(x, params["w2"], params["b2"])))
    x = pool(lrelu(conv(x, params["w3"], params["b3"])))
    x = x.reshape(x.shape[0], -1)
    return x @ params["wfc"].T + params["bfc"]


# --------------------------------- main --------------------------------------

def init_params(key):
    ks = jax.random.split(key, 8)
    s = 0.1
    return {
        "w1": s * jax.random.normal(ks[0], (24, 1, 3, 3), jnp.float32),
        "b1": s * jax.random.normal(ks[1], (24,), jnp.float32),
        "w2": s * jax.random.normal(ks[2], (48, 24, 3, 3), jnp.float32),
        "b2": s * jax.random.normal(ks[3], (48,), jnp.float32),
        "w3": s * jax.random.normal(ks[4], (128, 48, 3, 3), jnp.float32),
        "b3": s * jax.random.normal(ks[5], (128,), jnp.float32),
        "wfc": s * jax.random.normal(ks[6], (2, 128), jnp.float32),
        "bfc": s * jax.random.normal(ks[7], (2,), jnp.float32),
    }


if __name__ == "__main__":
    key = jax.random.PRNGKey(0)
    kx, kp = jax.random.split(key)
    # 26x26 input -> conv/pool chain ends at 1x1x128, matching fc1 in_features=128.
    x = jax.random.normal(kx, (2, 1, 26, 26), jnp.float32)
    params = init_params(kp)

    fwd = jax.jit(eyenet_forward)
    out = jax.block_until_ready(fwd(x, params))
    ref = jax.block_until_ready(eyenet_reference(x, params))

    assert out.shape == (2, 2), out.shape
    assert jnp.allclose(out, ref, atol=1e-3, rtol=1e-3), (out, ref)
    print("KERNEL_OK")
</pallas_src>

<mosaic_0001>
module attributes {stable_mosaic.version = 11 : i64} {
  func.func @_eyenet_kernel(%arg0: i32, %arg1: memref<1x26x26xf32, #tpu.memory_space<vmem>>, %arg2: memref<3x26x672xf32, #tpu.memory_space<vmem>>, %arg3: memref<1x672xf32, #tpu.memory_space<vmem>>, %arg4: memref<3x288x496xf32, #tpu.memory_space<vmem>>, %arg5: memref<1x496xf32, #tpu.memory_space<vmem>>, %arg6: memref<3x240x256xf32, #tpu.memory_space<vmem>>, %arg7: memref<1x256xf32, #tpu.memory_space<vmem>>, %arg8: memref<128x2xf32, #tpu.memory_space<vmem>>, %arg9: memref<1x2xf32, #tpu.memory_space<vmem>>, %arg10: memref<1x1x2xf32, #tpu.memory_space<vmem>>, %arg11: memref<12x288xf32, #tpu.memory_space<vmem>>, %arg12: memref<5x240xf32, #tpu.memory_space<vmem>>, %arg13: memref<1x128xf32, #tpu.memory_space<vmem>>) attributes {dimension_semantics = [#tpu.dimension_semantics<parallel>], iteration_bounds = array<i64: 2>, scalar_prefetch = 0 : i64, scratch_operands = 3 : i64, tpu.core_type = #tpu.core_type<tc>, window_params = [{transform_indices = @transform_0, window_bounds = array<i64: 1, 26, 26>}, {pipeline_mode = #tpu.pipeline_mode<synchronous>, transform_indices = @transform_1, window_bounds = array<i64: 3, 26, 672>}, {pipeline_mode = #tpu.pipeline_mode<synchronous>, transform_indices = @transform_2, window_bounds = array<i64: 1, 672>}, {pipeline_mode = #tpu.pipeline_mode<synchronous>, transform_indices = @transform_3, window_bounds = array<i64: 3, 288, 496>}, {pipeline_mode = #tpu.pipeline_mode<synchronous>, transform_indices = @transform_4, window_bounds = array<i64: 1, 496>}, {pipeline_mode = #tpu.pipeline_mode<synchronous>, transform_indices = @transform_5, window_bounds = array<i64: 3, 240, 256>}, {pipeline_mode = #tpu.pipeline_mode<synchronous>, transform_indices = @transform_6, window_bounds = array<i64: 1, 256>}, {pipeline_mode = #tpu.pipeline_mode<synchronous>, transform_indices = @transform_7, window_bounds = array<i64: 128, 2>}, {pipeline_mode = #tpu.pipeline_mode<synchronous>, transform_indices = @transform_8, window_bounds = array<i64: 1, 2>}, {transform_indices = @transform_9, window_bounds = array<i64: 1, 1, 2>}]} {
    %c0 = arith.constant 0 : index
    %c0_0 = arith.constant 0 : index
    %c0_1 = arith.constant 0 : index
    %0 = vector.load %arg1[%c0, %c0_0, %c0_1] : memref<1x26x26xf32, #tpu.memory_space<vmem>>, vector<1x24x26xf32>
    %1 = vector.shape_cast %0 : vector<1x24x26xf32> to vector<24x26xf32>
    %c0_2 = arith.constant 0 : index
    %c0_3 = arith.constant 0 : index
    %c0_4 = arith.constant 0 : index
    %2 = vector.load %arg2[%c0_2, %c0_3, %c0_4] : memref<3x26x672xf32, #tpu.memory_space<vmem>>, vector<1x26x672xf32>
    %3 = vector.shape_cast %2 : vector<1x26x672xf32> to vector<26x672xf32>
    %cst = arith.constant dense<0.000000e+00> : vector<24x672xf32>
    %4 = tpu.matmul %1, %3, %cst {dimension_numbers = #tpu.dot_dimension_numbers<[1], [0], [0], [1], [0, 0, 1, 1], [], []>} : vector<24x26xf32>, vector<26x672xf32>, vector<24x672xf32> -> vector<24x672xf32>
    %c0_5 = arith.constant 0 : index
    %c1 = arith.constant 1 : index
    %c0_6 = arith.constant 0 : index
    %5 = vector.load %arg1[%c0_5, %c1, %c0_6] : memref<1x26x26xf32, #tpu.memory_space<vmem>>, vector<1x24x26xf32>
    %6 = vector.shape_cast %5 : vector<1x24x26xf32> to vector<24x26xf32>
    %c1_7 = arith.constant 1 : index
    %c0_8 = arith.constant 0 : index
    %c0_9 = arith.constant 0 : index
    %7 = vector.load %arg2[%c1_7, %c0_8, %c0_9] : memref<3x26x672xf32, #tpu.memory_space<vmem>>, vector<1x26x672xf32>
    %8 = vector.shape_cast %7 : vector<1x26x672xf32> to vector<26x672xf32>
    %cst_10 = arith.constant dense<0.000000e+00> : vector<24x672xf32>
    %9 = tpu.matmul %6, %8, %cst_10 {dimension_numbers = #tpu.dot_dimension_numbers<[1], [0], [0], [1], [0, 0, 1, 1], [], []>} : vector<24x26xf32>, vector<26x672xf32>, vector<24x672xf32> -> vector<24x672xf32>
    %10 = arith.addf %4, %9 : vector<24x672xf32>
    %c0_11 = arith.constant 0 : index
    %c2 = arith.constant 2 : index
    %c0_12 = arith.constant 0 : index
    %11 = vector.load %arg1[%c0_11, %c2, %c0_12] : memref<1x26x26xf32, #tpu.memory_space<vmem>>, vector<1x24x26xf32>
    %12 = vector.shape_cast %11 : vector<1x24x26xf32> to vector<24x26xf32>
    %c2_13 = arith.constant 2 : index
    %c0_14 = arith.constant 0 : index
    %c0_15 = arith.constant 0 : index
    %13 = vector.load %arg2[%c2_13, %c0_14, %c0_15] : memref<3x26x672xf32, #tpu.memory_space<vmem>>, vector<1x26x672xf32>
    %14 = vector.shape_cast %13 : vector<1x26x672xf32> to vector<26x672xf32>
    %cst_16 = arith.constant dense<0.000000e+00> : vector<24x672xf32>
    %15 = tpu.matmul %12, %14, %cst_16 {dimension_numbers = #tpu.dot_dimension_numbers<[1], [0], [0], [1], [0, 0, 1, 1], [], []>} : vector<24x26xf32>, vector<26x672xf32>, vector<24x672xf32> -> vector<24x672xf32>
    %16 = arith.addf %10, %15 : vector<24x672xf32>
    %c0_17 = arith.constant 0 : index
    %c0_18 = arith.constant 0 : index
    %17 = vector.load %arg3[%c0_17, %c0_18] : memref<1x672xf32, #tpu.memory_space<vmem>>, vector<1x672xf32>
    %18 = vector.broadcast %17 : vector<1x672xf32> to vector<24x672xf32>
    %19 = arith.addf %16, %18 : vector<24x672xf32>
    %cst_19 = arith.constant 0.00999999977 : f32
    %20 = vector.broadcast %cst_19 : f32 to vector<24x672xf32>
    %21 = arith.mulf %20, %19 : vector<24x672xf32>
    %22 = arith.maximumf %19, %21 : vector<24x672xf32>
    %23 = vector.extract_strided_slice %22 {offsets = [0, 0], sizes = [24, 288], strides = [1, 1]} : vector<24x672xf32> to vector<24x288xf32>
    %24 = vector.extract_strided_slice %22 {offsets = [0, 384], sizes = [24, 288], strides = [1, 1]} : vector<24x672xf32> to vector<24x288xf32>
    %25 = arith.maximumf %23, %24 : vector<24x288xf32>
    %26 = vector.extract_strided_slice %25 {offsets = [0, 0], sizes = [1, 288], strides = [1, 1]} : vector<24x288xf32> to vector<1x288xf32>
    %27 = vector.extract_strided_slice %25 {offsets = [1, 0], sizes = [1, 288], strides = [1, 1]} : vector<24x288xf32> to vector<1x288xf32>
    %28 = arith.maximumf %26, %27 : vector<1x288xf32>
    %c0_20 = arith.constant 0 : index
    %c0_21 = arith.constant 0 : index
    %29 = vector.load %arg11[%c0_20, %c0_21] : memref<12x288xf32, #tpu.memory_space<vmem>>, vector<1x288xf32>
    tpu.vector_store %arg11[%c0_20, %c0_21], %28 {strides = array<i32>} : memref<12x288xf32, #tpu.memory_space<vmem>>, vector<1x288xf32>,
    %30 = vector.extract_strided_slice %25 {offsets = [2, 0], sizes = [1, 288], strides = [1, 1]} : vector<24x288xf32> to vector<1x288xf32>
    %31 = vector.extract_strided_slice %25 {offsets = [3, 0], sizes = [1, 288], strides = [1, 1]} : vector<24x288xf32> to vector<1x288xf32>
    %32 = arith.maximumf %30, %31 : vector<1x288xf32>
    %c1_22 = arith.constant 1 : index
    %c0_23 = arith.constant 0 : index
    %33 = vector.load %arg11[%c1_22, %c0_23] : memref<12x288xf32, #tpu.memory_space<vmem>>, vector<1x288xf32>
    tpu.vector_store %arg11[%c1_22, %c0_23], %32 {strides = array<i32>} : memref<12x288xf32, #tpu.memory_space<vmem>>, vector<1x288xf32>,
    %34 = vector.extract_strided_slice %25 {offsets = [4, 0], sizes = [1, 288], strides = [1, 1]} : vector<24x288xf32> to vector<1x288xf32>
    %35 = vector.extract_strided_slice %25 {offsets = [5, 0], sizes = [1, 288], strides = [1, 1]} : vector<24x288xf32> to vector<1x288xf32>
    %36 = arith.maximumf %34, %35 : vector<1x288xf32>
    %c2_24 = arith.constant 2 : index
    %c0_25 = arith.constant 0 : index
    %37 = vector.load %arg11[%c2_24, %c0_25] : memref<12x288xf32, #tpu.memory_space<vmem>>, vector<1x288xf32>
    tpu.vector_store %arg11[%c2_24, %c0_25], %36 {strides = array<i32>} : memref<12x288xf32, #tpu.memory_space<vmem>>, vector<1x288xf32>,
    %38 = vector.extract_strided_slice %25 {offsets = [6, 0], sizes = [1, 288], strides = [1, 1]} : vector<24x288xf32> to vector<1x288xf32>
    %39 = vector.extract_strided_slice %25 {offsets = [7, 0], sizes = [1, 288], strides = [1, 1]} : vector<24x288xf32> to vector<1x288xf32>
    %40 = arith.maximumf %38, %39 : vector<1x288xf32>
    %c3 = arith.constant 3 : index
    %c0_26 = arith.constant 0 : index
    %41 = vector.load %arg11[%c3, %c0_26] : memref<12x288xf32, #tpu.memory_space<vmem>>, vector<1x288xf32>
    tpu.vector_store %arg11[%c3, %c0_26], %40 {strides = array<i32>} : memref<12x288xf32, #tpu.memory_space<vmem>>, vector<1x288xf32>,
    %42 = vector.extract_strided_slice %25 {offsets = [8, 0], sizes = [1, 288], strides = [1, 1]} : vector<24x288xf32> to vector<1x288xf32>
    %43 = vector.extract_strided_slice %25 {offsets = [9, 0], sizes = [1, 288], strides = [1, 1]} : vector<24x288xf32> to vector<1x288xf32>
    %44 = arith.maximumf %42, %43 : vector<1x288xf32>
    %c4 = arith.constant 4 : index
    %c0_27 = arith.constant 0 : index
    %45 = vector.load %arg11[%c4, %c0_27] : memref<12x288xf32, #tpu.memory_space<vmem>>, vector<1x288xf32>
    tpu.vector_store %arg11[%c4, %c0_27], %44 {strides = array<i32>} : memref<12x288xf32, #tpu.memory_space<vmem>>, vector<1x288xf32>,
    %46 = vector.extract_strided_slice %25 {offsets = [10, 0], sizes = [1, 288], strides = [1, 1]} : vector<24x288xf32> to vector<1x288xf32>
    %47 = vector.extract_strided_slice %25 {offsets = [11, 0], sizes = [1, 288], strides = [1, 1]} : vector<24x288xf32> to vector<1x288xf32>
    %48 = arith.maximumf %46, %47 : vector<1x288xf32>
    %c5 = arith.constant 5 : index
    %c0_28 = arith.constant 0 : index
    %49 = vector.load %arg11[%c5, %c0_28] : memref<12x288xf32, #tpu.memory_space<vmem>>, vector<1x288xf32>
    tpu.vector_store %arg11[%c5, %c0_28], %48 {strides = array<i32>} : memref<12x288xf32, #tpu.memory_space<vmem>>, vector<1x288xf32>,
    %50 = vector.extract_strided_slice %25 {offsets = [12, 0], sizes = [1, 288], strides = [1, 1]} : vector<24x288xf32> to vector<1x288xf32>
    %51 = vector.extract_strided_slice %25 {offsets = [13, 0], sizes = [1, 288], strides = [1, 1]} : vector<24x288xf32> to vector<1x288xf32>
    %52 = arith.maximumf %50, %51 : vector<1x288xf32>
    %c6 = arith.constant 6 : index
    %c0_29 = arith.constant 0 : index
    %53 = vector.load %arg11[%c6, %c0_29] : memref<12x288xf32, #tpu.memory_space<vmem>>, vector<1x288xf32>
    tpu.vector_store %arg11[%c6, %c0_29], %52 {strides = array<i32>} : memref<12x288xf32, #tpu.memory_space<vmem>>, vector<1x288xf32>,
    %54 = vector.extract_strided_slice %25 {offsets = [14, 0], sizes = [1, 288], strides = [1, 1]} : vector<24x288xf32> to vector<1x288xf32>
    %55 = vector.extract_strided_slice %25 {offsets = [15, 0], sizes = [1, 288], strides = [1, 1]} : vector<24x288xf32> to vector<1x288xf32>
    %56 = arith.maximumf %54, %55 : vector<1x288xf32>
    %c7 = arith.constant 7 : index
    %c0_30 = arith.constant 0 : index
    %57 = vector.load %arg11[%c7, %c0_30] : memref<12x288xf32, #tpu.memory_space<vmem>>, vector<1x288xf32>
    tpu.vector_store %arg11[%c7, %c0_30], %56 {strides = array<i32>} : memref<12x288xf32, #tpu.memory_space<vmem>>, vector<1x288xf32>,
    %58 = vector.extract_strided_slice %25 {offsets = [16, 0], sizes = [1, 288], strides = [1, 1]} : vector<24x288xf32> to vector<1x288xf32>
    %59 = vector.extract_strided_slice %25 {offsets = [17, 0], sizes = [1, 288], strides = [1, 1]} : vector<24x288xf32> to vector<1x288xf32>
    %60 = arith.maximumf %58, %59 : vector<1x288xf32>
    %c8 = arith.constant 8 : index
    %c0_31 = arith.constant 0 : index
    %61 = vector.load %arg11[%c8, %c0_31] : memref<12x288xf32, #tpu.memory_space<vmem>>, vector<1x288xf32>
    tpu.vector_store %arg11[%c8, %c0_31], %60 {strides = array<i32>} : memref<12x288xf32, #tpu.memory_space<vmem>>, vector<1x288xf32>,
    %62 = vector.extract_strided_slice %25 {offsets = [18, 0], sizes = [1, 288], strides = [1, 1]} : vector<24x288xf32> to vector<1x288xf32>
    %63 = vector.extract_strided_slice %25 {offsets = [19, 0], sizes = [1, 288], strides = [1, 1]} : vector<24x288xf32> to vector<1x288xf32>
    %64 = arith.maximumf %62, %63 : vector<1x288xf32>
    %c9 = arith.constant 9 : index
    %c0_32 = arith.constant 0 : index
    %65 = vector.load %arg11[%c9, %c0_32] : memref<12x288xf32, #tpu.memory_space<vmem>>, vector<1x288xf32>
    tpu.vector_store %arg11[%c9, %c0_32], %64 {strides = array<i32>} : memref<12x288xf32, #tpu.memory_space<vmem>>, vector<1x288xf32>,
    %66 = vector.extract_strided_slice %25 {offsets = [20, 0], sizes = [1, 288], strides = [1, 1]} : vector<24x288xf32> to vector<1x288xf32>
    %67 = vector.extract_strided_slice %25 {offsets = [21, 0], sizes = [1, 288], strides = [1, 1]} : vector<24x288xf32> to vector<1x288xf32>
    %68 = arith.maximumf %66, %67 : vector<1x288xf32>
    %c10 = arith.constant 10 : index
    %c0_33 = arith.constant 0 : index
    %69 = vector.load %arg11[%c10, %c0_33] : memref<12x288xf32, #tpu.memory_space<vmem>>, vector<1x288xf32>
    tpu.vector_store %arg11[%c10, %c0_33], %68 {strides = array<i32>} : memref<12x288xf32, #tpu.memory_space<vmem>>, vector<1x288xf32>,
    %70 = vector.extract_strided_slice %25 {offsets = [22, 0], sizes = [1, 288], strides = [1, 1]} : vector<24x288xf32> to vector<1x288xf32>
    %71 = vector.extract_strided_slice %25 {offsets = [23, 0], sizes = [1, 288], strides = [1, 1]} : vector<24x288xf32> to vector<1x288xf32>
    %72 = arith.maximumf %70, %71 : vector<1x288xf32>
    %c11 = arith.constant 11 : index
    %c0_34 = arith.constant 0 : index
    %73 = vector.load %arg11[%c11, %c0_34] : memref<12x288xf32, #tpu.memory_space<vmem>>, vector<1x288xf32>
    tpu.vector_store %arg11[%c11, %c0_34], %72 {strides = array<i32>} : memref<12x288xf32, #tpu.memory_space<vmem>>, vector<1x288xf32>,
    %c0_35 = arith.constant 0 : index
    %c0_36 = arith.constant 0 : index
    %74 = vector.load %arg11[%c0_35, %c0_36] : memref<12x288xf32, #tpu.memory_space<vmem>>, vector<10x288xf32>
    %c0_37 = arith.constant 0 : index
    %c0_38 = arith.constant 0 : index
    %c0_39 = arith.constant 0 : index
    %75 = vector.load %arg4[%c0_37, %c0_38, %c0_39] : memref<3x288x496xf32, #tpu.memory_space<vmem>>, vector<1x288x496xf32>
    %76 = vector.shape_cast %75 : vector<1x288x496xf32> to vector<288x496xf32>
    %cst_40 = arith.constant dense<0.000000e+00> : vector<10x496xf32>
    %77 = tpu.matmul %74, %76, %cst_40 {dimension_numbers = #tpu.dot_dimension_numbers<[1], [0], [0], [1], [0, 0, 1, 1], [], []>} : vector<10x288xf32>, vector<288x496xf32>, vector<10x496xf32> -> vector<10x496xf32>
    %c1_41 = arith.constant 1 : index
    %c0_42 = arith.constant 0 : index
    %78 = vector.load %arg11[%c1_41, %c0_42] : memref<12x288xf32, #tpu.memory_space<vmem>>, vector<10x288xf32>
    %c1_43 = arith.constant 1 : index
    %c0_44 = arith.constant 0 : index
    %c0_45 = arith.constant 0 : index
    %79 = vector.load %arg4[%c1_43, %c0_44, %c0_45] : memref<3x288x496xf32, #tpu.memory_space<vmem>>, vector<1x288x496xf32>
    %80 = vector.shape_cast %79 : vector<1x288x496xf32> to vector<288x496xf32>
    %cst_46 = arith.constant dense<0.000000e+00> : vector<10x496xf32>
    %81 = tpu.matmul %78, %80, %cst_46 {dimension_numbers = #tpu.dot_dimension_numbers<[1], [0], [0], [1], [0, 0, 1, 1], [], []>} : vector<10x288xf32>, vector<288x496xf32>, vector<10x496xf32> -> vector<10x496xf32>
    %82 = arith.addf %77, %81 : vector<10x496xf32>
    %c2_47 = arith.constant 2 : index
    %c0_48 = arith.constant 0 : index
    %83 = vector.load %arg11[%c2_47, %c0_48] : memref<12x288xf32, #tpu.memory_space<vmem>>, vector<10x288xf32>
    %c2_49 = arith.constant 2 : index
    %c0_50 = arith.constant 0 : index
    %c0_51 = arith.constant 0 : index
    %84 = vector.load %arg4[%c2_49, %c0_50, %c0_51] : memref<3x288x496xf32, #tpu.memory_space<vmem>>, vector<1x288x496xf32>
    %85 = vector.shape_cast %84 : vector<1x288x496xf32> to vector<288x496xf32>
    %cst_52 = arith.constant dense<0.000000e+00> : vector<10x496xf32>
    %86 = tpu.matmul %83, %85, %cst_52 {dimension_numbers = #tpu.dot_dimension_numbers<[1], [0], [0], [1], [0, 0, 1, 1], [], []>} : vector<10x288xf32>, vector<288x496xf32>, vector<10x496xf32> -> vector<10x496xf32>
    %87 = arith.addf %82, %86 : vector<10x496xf32>
    %c0_53 = arith.constant 0 : index
    %c0_54 = arith.constant 0 : index
    %88 = vector.load %arg5[%c0_53, %c0_54] : memref<1x496xf32, #tpu.memory_space<vmem>>, vector<1x496xf32>
    %89 = vector.broadcast %88 : vector<1x496xf32> to vector<10x496xf32>
    %90 = arith.addf %87, %89 : vector<10x496xf32>
    %cst_55 = arith.constant 0.00999999977 : f32
    %91 = vector.broadcast %cst_55 : f32 to vector<10x496xf32>
    %92 = arith.mulf %91, %90 : vector<10x496xf32>
    %93 = arith.maximumf %90, %92 : vector<10x496xf32>
    %94 = vector.extract_strided_slice %93 {offsets = [0, 0], sizes = [10, 240], strides = [1, 1]} : vector<10x496xf32> to vector<10x240xf32>
    %95 = vector.extract_strided_slice %93 {offsets = [0, 256], sizes = [10, 240], strides = [1, 1]} : vector<10x496xf32> to vector<10x240xf32>
    %96 = arith.maximumf %94, %95 : vector<10x240xf32>
    %97 = vector.extract_strided_slice %96 {offsets = [0, 0], sizes = [1, 240], strides = [1, 1]} : vector<10x240xf32> to vector<1x240xf32>
    %98 = vector.extract_strided_slice %96 {offsets = [1, 0], sizes = [1, 240], strides = [1, 1]} : vector<10x240xf32> to vector<1x240xf32>
    %99 = arith.maximumf %97, %98 : vector<1x240xf32>
    %c0_56 = arith.constant 0 : index
    %c0_57 = arith.constant 0 : index
    %100 = vector.load %arg12[%c0_56, %c0_57] : memref<5x240xf32, #tpu.memory_space<vmem>>, vector<1x240xf32>
    tpu.vector_store %arg12[%c0_56, %c0_57], %99 {strides = array<i32>} : memref<5x240xf32, #tpu.memory_space<vmem>>, vector<1x240xf32>,
    %101 = vector.extract_strided_slice %96 {offsets = [2, 0], sizes = [1, 240], strides = [1, 1]} : vector<10x240xf32> to vector<1x240xf32>
    %102 = vector.extract_strided_slice %96 {offsets = [3, 0], sizes = [1, 240], strides = [1, 1]} : vector<10x240xf32> to vector<1x240xf32>
    %103 = arith.maximumf %101, %102 : vector<1x240xf32>
    %c1_58 = arith.constant 1 : index
    %c0_59 = arith.constant 0 : index
    %104 = vector.load %arg12[%c1_58, %c0_59] : memref<5x240xf32, #tpu.memory_space<vmem>>, vector<1x240xf32>
    tpu.vector_store %arg12[%c1_58, %c0_59], %103 {strides = array<i32>} : memref<5x240xf32, #tpu.memory_space<vmem>>, vector<1x240xf32>,
    %105 = vector.extract_strided_slice %96 {offsets = [4, 0], sizes = [1, 240], strides = [1, 1]} : vector<10x240xf32> to vector<1x240xf32>
    %106 = vector.extract_strided_slice %96 {offsets = [5, 0], sizes = [1, 240], strides = [1, 1]} : vector<10x240xf32> to vector<1x240xf32>
    %107 = arith.maximumf %105, %106 : vector<1x240xf32>
    %c2_60 = arith.constant 2 : index
    %c0_61 = arith.constant 0 : index
    %108 = vector.load %arg12[%c2_60, %c0_61] : memref<5x240xf32, #tpu.memory_space<vmem>>, vector<1x240xf32>
    tpu.vector_store %arg12[%c2_60, %c0_61], %107 {strides = array<i32>} : memref<5x240xf32, #tpu.memory_space<vmem>>, vector<1x240xf32>,
    %109 = vector.extract_strided_slice %96 {offsets = [6, 0], sizes = [1, 240], strides = [1, 1]} : vector<10x240xf32> to vector<1x240xf32>
    %110 = vector.extract_strided_slice %96 {offsets = [7, 0], sizes = [1, 240], strides = [1, 1]} : vector<10x240xf32> to vector<1x240xf32>
    %111 = arith.maximumf %109, %110 : vector<1x240xf32>
    %c3_62 = arith.constant 3 : index
    %c0_63 = arith.constant 0 : index
    %112 = vector.load %arg12[%c3_62, %c0_63] : memref<5x240xf32, #tpu.memory_space<vmem>>, vector<1x240xf32>
    tpu.vector_store %arg12[%c3_62, %c0_63], %111 {strides = array<i32>} : memref<5x240xf32, #tpu.memory_space<vmem>>, vector<1x240xf32>,
    %113 = vector.extract_strided_slice %96 {offsets = [8, 0], sizes = [1, 240], strides = [1, 1]} : vector<10x240xf32> to vector<1x240xf32>
    %114 = vector.extract_strided_slice %96 {offsets = [9, 0], sizes = [1, 240], strides = [1, 1]} : vector<10x240xf32> to vector<1x240xf32>
    %115 = arith.maximumf %113, %114 : vector<1x240xf32>
    %c4_64 = arith.constant 4 : index
    %c0_65 = arith.constant 0 : index
    %116 = vector.load %arg12[%c4_64, %c0_65] : memref<5x240xf32, #tpu.memory_space<vmem>>, vector<1x240xf32>
    tpu.vector_store %arg12[%c4_64, %c0_65], %115 {strides = array<i32>} : memref<5x240xf32, #tpu.memory_space<vmem>>, vector<1x240xf32>,
    %c0_66 = arith.constant 0 : index
    %c0_67 = arith.constant 0 : index
    %117 = vector.load %arg12[%c0_66, %c0_67] : memref<5x240xf32, #tpu.memory_space<vmem>>, vector<2x240xf32>
    %c0_68 = arith.constant 0 : index
    %c0_69 = arith.constant 0 : index
    %c0_70 = arith.constant 0 : index
    %118 = vector.load %arg6[%c0_68, %c0_69, %c0_70] : memref<3x240x256xf32, #tpu.memory_space<vmem>>, vector<1x240x256xf32>
    %119 = vector.shape_cast %118 : vector<1x240x256xf32> to vector<240x256xf32>
    %cst_71 = arith.constant dense<0.000000e+00> : vector<2x256xf32>
    %120 = tpu.matmul %117, %119, %cst_71 {dimension_numbers = #tpu.dot_dimension_numbers<[1], [0], [0], [1], [0, 0, 1, 1], [], []>} : vector<2x240xf32>, vector<240x256xf32>, vector<2x256xf32> -> vector<2x256xf32>
    %c1_72 = arith.constant 1 : index
    %c0_73 = arith.constant 0 : index
    %121 = vector.load %arg12[%c1_72, %c0_73] : memref<5x240xf32, #tpu.memory_space<vmem>>, vector<2x240xf32>
    %c1_74 = arith.constant 1 : index
    %c0_75 = arith.constant 0 : index
    %c0_76 = arith.constant 0 : index
    %122 = vector.load %arg6[%c1_74, %c0_75, %c0_76] : memref<3x240x256xf32, #tpu.memory_space<vmem>>, vector<1x240x256xf32>
    %123 = vector.shape_cast %122 : vector<1x240x256xf32> to vector<240x256xf32>
    %cst_77 = arith.constant dense<0.000000e+00> : vector<2x256xf32>
    %124 = tpu.matmul %121, %123, %cst_77 {dimension_numbers = #tpu.dot_dimension_numbers<[1], [0], [0], [1], [0, 0, 1, 1], [], []>} : vector<2x240xf32>, vector<240x256xf32>, vector<2x256xf32> -> vector<2x256xf32>
    %125 = arith.addf %120, %124 : vector<2x256xf32>
    %c2_78 = arith.constant 2 : index
    %c0_79 = arith.constant 0 : index
    %126 = vector.load %arg12[%c2_78, %c0_79] : memref<5x240xf32, #tpu.memory_space<vmem>>, vector<2x240xf32>
    %c2_80 = arith.constant 2 : index
    %c0_81 = arith.constant 0 : index
    %c0_82 = arith.constant 0 : index
    %127 = vector.load %arg6[%c2_80, %c0_81, %c0_82] : memref<3x240x256xf32, #tpu.memory_space<vmem>>, vector<1x240x256xf32>
    %128 = vector.shape_cast %127 : vector<1x240x256xf32> to vector<240x256xf32>
    %cst_83 = arith.constant dense<0.000000e+00> : vector<2x256xf32>
    %129 = tpu.matmul %126, %128, %cst_83 {dimension_numbers = #tpu.dot_dimension_numbers<[1], [0], [0], [1], [0, 0, 1, 1], [], []>} : vector<2x240xf32>, vector<240x256xf32>, vector<2x256xf32> -> vector<2x256xf32>
    %130 = arith.addf %125, %129 : vector<2x256xf32>
    %c0_84 = arith.constant 0 : index
    %c0_85 = arith.constant 0 : index
    %131 = vector.load %arg7[%c0_84, %c0_85] : memref<1x256xf32, #tpu.memory_space<vmem>>, vector<1x256xf32>
    %132 = vector.broadcast %131 : vector<1x256xf32> to vector<2x256xf32>
    %133 = arith.addf %130, %132 : vector<2x256xf32>
    %cst_86 = arith.constant 0.00999999977 : f32
    %134 = vector.broadcast %cst_86 : f32 to vector<2x256xf32>
    %135 = arith.mulf %134, %133 : vector<2x256xf32>
    %136 = arith.maximumf %133, %135 : vector<2x256xf32>
    %137 = vector.extract_strided_slice %136 {offsets = [0, 0], sizes = [2, 128], strides = [1, 1]} : vector<2x256xf32> to vector<2x128xf32>
    %138 = vector.extract_strided_slice %136 {offsets = [0, 128], sizes = [2, 128], strides = [1, 1]} : vector<2x256xf32> to vector<2x128xf32>
    %139 = arith.maximumf %137, %138 : vector<2x128xf32>
    %140 = vector.extract_strided_slice %139 {offsets = [0, 0], sizes = [1, 128], strides = [1, 1]} : vector<2x128xf32> to vector<1x128xf32>
    %141 = vector.extract_strided_slice %139 {offsets = [1, 0], sizes = [1, 128], strides = [1, 1]} : vector<2x128xf32> to vector<1x128xf32>
    %142 = arith.maximumf %140, %141 : vector<1x128xf32>
    %c0_87 = arith.constant 0 : index
    %c0_88 = arith.constant 0 : index
    %143 = vector.load %arg13[%c0_87, %c0_88] : memref<1x128xf32, #tpu.memory_space<vmem>>, vector<1x128xf32>
    tpu.vector_store %arg13[%c0_87, %c0_88], %142 {strides = array<i32>} : memref<1x128xf32, #tpu.memory_space<vmem>>, vector<1x128xf32>,
    %c0_89 = arith.constant 0 : index
    %c0_90 = arith.constant 0 : index
    %144 = vector.load %arg13[%c0_89, %c0_90] : memref<1x128xf32, #tpu.memory_space<vmem>>, vector<1x128xf32>
    %c0_91 = arith.constant 0 : index
    %c0_92 = arith.constant 0 : index
    %145 = vector.load %arg8[%c0_91, %c0_92] : memref<128x2xf32, #tpu.memory_space<vmem>>, vector<128x2xf32>
    %cst_93 = arith.constant dense<0.000000e+00> : vector<1x2xf32>
    %146 = tpu.matmul %144, %145, %cst_93 {dimension_numbers = #tpu.dot_dimension_numbers<[1], [0], [0], [1], [0, 0, 1, 1], [], []>} : vector<1x128xf32>, vector<128x2xf32>, vector<1x2xf32> -> vector<1x2xf32>
    %c0_94 = arith.constant 0 : index
    %c0_95 = arith.constant 0 : index
    %147 = vector.load %arg9[%c0_94, %c0_95] : memref<1x2xf32, #tpu.memory_space<vmem>>, vector<1x2xf32>
    %148 = arith.addf %146, %147 : vector<1x2xf32>
    %c0_96 = arith.constant 0 : index
    %c0_97 = arith.constant 0 : index
    %c0_98 = arith.constant 0 : index
    %149 = vector.load %arg10[%c0_96, %c0_97, %c0_98] : memref<1x1x2xf32, #tpu.memory_space<vmem>>, vector<1x1x2xf32>
    %150 = vector.shape_cast %149 : vector<1x1x2xf32> to vector<1x2xf32>
    %151 = vector.shape_cast %148 : vector<1x2xf32> to vector<1x1x2xf32>
    tpu.vector_store %arg10[%c0_96, %c0_97, %c0_98], %151 {strides = array<i32>} : memref<1x1x2xf32, #tpu.memory_space<vmem>>, vector<1x1x2xf32>,
    return
  }
  func.func @transform_0(%arg0: i32) -> (i32, i32, i32) {
    %c0_i32 = arith.constant 0 : i32
    %c0_i32_0 = arith.constant 0 : i32
    %c0_i32_1 = arith.constant 0 : i32
    return %arg0, %c0_i32, %c0_i32_0 : i32, i32, i32
  }
  func.func @transform_1(%arg0: i32) -> (i32, i32, i32) {
    %c0_i32 = arith.constant 0 : i32
    %c0_i32_0 = arith.constant 0 : i32
    %c0_i32_1 = arith.constant 0 : i32
    %c0_i32_2 = arith.constant 0 : i32
    return %c0_i32, %c0_i32_0, %c0_i32_1 : i32, i32, i32
  }
  func.func @transform_2(%arg0: i32) -> (i32, i32) {
    %c0_i32 = arith.constant 0 : i32
    %c0_i32_0 = arith.constant 0 : i32
    %c0_i32_1 = arith.constant 0 : i32
    return %c0_i32, %c0_i32_0 : i32, i32
  }
  func.func @transform_3(%arg0: i32) -> (i32, i32, i32) {
    %c0_i32 = arith.constant 0 : i32
    %c0_i32_0 = arith.constant 0 : i32
    %c0_i32_1 = arith.constant 0 : i32
    %c0_i32_2 = arith.constant 0 : i32
    return %c0_i32, %c0_i32_0, %c0_i32_1 : i32, i32, i32
  }
  func.func @transform_4(%arg0: i32) -> (i32, i32) {
    %c0_i32 = arith.constant 0 : i32
    %c0_i32_0 = arith.constant 0 : i32
    %c0_i32_1 = arith.constant 0 : i32
    return %c0_i32, %c0_i32_0 : i32, i32
  }
  func.func @transform_5(%arg0: i32) -> (i32, i32, i32) {
    %c0_i32 = arith.constant 0 : i32
    %c0_i32_0 = arith.constant 0 : i32
    %c0_i32_1 = arith.constant 0 : i32
    %c0_i32_2 = arith.constant 0 : i32
    return %c0_i32, %c0_i32_0, %c0_i32_1 : i32, i32, i32
  }
  func.func @transform_6(%arg0: i32) -> (i32, i32) {
    %c0_i32 = arith.constant 0 : i32
    %c0_i32_0 = arith.constant 0 : i32
    %c0_i32_1 = arith.constant 0 : i32
    return %c0_i32, %c0_i32_0 : i32, i32
  }
  func.func @transform_7(%arg0: i32) -> (i32, i32) {
    %c0_i32 = arith.constant 0 : i32
    %c0_i32_0 = arith.constant 0 : i32
    %c0_i32_1 = arith.constant 0 : i32
    return %c0_i32, %c0_i32_0 : i32, i32
  }
  func.func @transform_8(%arg0: i32) -> (i32, i32) {
    %c0_i32 = arith.constant 0 : i32
    %c0_i32_0 = arith.constant 0 : i32
    %c0_i32_1 = arith.constant 0 : i32
    return %c0_i32, %c0_i32_0 : i32, i32
  }
  func.func @transform_9(%arg0: i32) -> (i32, i32, i32) {
    %c0_i32 = arith.constant 0 : i32
    %c0_i32_0 = arith.constant 0 : i32
    %c0_i32_1 = arith.constant 0 : i32
    return %arg0, %c0_i32, %c0_i32_0 : i32, i32, i32
  }
}

</mosaic_0001>

<bundles_post_ra>
// kernel: tile.23
= control target key start
LH: loop header
LB: loop body
LE: loop exit
PB: predicated region body
PF: predicated region fallthrough
CT: control target
= control target key end

     0   :  { %s28_s0 = inlined_call_operand.vmem [shape: f32[24], index: 0, kind: input, shape index: {}]   ;;  %s29_s1 = inlined_call_operand.vmem [shape: f32[12,24], index: 1, kind: output, shape index: {}]  }
   0x1   :  { %v4_v0 = vld [vmem:[%s28_s0] ss:$0 sm:$0xff] }
   0x2   :  { %5 = vst [vmem:[%s29_s1] sm:$0xff] %v4_v0  ;;  %8 = vst [vmem:[%s29_s1 + $0x8] sm:$0xff] %v4_v0 }

// kernel: tile.24
= control target key start
LH: loop header
LB: loop body
LE: loop exit
PB: predicated region body
PF: predicated region fallthrough
CT: control target
= control target key end

     0   :  { %vm9_vm0 = vcmask 64512   ;;  %vm13_vm1 = vcmask 130048   ;;  %s121_s14 = smov 120   ;;  %s122_s15 = smov 96   ;;  %vm3_vm2 = vcmask 195584   ;;  %vm16_vm3 = vcmask 1048512   ;;  %s191_s0 = inlined_call_operand.vmem [shape: f32[12,24], index: 0, kind: input, shape index: {}]   ;;  %s192_s1 = inlined_call_operand.vmem [shape: f32[288], index: 1, kind: output, shape index: {}]  }
   0x1   :  { %v97_v0 = vld [vmem:[%s191_s0 + $0x5] sm:$0x1]   ;;  %v101_v3 = vld [vmem:[%s191_s0 + $0x4] sm:$0x1]   ;;  %v99_v4 = vld [vmem:[%s191_s0 + $0xa] sm:$0x1]  }
   0x2   :  { %v98_v1 = vld [vmem:[%s191_s0 + $0x5] sm:$0x1]   ;;  %34 = vrot.lane.b32.xlu1 %v101_v3, %s122_s15  ;;  %v100_v5 = vld [vmem:[%s191_s0 + $0xa] sm:$0x1]   ;;  %v102_v7 = vld [vmem:[%s191_s0 + $0x9] sm:$0x1]  }
   0x3   :  { %v10_v2 = vsel %vm9_vm0, %v98_v1, %v97_v0  ;;  %v23_v6 = vsel %vm13_vm1, %v100_v5, %v99_v4  ;;  %s123_s20 = smov 112   ;;  %s124_s21 = smov 88   ;;  %v103_v8 = vld [vmem:[%s191_s0 + $0x3] sm:$0x1]   ;;  %v2_v9 = vld [vmem:[%s191_s0] sm:$0x1]  }
   0x4   :  { %11 = vrot.lane.b32.xlu0 %v10_v2, %s121_s14  ;;  %v104_v10 = vld [vmem:[%s191_s0 + $0x8] sm:$0x1]   ;;  %4 = vst.msk [vmem:[#allocation0] sm:$0x1] %vm3_vm2, %v2_v9   ;;  %s125_s28 = smov 72   ;;  %s126_s29 = smov 64  }
   0x5   :  { %v105_v11 = vld [vmem:[%s191_s0 + $0x2] sm:$0x1]   ;;  %v106_v12 = vld [vmem:[%s191_s0 + $0x7] sm:$0x1]   ;;  %s127_s5 = smov 48   ;;  %s128_s6 = smov 40  }
   0x6   :  { %40 = vrot.lane.b32.xlu1 %v102_v7, %s124_s21  ;;  %v107_v13 = vld [vmem:[%s191_s0 + $0x1] sm:$0x1]   ;;  %v108_v14 = vld [vmem:[%s191_s0 + $0x6] sm:$0x1]   ;;  %s129_s11 = smov 24   ;;  %s130_s12 = smov 16  }
   0x7   :  { %v109_v15 = vld [vmem:[%s191_s0 + $0xb] sm:$0x1]   ;;  %s131_s0 = smov 8   ;;  %vm36_vm4 = vcmask 982784   ;;  %vm29_vm5 = vcmask 1048448   ;;  %vm42_vm6 = vcmask 917184  }
   0x8   :  { %24 = vrot.lane.b32.xlu0 %v23_v6, %s123_s20  ;;  %vm49_vm7 = vcmask 785984   ;;  %vm55_vm8 = vcmask 720384   ;;  %vm62_vm9 = vcmask 589184   ;;  %vm68_vm10 = vcmask 523584  }
   0x9   :  { %vm75_vm11 = vcmask 392384   ;;  %vm81_vm12 = vcmask 326784   ;;  %vm88_vm13 = vcmask 261184  }
   0xa   :  { %53 = vrot.lane.b32.xlu1 %v104_v10, %s126_s29 }
   0xc   :  { %47 = vrot.lane.b32.xlu0 %v103_v8, %s125_s28 }
   0xe   :  { %66 = vrot.lane.b32.xlu1 %v106_v12, %s128_s6 }
  0x10   :  { %60 = vrot.lane.b32.xlu0 %v105_v11, %s127_s5 }
  0x12   :  { %79 = vrot.lane.b32.xlu1 %v108_v14, %s130_s12 }
  0x14   :  { %73 = vrot.lane.b32.xlu0 %v107_v13, %s129_s11 }
  0x18   :  { %86 = vrot.lane.b32.xlu0 %v109_v15, %s131_s0 }
  0x74   :  { %v35_v17 = vpop.permute.xlu1 %34  }
  0x76   :  { %v12_v16 = vpop.permute.xlu0 %11  }
  0x77   :  { %15 = vst.msk [vmem:[#allocation0 + $0x1] sm:$0x1] %vm13_vm1, %v12_v16  }
  0x78   :  { %17 = vst.msk [vmem:[#allocation0] sm:$0x1] %vm16_vm3, %v12_v16   ;;  %v41_v19 = vpop.permute.xlu1 %40  }
  0x79   :  { %37 = vst.msk [vmem:[#allocation0] sm:$0x1] %vm36_vm4, %v35_v17  }
  0x7a   :  { %v25_v18 = vpop.permute.xlu0 %24  }
  0x7b   :  { %28 = vst.msk [vmem:[#allocation0 + $0x2] sm:$0x1] %vm9_vm0, %v25_v18  }
  0x7c   :  { %31 = vst.msk [vmem:[#allocation0 + $0x1] sm:$0x1] %vm29_vm5, %v25_v18   ;;  %v54_v21 = vpop.permute.xlu1 %53  }
  0x7d   :  { %44 = vst.msk [vmem:[#allocation0 + $0x1] sm:$0x1] %vm42_vm6, %v41_v19  }
  0x7e   :  { %v48_v20 = vpop.permute.xlu0 %47   ;;  %57 = vst.msk [vmem:[#allocation0 + $0x1] sm:$0x1] %vm55_vm8, %v54_v21  }
  0x7f   :  { %50 = vst.msk [vmem:[#allocation0] sm:$0x1] %vm49_vm7, %v48_v20  }
  0x80   :  { %v67_v23 = vpop.permute.xlu1 %66  }
  0x81   :  { %70 = vst.msk [vmem:[#allocation0 + $0x1] sm:$0x1] %vm68_vm10, %v67_v23  }
  0x82   :  { %v61_v22 = vpop.permute.xlu0 %60  }
  0x83   :  { %63 = vst.msk [vmem:[#allocation0] sm:$0x1] %vm62_vm9, %v61_v22  }
  0x84   :  { %v80_v25 = vpop.permute.xlu1 %79  }
  0x85   :  { %83 = vst.msk [vmem:[#allocation0 + $0x1] sm:$0x1] %vm81_vm12, %v80_v25  }
  0x86   :  { %v74_v24 = vpop.permute.xlu0 %73  }
  0x87   :  { %76 = vst.msk [vmem:[#allocation0] sm:$0x1] %vm75_vm11, %v74_v24  }
  0x8a   :  { %v87_v26 = vpop.permute.xlu0 %86  }
  0x8b   :  { %90 = vst.msk [vmem:[#allocation0 + $0x2] sm:$0x1] %vm88_vm13, %v87_v26  }
  0x92   :  { %v94_v27 = vld [vmem:[#allocation0] sm:$0xf] }
  0x93   :  { %96 = vst [vmem:[%s192_s1] sm:$0xf] %v94_v27 }

// kernel: tile.33
= control target key start
LH: loop header
LB: loop body
LE: loop exit
PB: predicated region body
PF: predicated region fallthrough
CT: control target
= control target key end

     0   :  { %s22_s0 = inlined_call_operand.vmem [shape: f32[48], index: 0, kind: input, shape index: {}]   ;;  %s23_s1 = inlined_call_operand.vmem [shape: f32[5,48], index: 1, kind: output, shape index: {}]  }
   0x1   :  { %v4_v0 = vld [vmem:[%s22_s0] ss:$0 sm:$0xff] }
   0x2   :  { %5 = vst [vmem:[%s23_s1] sm:$0xff] %v4_v0 }

// kernel: tile.34
= control target key start
LH: loop header
LB: loop body
LE: loop exit
PB: predicated region body
PF: predicated region fallthrough
CT: control target
= control target key end

     0   :  { %vm9_vm0 = vcmask 261120   ;;  %s53_s12 = smov 96   ;;  %s54_s13 = smov 48   ;;  %vm3_vm1 = vcmask 392192   ;;  %vm13_vm2 = vcmask 130048   ;;  %vm16_vm3 = vcmask 1048320   ;;  %s88_s0 = inlined_call_operand.vmem [shape: f32[5,48], index: 0, kind: input, shape index: {}]   ;;  %s89_s1 = inlined_call_operand.vmem [shape: f32[240], index: 1, kind: output, shape index: {}]  }
   0x1   :  { %v44_v0 = vld [vmem:[%s88_s0 + $0x2] sm:$0x1]   ;;  %v47_v3 = vld [vmem:[%s88_s0 + $0x1] sm:$0x1]   ;;  %v46_v4 = vld [vmem:[%s88_s0 + $0x4] sm:$0x1]  }
   0x2   :  { %v45_v1 = vld [vmem:[%s88_s0 + $0x2] sm:$0x1]   ;;  %27 = vrot.lane.b32.xlu1 %v47_v3, %s54_s13  ;;  %v48_v5 = vld [vmem:[%s88_s0 + $0x3] sm:$0x1]   ;;  %v2_v6 = vld [vmem:[%s88_s0] sm:$0x1]  }
   0x3   :  { %v10_v2 = vsel %vm9_vm0, %v45_v1, %v44_v0  ;;  %4 = vst.msk [vmem:[#allocation0] sm:$0x1] %vm3_vm1, %v2_v6   ;;  %s55_s0 = smov 64   ;;  %s56_s20 = smov 16   ;;  %vm29_vm4 = vcmask 785792   ;;  %vm22_vm5 = vcmask 916992  }
   0x4   :  { %11 = vrot.lane.b32.xlu0 %v10_v2, %s53_s12  ;;  %vm35_vm6 = vcmask 523392  }
   0x6   :  { %33 = vrot.lane.b32.xlu1 %v48_v5, %s56_s20 }
   0x8   :  { %20 = vrot.lane.b32.xlu0 %v46_v4, %s55_s0 }
  0x74   :  { %v28_v8 = vpop.permute.xlu1 %27  }
  0x76   :  { %v12_v7 = vpop.permute.xlu0 %11  }
  0x77   :  { %15 = vst.msk [vmem:[#allocation0 + $0x1] sm:$0x1] %vm13_vm2, %v12_v7  }
  0x78   :  { %17 = vst.msk [vmem:[#allocation0] sm:$0x1] %vm16_vm3, %v12_v7   ;;  %v34_v10 = vpop.permute.xlu1 %33  }
  0x79   :  { %30 = vst.msk [vmem:[#allocation0] sm:$0x1] %vm29_vm4, %v28_v8  }
  0x7a   :  { %v21_v9 = vpop.permute.xlu0 %20  }
  0x7b   :  { %24 = vst.msk [vmem:[#allocation0 + $0x1] sm:$0x1] %vm22_vm5, %v21_v9  }
  0x7c   :  { %37 = vst.msk [vmem:[#allocation0 + $0x1] sm:$0x1] %vm35_vm6, %v34_v10  }
  0x83   :  { %v41_v11 = vld [vmem:[#allocation0] sm:$0x3] }
  0x84   :  { %43 = vst [vmem:[%s89_s1] sm:$0x3] %v41_v11 }

// kernel: eyenet_forward.1
= control target key start
LH: loop header
LB: loop body
LE: loop exit
PB: predicated region body
PF: predicated region fallthrough
CT: control target
= control target key end

     0   :  { %s7779_s0 = inlined_call_operand.vmem [shape: f32[2,26,26], index: 0, kind: input, shape index: {}]   ;;  %s7780_s1 = inlined_call_operand.vmem [shape: f32[3,26,672], index: 1, kind: input, shape index: {}]   ;;  %s7781_s2 = inlined_call_operand.vmem [shape: f32[1,672], index: 2, kind: input, shape index: {}]   ;;  %s7782_s3 = inlined_call_operand.vmem [shape: f32[3,288,496], index: 3, kind: input, shape index: {}]   ;;  %s7783_s4 = inlined_call_operand.vmem [shape: f32[1,496], index: 4, kind: input, shape index: {}]   ;;  %s7784_s5 = inlined_call_operand.vmem [shape: f32[3,240,256], index: 5, kind: input, shape index: {}]   ;;  %s7785_s6 = inlined_call_operand.vmem [shape: f32[1,256], index: 6, kind: input, shape index: {}]   ;;  %s7786_s7 = inlined_call_operand.vmem [shape: f32[128,2], index: 7, kind: input, shape index: {}]   ;;  %s7787_s8 = inlined_call_operand.vmem [shape: f32[1,2], index: 8, kind: input, shape index: {}]   ;;  %s7788_s9 = inlined_call_operand.hbm [shape: f32[2,1,2], index: 9, kind: output, shape index: {}]  }
   0x1   :  { %7789 = sst [smem:[#allocation8_spill]] %s7779_s0 }
   0x2   :  { %14 = vsyncpa [#allocation6], 0 }
   0x3   :  { %16 = vsyncpa [#allocation6 + $0x1], 0  ;;  %s5327_s30 = smov 0   ;;  %s5329_s10 = smov 0  }
   0x4   :  { %s5331_s11 = smov 0   ;;  %s5333_s12 = smov 0  }
   0x5 LB: > { %s5348_s13 = sadd.s32 4294967295, %s5269_s12   ;;  %s3779_s14 = sadd.s32 4294967294, %s5269_s12   ;;  %s5269_s12 = sphi %s5333_s12, %s7800_s12   ;;  %s5265_s11 = sphi %s5331_s11, %s7799_s11   ;;  %s5261_s10 = sphi %s5329_s10, %s7798_s10   ;;  %s5257_s30 = sphi %s5327_s30, %s7797_s30  }
   0x6   : > { %s5352_s15 = sadd.s32 1, %s5269_s12   ;;  %s223_s16 = sadd.s32 1, %s5265_s11 }
   0x7   : > { %s220_s17 = ssub.s32 %s5269_s12, %s5352_s15  ;;  %p233_p0 = scmp.ne.s32.totalorder %s5265_s11, %s5261_s10 }
   0x8   : > { %p221_p1 = scmp.eq.s32.totalorder %s220_s17, 0  ;;  %p234_p2 = scmp.eq.s32.totalorder %s5348_s13, 1 }
   0x9   : > { %p239_p3 = scmp.ne.s32.totalorder %s5261_s10, %s5257_s30  ;;  %p240_p4 = scmp.eq.s32.totalorder %s3779_s14, 1 }
   0xa   : > { %s5363_s18 = scalar_select %p221_p1, %s5265_s11, %s223_s16  }
   0xb   : > { %p5365_p5 = por %p234_p2, %p233_p0  ;;  %p5369_p6 = por %p240_p4, %p239_p3 }
   0xc   : > { %p3782_p7 = scmp.ge.s32.totalorder %s5269_s12, 1  ;;  %p290_p8 = scmp.lt.s32.totalorder %s5269_s12, 3 }
   0xe   : > { %p291_p9 = pnand %p3782_p7, %p290_p8 }
   0xf   : > { %v3786_v0 = vld [vmem:[%s7780_s1 + $0xc8] sm:$0xff] (!%p291_p9)  ;;  %v3792_v1 = vld [vmem:[%s7780_s1 + $0xf8] sm:$0xff] (!%p291_p9)  ;;  %v3785_v2 = vld [vmem:[%s7780_s1 + $0xc0] sm:$0xff] (!%p291_p9)  ;;  %vm395_vm0 = vcmask (!%p291_p9), 1041408   ;;  %v5271_v7 = vmov (!%p291_p9), 0.0   ;;  %p325_p10 = scmp.lt.s32.totalorder (!%p291_p9), %s5348_s13, 1 }
  0x10   : > { %294 = sbr.rel (%p291_p9) target bundleno = 1261 (0x4ed), region = 56  ;;  %v4357_v3 = vpack.c.bf16 (!%p291_p9), %v3792_v1, %v3786_v0  ;;  %v3791_v4 = vld [vmem:[%s7780_s1 + $0xf0] sm:$0xff] (!%p291_p9)  ;;  %v3798_v5 = vld [vmem:[%s7780_s1 + $0x128] sm:$0xff] (!%p291_p9)  ;;  %v3804_v6 = vld [vmem:[%s7780_s1 + $0x158] sm:$0x3] (!%p291_p9)  ;;  %478 = vmatprep.mubr.f32.mxu0 (!%p291_p9), %v5271_v7  ;;  %561 = vmatprep.mubr.f32.mxu1 (!%p291_p9), %v5271_v7  ;;  %vm5272_vm1 = vmmov (!%p291_p9), 1  }
  0x11   : > { %v4359_v8 = vpack.c.bf16 (!%p291_p9), %v3791_v4, %v3785_v2  ;;  %v4361_v9 = vpack.c.bf16 (!%p291_p9), %v3804_v6, %v3798_v5  ;;  %vm5396_vm2 = vmpackc.low (!%p291_p9), %vm395_vm0, %vm5272_vm1  ;;  %v3797_v11 = vld [vmem:[%s7780_s1 + $0x120] sm:$0xff] (!%p291_p9)  ;;  %v3803_v12 = vld [vmem:[%s7780_s1 + $0x150] sm:$0x3] (!%p291_p9)  ;;  %s7794_s0 = sld [smem:[#allocation8_spill]] (!%p291_p9)  ;;  %vm385_vm3 = vcmask (!%p291_p9), 211968   ;;  %vm1906_vm5 = vcmask (!%p291_p9), 1046528  }
  0x12   : > { %4358 = vmatprep.subr.bf16.mxu0 (!%p291_p9), %v4357_v3  ;;  %v3788_v13 = vld [vmem:[%s7780_s1 + $0xd8] sm:$0xff] (!%p291_p9)  ;;  %v3794_v14 = vld [vmem:[%s7780_s1 + $0x108] sm:$0xff] (!%p291_p9)  ;;  %v4364_v16 = vpack.c.bf16 (!%p291_p9), %v3803_v12, %v3797_v11  ;;  %v3787_v19 = vld [vmem:[%s7780_s1 + $0xd0] sm:$0xff] (!%p291_p9)  ;;  %vm1920_vm6 = vcmask (!%p291_p9), 261120   ;;  %vm2704_vm7 = vcmask (!%p291_p9), 1045504   ;;  %vm3306_vm9 = vcmask (!%p291_p9), 916480  }
  0x13   : > { %v3790_v15 = vld [vmem:[%s7780_s1 + $0xe8] sm:$0xff] (!%p291_p9)  ;;  %4360 = vmatpush1.bf16.msra.mxu0 (!%p291_p9), %v4359_v8  ;;  %v4367_v17 = vpack.c.bf16 (!%p291_p9), %v3794_v14, %v3788_v13  ;;  %v3796_v18 = vld [vmem:[%s7780_s1 + $0x118] sm:$0xff] (!%p291_p9)  ;;  %v3793_v20 = vld [vmem:[%s7780_s1 + $0x100] sm:$0xff] (!%p291_p9)  ;;  %vm5275_vm10 = vmmov (!%p291_p9), 0   ;;  %s323_s28 = sand.u32 (!%p291_p9), 1, %s5261_s10   ;;  %s4301_s14 = sshll.u32 (!%p291_p9), %s5348_s13, 4 }
  0x14   : > { %4363 = vmatprep.subr.msk.bf16.mxu0 (!%p291_p9), %vm5396_vm2, %v4361_v9  ;;  %v4377_v21 = vpack.c.bf16 (!%p291_p9), %v3796_v18, %v3790_v15  ;;  %v4369_v22 = vpack.c.bf16 (!%p291_p9), %v3793_v20, %v3787_v19  ;;  %v3789_v23 = vld [vmem:[%s7780_s1 + $0xe0] sm:$0xff] (!%p291_p9)  ;;  %v3795_v24 = vld [vmem:[%s7780_s1 + $0x110] sm:$0xff] (!%p291_p9)  ;;  %v3800_v25 = vld [vmem:[%s7780_s1 + $0x138] sm:$0xff] (!%p291_p9)  ;;  %s324_s16 = scalar_lea.vmem (!%p291_p9), [#allocation5], %s323_s28  ;;  %vm3709_vm11 = vcmask (!%p291_p9), 8192   ;;  %s7737_s22 = scalar_lea.hbm (!%p291_p9), %s7788_s9, %s4301_s14 }
  0x15   : > { %4368 = vmatprep.subr.bf16.mxu1 (!%p291_p9), %v4367_v17  ;;  %v3806_v26 = vld [vmem:[%s7780_s1 + $0x168] sm:$0x3] (!%p291_p9)  ;;  %v3799_v27 = vld [vmem:[%s7780_s1 + $0x130] sm:$0xff] (!%p291_p9)  ;;  %v3805_v28 = vld [vmem:[%s7780_s1 + $0x160] sm:$0x3] (!%p291_p9)  ;;  %v4379_v33 = vpack.c.bf16 (!%p291_p9), %v3795_v24, %v3789_v23  ;;  %s3724_s17 = sshll.u32 (!%p291_p9), %s324_s16, 4  ;;  %s7739_s17 = int_to_ptr.vmem [resolvable:$true] %s3724_s17 }
  0x16   : > { %4370 = vmatpush1.bf16.msra.mxu1 (!%p291_p9), %v4369_v22  ;;  %v4371_v29 = vpack.c.bf16 (!%p291_p9), %v3806_v26, %v3800_v25  ;;  %v4374_v30 = vpack.c.bf16 (!%p291_p9), %v3805_v28, %v3799_v27  ;;  %v3802_v31 = vld [vmem:[%s7780_s1 + $0x148] sm:$0xff] (!%p291_p9)  ;;  %v3808_v34 = vld [vmem:[%s7780_s1 + $0x178] sm:$0x3] (!%p291_p9)  ;;  %v3801_v36 = vld [vmem:[%s7780_s1 + $0x140] sm:$0xff] (!%p291_p9)  ;;  %s3712_s23 = scalar_lea.sflag (!%p291_p9), [#allocation6], %s323_s28 }
  0x17   : > { %s326_s25 = scalar_select %p325_p10, %s5348_s13, 1  ;;  %4366 = vmatpush1.bf16.msk.msra.mxu0 %vm5396_vm2, %v4364_v16  ;;  %v4381_v35 = vpack.c.bf16 %v3808_v34, %v3802_v31  ;;  %v3807_v37 = vld [vmem:[%s7780_s1 + $0x170] sm:$0x3]  ;;  %v334_v38 = vld [vmem:[%s7780_s1 + $0x8] sm:$0xff]  ;;  %v340_v39 = vld [vmem:[%s7780_s1 + $0x38] sm:$0xff] }
  0x18   : > { %4378 = vmatprep.subr.bf16.mxu0 %v4377_v21  ;;  %4373 = vmatprep.subr.msk.bf16.mxu1 %vm5396_vm2, %v4371_v29  ;;  %v336_v40 = vld [vmem:[%s7780_s1 + $0x18] sm:$0xff]  ;;  %v342_v41 = vld [vmem:[%s7780_s1 + $0x48] sm:$0xff]  ;;  %v335_v43 = vld [vmem:[%s7780_s1 + $0x10] sm:$0xff]  ;;  %v4384_v46 = vpack.c.bf16 %v3807_v37, %v3801_v36  ;;  %v4387_v49 = vpack.c.bf16 %v340_v39, %v334_v38  ;;  %s5276_s13 = smov [#allocation5]  }
  0x19   : > { %s4304_s27 = sshll.u32 %s326_s25, 5  ;;  %v4397_v42 = vpack.c.bf16 %v342_v41, %v336_v40  ;;  %v341_v44 = vld [vmem:[%s7780_s1 + $0x40] sm:$0xff]  ;;  %v348_v47 = vld [vmem:[%s7780_s1 + $0x78] sm:$0xff]  ;;  %v354_v48 = vld [vmem:[%s7780_s1 + $0xa8] sm:$0x3]  ;;  %s5207_s25 = scalar_lea.vmem %s7739_s17, 16 }
  0x1a   : > { %s5439_s24 = scalar_lea.vmem %s7794_s0, %s4304_s27  ;;  %4376 = vmatpush1.bf16.msk.msra.mxu1 %vm5396_vm2, %v4374_v30  ;;  %v4399_v50 = vpack.c.bf16 %v341_v44, %v335_v43  ;;  %v4401_v51 = vpack.c.bf16 %v354_v48, %v348_v47  ;;  %v347_v52 = vld [vmem:[%s7780_s1 + $0x70] sm:$0xff]  ;;  %v353_v53 = vld [vmem:[%s7780_s1 + $0xa0] sm:$0x3]  ;;  %v3842_v55 = vld [vmem:[%s7780_s1 + $0x198] sm:$0xff]  ;;  %p5208_p11 = scmp.ne.s32.totalorder %s7739_s17, %s5207_s25 }
  0x1b   : > { %v5456_v32 = vld [vmem:[%s5439_s24 + $0x1] sm:$0xff]  ;;  %v358_v45 = vld [vmem:[%s5439_s24 + $0x9] sm:$0xff]  ;;  %4398 = vmatprep.subr.bf16.mxu1 %v4397_v42  ;;  %v359_v54 = vld [vmem:[%s5439_s24 + $0x11] sm:$0xff]  ;;  %v4404_v59 = vpack.c.bf16 %v353_v53, %v347_v52  ;;  %s5211_s26 = sshll.u32 %s5276_s13, 4  ;;  %s5212_s26 = int_to_ptr.vmem [resolvable:$false] %s5211_s26 }
  0x1c   : > { %3811 = vmatmul.mubr.msk.f32.vlgmr.msra.gmra.mrb[0].mxu0 %vm385_vm3, %v5456_v32  ;;  %v3848_v56 = vld [vmem:[%s7780_s1 + $0x1c8] sm:$0xff]  ;;  %v333_v57 = vld [vmem:[%s7780_s1] sm:$0xff]  ;;  %v339_v58 = vld [vmem:[%s7780_s1 + $0x30] sm:$0xff]  ;;  %p5209_p12 = pnand %p5208_p11, %p5365_p5  ;;  %p5214_p0 = scmp.lt.s32.totalorder %s7739_s17, %s5212_s26 }
  0x1d   : > { %4380 = vmatpush1.bf16.msra.mxu0 %v4379_v33  ;;  %484 = vmatprep.mubr.f32.mxu0 %v5271_v7  ;;  %v346_v60 = vld [vmem:[%s7780_s1 + $0x68] sm:$0xff]  ;;  %v352_v61 = vld [vmem:[%s7780_s1 + $0x98] sm:$0x3]  ;;  %v4427_v62 = vpack.c.bf16 %v3848_v56, %v3842_v55  ;;  %v4389_v63 = vpack.c.bf16 %v339_v58, %v333_v57  ;;  %v345_v1 = vld [vmem:[%s7780_s1 + $0x60] sm:$0xff] }
  0x1e   : > { %4383 = vmatprep.subr.msk.bf16.mxu0 %vm5396_vm2, %v4381_v35  ;;  %3816 = vmatmul.mubr.msk.f32.vlgmr.msra.gmra.mrb[0].mxu1 %vm385_vm3, %v5456_v32  ;;  %v4391_v0 = vpack.c.bf16 %v352_v61, %v346_v60  ;;  %v351_v2 = vld [vmem:[%s7780_s1 + $0x90] sm:$0x3]  ;;  %v338_v3 = vld [vmem:[%s7780_s1 + $0x28] sm:$0xff]  ;;  %v344_v4 = vld [vmem:[%s7780_s1 + $0x58] sm:$0xff]  ;;  %p5210_p13 = pneg %p5209_p12 }
  0x1f   : > { %567 = vmatprep.mubr.f32.mxu1 %v5271_v7  ;;  %4400 = vmatpush1.bf16.msra.mxu1 %v4399_v50  ;;  %v3841_v5 = vld [vmem:[%s7780_s1 + $0x190] sm:$0xff]  ;;  %v3847_v6 = vld [vmem:[%s7780_s1 + $0x1c0] sm:$0xff]  ;;  %v3854_v9 = vld [vmem:[%s7780_s1 + $0x1f8] sm:$0xff]  ;;  %v4394_v12 = vpack.c.bf16 %v351_v2, %v345_v1  ;;  %v4407_v13 = vpack.c.bf16 %v344_v4, %v338_v3 }
  0x20   : > { %3812 = vmatmul.mubr.msk.f32.gmra.mrb[2].mxu0 %vm385_vm3, %v358_v45  ;;  %4403 = vmatprep.subr.msk.bf16.mxu1 %vm5396_vm2, %v4401_v51  ;;  %v5564_v8 = vld [vmem:[%s5439_s24] sm:$0xff]  ;;  %v3860_v11 = vld [vmem:[%s7780_s1 + $0x228] sm:$0x3]  ;;  %v4429_v14 = vpack.c.bf16 %v3847_v6, %v3841_v5  ;;  %v3853_v16 = vld [vmem:[%s7780_s1 + $0x1f0] sm:$0xff] }
  0x21   : > { %490 = vmatprep.mubr.f32.mxu0 %v5271_v7  ;;  %4386 = vmatpush1.bf16.msk.msra.mxu0 %vm5396_vm2, %v4384_v46  ;;  %v4431_v15 = vpack.c.bf16 %v3860_v11, %v3854_v9  ;;  %v3859_v17 = vld [vmem:[%s7780_s1 + $0x220] sm:$0x3]  ;;  %v331_v18 = vld [vmem:[%s5439_s24 + $0x8] sm:$0xff]  ;;  %v343_v20 = vld [vmem:[%s7780_s1 + $0x50] sm:$0xff] }
  0x22   : > { %4388 = vmatprep.subr.bf16.mxu0 %v4387_v49  ;;  %3817 = vmatmul.mubr.msk.f32.gmra.mrb[2].mxu1 %vm385_vm3, %v358_v45  ;;  %v337_v19 = vld [vmem:[%s7780_s1 + $0x20] sm:$0xff]  ;;  %v4434_v21 = vpack.c.bf16 %v3859_v17, %v3853_v16  ;;  %v350_v22 = vld [vmem:[%s7780_s1 + $0x88] sm:$0xff]  ;;  %v356_v23 = vld [vmem:[%s7780_s1 + $0xb8] sm:$0x3] }
  0x23   : > { %573 = vmatprep.mubr.f32.mxu1 %v5271_v7  ;;  %4406 = vmatpush1.bf16.msk.msra.mxu1 %vm5396_vm2, %v4404_v59  ;;  %v332_v24 = vld [vmem:[%s5439_s24 + $0x10] sm:$0xff]  ;;  %v4409_v25 = vpack.c.bf16 %v343_v20, %v337_v19  ;;  %v4411_v26 = vpack.c.bf16 %v356_v23, %v350_v22  ;;  %v349_v27 = vld [vmem:[%s7780_s1 + $0x80] sm:$0xff]  ;;  %v3840_v29 = vld [vmem:[%s7780_s1 + $0x188] sm:$0xff] }
  0x24   : > { %3813 = vmatmul.mubr.msk.f32.gmra.mrb[4].mxu0 %vm385_vm3, %v359_v54  ;;  %4428 = vmatprep.subr.bf16.mxu1 %v4427_v62  ;;  %v355_v28 = vld [vmem:[%s7780_s1 + $0xb0] sm:$0x3]  ;;  %v3846_v30 = vld [vmem:[%s7780_s1 + $0x1b8] sm:$0xff]  ;;  %v939_v31 = vld [vmem:[%s5439_s24 + $0x2] sm:$0xff] }
  0x25   : > { %644 = vmatprep.mubr.f32.mxu0 %v5271_v7  ;;  %v4417_v33 = vpack.c.bf16 %v3846_v30, %v3840_v29  ;;  %v940_v34 = vld [vmem:[%s5439_s24 + $0xa] sm:$0xff]  ;;  %v3839_v35 = vld [vmem:[%s7780_s1 + $0x180] sm:$0xff]  ;;  %v3858_v38 = vld [vmem:[%s7780_s1 + $0x218] sm:$0x3] }
  0x26   : > { %3818 = vmatmul.mubr.msk.f32.gmra.mrb[4].mxu1 %vm385_vm3, %v359_v54  ;;  %v3845_v36 = vld [vmem:[%s7780_s1 + $0x1b0] sm:$0xff]  ;;  %v3852_v37 = vld [vmem:[%s7780_s1 + $0x1e8] sm:$0xff]  ;;  %v3851_v42 = vld [vmem:[%s7780_s1 + $0x1e0] sm:$0xff] }
  0x27   : > { %837 = vmatprep.mubr.f32.mxu1 %v5271_v7  ;;  %v941_v39 = vld [vmem:[%s5439_s24 + $0x12] sm:$0xff]  ;;  %v4419_v40 = vpack.c.bf16 %v3845_v36, %v3839_v35  ;;  %v4421_v41 = vpack.c.bf16 %v3858_v38, %v3852_v37  ;;  %v3857_v43 = vld [vmem:[%s7780_s1 + $0x210] sm:$0x3]  ;;  %v3844_v44 = vld [vmem:[%s7780_s1 + $0x1a8] sm:$0xff]  ;;  %s5213_s24 = scalar_lea.vmem %s5212_s26, 32 }
  0x28   : > { %3821 = vmatmul.mubr.msk.f32.vlgmr.msra.gmra.mrb[6].mxu0 %vm385_vm3, %v5456_v32  ;;  %v4414_v32 = vpack.c.bf16 %v355_v28, %v349_v27  ;;  %v4424_v46 = vpack.c.bf16 %v3857_v43, %v3851_v42  ;;  %v3843_v48 = vld [vmem:[%s7780_s1 + $0x1a0] sm:$0xff]  ;;  %v3849_v49 = vld [vmem:[%s7780_s1 + $0x1d0] sm:$0xff]  ;;  %v3856_v50 = vld [vmem:[%s7780_s1 + $0x208] sm:$0xff]  ;;  %p5215_p1 = scmp.lt.s32.totalorder %s5213_s24, %s5207_s25 }
  0x29   : > { %4390 = vmatpush1.bf16.msra.mxu0 %v4389_v63  ;;  %650 = vmatprep.mubr.f32.mxu0 %v5271_v7  ;;  %v3862_v51 = vld [vmem:[%s7780_s1 + $0x238] sm:$0x3]  ;;  %v4439_v52 = vpack.c.bf16 %v3849_v49, %v3843_v48  ;;  %v3861_v55 = vld [vmem:[%s7780_s1 + $0x230] sm:$0x3]  ;;  %v3879_v57 = vld [vmem:[%s7782_s3 + $0x488] sm:$0xff] }
  0x2a   : > { %4393 = vmatprep.subr.msk.bf16.mxu0 %vm5396_vm2, %v4391_v0  ;;  %3831 = vmatmul.mubr.msk.f32.vlgmr.msra.gmra.mrb[0].mxu1 %vm385_vm3, %v5564_v8  ;;  %v4441_v53 = vpack.c.bf16 %v3862_v51, %v3856_v50  ;;  %v3883_v10 = vld [vmem:[%s7782_s3 + $0x4a8] sm:$0xff]  ;;  %v3881_v58 = vld [vmem:[%s7782_s3 + $0x498] sm:$0xff]  ;;  %v3878_v61 = vld [vmem:[%s7782_s3 + $0x480] sm:$0xff]  ;;  %p5216_p2 = por %p5215_p1, %p5214_p0 }
  0x2b   : > { %843 = vmatprep.mubr.f32.mxu1 %v5271_v7  ;;  %4430 = vmatpush1.bf16.msra.mxu1 %v4429_v14  ;;  %v4447_v59 = vpack.c.bf16 %v3883_v10, %v3879_v57  ;;  %v3885_v60 = vld [vmem:[%s7782_s3 + $0x4b8] sm:$0xff]  ;;  %v3882_v62 = vld [vmem:[%s7782_s3 + $0x4a0] sm:$0xff]  ;;  %v3880_v1 = vld [vmem:[%s7782_s3 + $0x490] sm:$0xff] }
  0x2c   : > { %3822 = vmatmul.mubr.msk.f32.gmra.mrb[8].mxu0 %vm385_vm3, %v358_v45  ;;  %4433 = vmatprep.subr.msk.bf16.mxu1 %vm5396_vm2, %v4431_v15  ;;  %v3850_v45 = vld [vmem:[%s7780_s1 + $0x1d8] sm:$0xff]  ;;  %v4519_v63 = vpack.c.bf16 %v3885_v60, %v3881_v58  ;;  %v4449_v0 = vpack.c.bf16 %v3882_v62, %v3878_v61  ;;  %v3884_v2 = vld [vmem:[%s7782_s3 + $0x4b0] sm:$0xff]  ;;  %v3887_v4 = vld [vmem:[%s7782_s3 + $0x4c8] sm:$0xff]  ;;  %p5217_p3 = pnand %p5216_p2, %p5210_p13 }
  0x2d   : > { %656 = vmatprep.mubr.f32.mxu0 %v5271_v7  ;;  %4396 = vmatpush1.bf16.msk.msra.mxu0 %vm5396_vm2, %v4394_v12  ;;  %v4437_v47 = vpack.c.bf16 %v3850_v45, %v3844_v44  ;;  %v4521_v3 = vpack.c.bf16 %v3884_v2, %v3880_v1  ;;  %v3891_v5 = vld [vmem:[%s7782_s3 + $0x4e8] sm:$0xff]  ;;  %v3889_v6 = vld [vmem:[%s7782_s3 + $0x4d8] sm:$0xff]  ;;  %v3886_v11 = vld [vmem:[%s7782_s3 + $0x4c0] sm:$0xff] }
  0x2e   : > { %4408 = vmatprep.subr.bf16.mxu0 %v4407_v13  ;;  %3832 = vmatmul.mubr.msk.f32.gmra.mrb[2].mxu1 %vm385_vm3, %v331_v18  ;;  %v3893_v9 = vld [vmem:[%s7782_s3 + $0x4f8] sm:$0xff]  ;;  %v3890_v12 = vld [vmem:[%s7782_s3 + $0x4e0] sm:$0xff]  ;;  %v3888_v15 = vld [vmem:[%s7782_s3 + $0x4d0] sm:$0xff] }
  0x2f   : > { %849 = vmatprep.mubr.f32.mxu1 %v5271_v7  ;;  %4436 = vmatpush1.bf16.msk.msra.mxu1 %vm5396_vm2, %v4434_v21  ;;  %v4523_v13 = vpack.c.bf16 %v3893_v9, %v3889_v6  ;;  %v4453_v14 = vpack.c.bf16 %v3890_v12, %v3886_v11  ;;  %v3892_v16 = vld [vmem:[%s7782_s3 + $0x4f0] sm:$0xff]  ;;  %v3895_v17 = vld [vmem:[%s7782_s3 + $0x508] sm:$0xff]  ;;  %v3897_v20 = vld [vmem:[%s7782_s3 + $0x518] sm:$0xff] }
  0x30   : > { %3823 = vmatmul.mubr.msk.f32.gmra.mrb[10].mxu0 %vm385_vm3, %v359_v54  ;;  %v3855_v54 = vld [vmem:[%s7780_s1 + $0x200] sm:$0xff]  ;;  %4448 = vmatprep.subr.bf16.mxu1 %v4447_v59  ;;  %v3899_v19 = vld [vmem:[%s7782_s3 + $0x528] sm:$0xff]  ;;  %v3901_v21 = vld [vmem:[%s7782_s3 + $0x538] sm:$0xff] }
  0x31   : > { %754 = vmatprep.mubr.f32.mxu0 %v5271_v7  ;;  %v4444_v56 = vpack.c.bf16 %v3861_v55, %v3855_v54  ;;  %v4455_v22 = vpack.c.bf16 %v3899_v19, %v3895_v17  ;;  %v4527_v23 = vpack.c.bf16 %v3901_v21, %v3897_v20  ;;  %v3900_v28 = vld [vmem:[%s7782_s3 + $0x530] sm:$0xff]  ;;  %v3903_v30 = vld [vmem:[%s7782_s3 + $0x548] sm:$0xff]  ;;  %v3902_v35 = vld [vmem:[%s7782_s3 + $0x540] sm:$0xff] }
  0x32   : > { %3833 = vmatmul.mubr.msk.f32.gmra.mrb[4].mxu1 %vm385_vm3, %v332_v24  ;;  %v3906_v36 = vld [vmem:[%s7782_s3 + $0x560] sm:$0xff]  ;;  %v3911_v42 = vld [vmem:[%s7782_s3 + $0x588] sm:$0xff]  ;;  %v3913_v44 = vld [vmem:[%s7782_s3 + $0x598] sm:$0xff] }
  0x33   : > { %1141 = vmatprep.mubr.f32.mxu1 %v5271_v7  ;;  %v4461_v38 = vpack.c.bf16 %v3906_v36, %v3902_v35  ;;  %v3915_v43 = vld [vmem:[%s7782_s3 + $0x5a8] sm:$0xff]  ;;  %v3914_v48 = vld [vmem:[%s7782_s3 + $0x5a0] sm:$0xff]  ;;  %v3912_v51 = vld [vmem:[%s7782_s3 + $0x590] sm:$0xff] }
  0x34   : > { %3826 = vmatmul.mubr.msk.f32.vlgmr.msra.gmra.mrb[0].mxu0 %vm385_vm3, %v5564_v8  ;;  %v4463_v45 = vpack.c.bf16 %v3915_v43, %v3911_v42  ;;  %v3919_v54 = vld [vmem:[%s7782_s3 + $0x5c8] sm:$0xff]  ;;  %v3925_v10 = vld [vmem:[%s7782_s3 + $0x5f8] sm:$0xff]  ;;  %v3918_v58 = vld [vmem:[%s7782_s3 + $0x5c0] sm:$0xff] }
  0x35   : > { %4410 = vmatpush1.bf16.msra.mxu0 %v4409_v25  ;;  %760 = vmatprep.mubr.f32.mxu0 %v5271_v7  ;;  %v3898_v25 = vld [vmem:[%s7782_s3 + $0x520] sm:$0xff]  ;;  %v3923_v55 = vld [vmem:[%s7782_s3 + $0x5e8] sm:$0xff]  ;;  %v3920_v62 = vld [vmem:[%s7782_s3 + $0x5d0] sm:$0xff] }
  0x36   : > { %4413 = vmatprep.subr.msk.bf16.mxu0 %vm5396_vm2, %v4411_v26  ;;  %3870 = vmatmul.mubr.msk.f32.vlgmr.msra.gmra.mrb[0].mxu1 %vm385_vm3, %v939_v31  ;;  %v3896_v26 = vld [vmem:[%s7782_s3 + $0x510] sm:$0xff]  ;;  %v4467_v57 = vpack.c.bf16 %v3923_v55, %v3919_v54  ;;  %v3922_v59 = vld [vmem:[%s7782_s3 + $0x5e0] sm:$0xff]  ;;  %v3927_v1 = vld [vmem:[%s7782_s3 + $0x608] sm:$0xff] }
  0x37   : > { %1147 = vmatprep.mubr.f32.mxu1 %v5271_v7  ;;  %4450 = vmatpush1.bf16.msra.mxu1 %v4449_v0  ;;  %v4529_v29 = vpack.c.bf16 %v3900_v28, %v3896_v26  ;;  %v4469_v61 = vpack.c.bf16 %v3922_v59, %v3918_v58  ;;  %v3931_v2 = vld [vmem:[%s7782_s3 + $0x628] sm:$0xff]  ;;  %v3926_v6 = vld [vmem:[%s7782_s3 + $0x600] sm:$0xff]  ;;  %v3928_v12 = vld [vmem:[%s7782_s3 + $0x610] sm:$0xff] }
  0x38   : > { %3827 = vmatmul.mubr.msk.f32.gmra.mrb[2].mxu0 %vm385_vm3, %v331_v18  ;;  %v3937_v17 = vld [vmem:[%s7782_s3 + $0x658] sm:$0xff]  ;;  %v3934_v20 = vld [vmem:[%s7782_s3 + $0x640] sm:$0xff]  ;;  %v3947_v28 = vld [vmem:[%s7782_s3 + $0x6a8] sm:$0xff] }
  0x39   : > { %766 = vmatprep.mubr.f32.mxu0 %v5271_v7  ;;  %4416 = vmatpush1.bf16.msk.msra.mxu0 %vm5396_vm2, %v4414_v32  ;;  %v3905_v32 = vld [vmem:[%s7782_s3 + $0x558] sm:$0xff]  ;;  %v3938_v21 = vld [vmem:[%s7782_s3 + $0x660] sm:$0xff]  ;;  %v3944_v36 = vld [vmem:[%s7782_s3 + $0x690] sm:$0xff] }
  0x3a   : > { %4418 = vmatprep.subr.bf16.mxu0 %v4417_v33  ;;  %3871 = vmatmul.mubr.msk.f32.gmra.mrb[2].mxu1 %vm385_vm3, %v940_v34  ;;  %v3941_v19 = vld [vmem:[%s7782_s3 + $0x678] sm:$0xff]  ;;  %v3960_v59 = vld [vmem:[%s7782_s3 + $0x710] sm:$0xff] }
  0x3b   : > { %1153 = vmatprep.mubr.f32.mxu1 %v5271_v7  ;;  %v3957_v43 = vld [vmem:[%s7782_s3 + $0x6f8] sm:$0xff] }
  0x3c   : > { %3828 = vmatmul.mubr.msk.f32.gmra.mrb[4].mxu0 %vm385_vm3, %v332_v24  ;;  %v3965_v55 = vld [vmem:[%s7782_s3 + $0x738] sm:$0xff] }
  0x3d   : > { %920 = vmatprep.mubr.f32.mxu0 %v5271_v7 }
  0x3e   : > { %3872 = vmatmul.mubr.msk.f32.gmra.mrb[4].mxu1 %vm385_vm3, %v941_v39 }
  0x40   : > { %3836 = vmatmul.mubr.msk.f32.vlgmr.msra.gmra.mrb[6].mxu0 %vm385_vm3, %v5564_v8  ;;  %v4451_v8 = vpack.c.bf16 %v3891_v5, %v3887_v4  ;;  %v4471_v4 = vpack.c.bf16 %v3931_v2, %v3927_v1  ;;  %v3933_v5 = vld [vmem:[%s7782_s3 + $0x638] sm:$0xff] }
  0x41   : > { %4420 = vmatpush1.bf16.msra.mxu0 %v4419_v40  ;;  %926 = vmatprep.mubr.f32.mxu0 %v5271_v7  ;;  %v3908_v40 = vld [vmem:[%s7782_s3 + $0x570] sm:$0xff]  ;;  %v3973_v2 = vld [vmem:[%s7782_s3 + $0x778] sm:$0xff] }
  0x42   : > { %4423 = vmatprep.subr.msk.bf16.mxu0 %vm5396_vm2, %v4421_v41  ;;  %4452 = vmatprep.subr.bf16.mxu1 %v4451_v8  ;;  %v3930_v8 = vld [vmem:[%s7782_s3 + $0x620] sm:$0xff] }
  0x43   : > { %4454 = vmatpush1.bf16.msra.mxu1 %v4453_v14  ;;  %v4473_v11 = vpack.c.bf16 %v3930_v8, %v3926_v6  ;;  %v3968_v8 = vld [vmem:[%s7782_s3 + $0x750] sm:$0xff] }
  0x44   : > { %3837 = vmatmul.mubr.msk.f32.gmra.mrb[8].mxu0 %vm385_vm3, %v331_v18  ;;  %v4525_v18 = vpack.c.bf16 %v3892_v16, %v3888_v15  ;;  %4456 = vmatprep.subr.bf16.mxu1 %v4455_v22  ;;  %v3935_v15 = vld [vmem:[%s7782_s3 + $0x648] sm:$0xff]  ;;  %v4547_v22 = vpack.c.bf16 %v3941_v19, %v3937_v17  ;;  %v3974_v17 = vld [vmem:[%s7782_s3 + $0x780] sm:$0xff] }
  0x45   : > { %932 = vmatprep.mubr.f32.mxu0 %v5271_v7  ;;  %4426 = vmatpush1.bf16.msk.msra.mxu0 %vm5396_vm2, %v4424_v46  ;;  %v3917_v46 = vld [vmem:[%s7782_s3 + $0x5b8] sm:$0xff]  ;;  %v3939_v16 = vld [vmem:[%s7782_s3 + $0x668] sm:$0xff] }
  0x46   : > { %4438 = vmatprep.subr.bf16.mxu0 %v4437_v47  ;;  %v3910_v47 = vld [vmem:[%s7782_s3 + $0x580] sm:$0xff]  ;;  %v4535_v49 = vpack.c.bf16 %v3917_v46, %v3913_v44 }
  0x47   : > { %v4465_v50 = vpack.c.bf16 %v3914_v48, %v3910_v47  ;;  %v3950_v44 = vld [vmem:[%s7782_s3 + $0x6c0] sm:$0xff]  ;;  %v3952_v48 = vld [vmem:[%s7782_s3 + $0x6d0] sm:$0xff] }
  0x48   : > { %3838 = vmatmul.mubr.msk.f32.gmra.mrb[10].mxu0 %vm385_vm3, %v332_v24  ;;  %v3894_v24 = vld [vmem:[%s7782_s3 + $0x500] sm:$0xff] }
  0x49   : > { %1058 = vmatprep.mubr.f32.mxu0 %v5271_v7  ;;  %v4457_v27 = vpack.c.bf16 %v3898_v25, %v3894_v24  ;;  %v3936_v24 = vld [vmem:[%s7782_s3 + $0x650] sm:$0xff] }
  0x4a   : > { %v3940_v25 = vld [vmem:[%s7782_s3 + $0x670] sm:$0xff] }
  0x4b   : > { %4458 = vmatpush1.bf16.msra.mxu1 %v4457_v27  ;;  %v4549_v26 = vpack.c.bf16 %v3940_v25, %v3936_v24  ;;  %v3943_v27 = vld [vmem:[%s7782_s3 + $0x688] sm:$0xff] }
  0x4c   : > { %3865 = vmatmul.mubr.msk.f32.vlgmr.msra.gmra.mrb[0].mxu0 %vm385_vm3, %v939_v31  ;;  %v3983_v24 = vld [vmem:[%s7782_s3 + $0x7c8] sm:$0xff] }
  0x4d   : > { %4440 = vmatpush1.bf16.msra.mxu0 %v4439_v52  ;;  %1064 = vmatprep.mubr.f32.mxu0 %v5271_v7  ;;  %v3916_v52 = vld [vmem:[%s7782_s3 + $0x5b0] sm:$0xff]  ;;  %v3987_v25 = vld [vmem:[%s7782_s3 + $0x7e8] sm:$0xff] }
  0x4e   : > { %4443 = vmatprep.subr.msk.bf16.mxu0 %vm5396_vm2, %v4441_v53  ;;  %v4537_v53 = vpack.c.bf16 %v3916_v52, %v3912_v51  ;;  %v3959_v51 = vld [vmem:[%s7782_s3 + $0x708] sm:$0xff] }
  0x4f   : > { %v3963_v52 = vld [vmem:[%s7782_s3 + $0x728] sm:$0xff] }
  0x50   : > { %3866 = vmatmul.mubr.msk.f32.gmra.mrb[2].mxu0 %vm385_vm3, %v940_v34  ;;  %v4487_v54 = vpack.c.bf16 %v3963_v52, %v3959_v51  ;;  %v4005_v51 = vld [vmem:[%s7782_s3 + $0x878] sm:$0xff] }
  0x51   : > { %1070 = vmatprep.mubr.f32.mxu0 %v5271_v7  ;;  %4446 = vmatpush1.bf16.msk.msra.mxu0 %vm5396_vm2, %v4444_v56  ;;  %v3921_v56 = vld [vmem:[%s7782_s3 + $0x5d8] sm:$0xff] }
  0x52   : > { %4520 = vmatprep.subr.bf16.mxu0 %v4519_v63  ;;  %v4539_v60 = vpack.c.bf16 %v3925_v10, %v3921_v56  ;;  %v3924_v63 = vld [vmem:[%s7782_s3 + $0x5f0] sm:$0xff]  ;;  %v3958_v56 = vld [vmem:[%s7782_s3 + $0x700] sm:$0xff] }
  0x53   : > { %v4541_v0 = vpack.c.bf16 %v3924_v63, %v3920_v62  ;;  %v3967_v62 = vld [vmem:[%s7782_s3 + $0x748] sm:$0xff] }
  0x54   : > { %3867 = vmatmul.mubr.msk.f32.gmra.mrb[4].mxu0 %vm385_vm3, %v941_v39  ;;  %v3971_v63 = vld [vmem:[%s7782_s3 + $0x768] sm:$0xff] }
  0x55   : > { %1224 = vmatprep.mubr.f32.mxu0 %v5271_v7  ;;  %v4491_v1 = vpack.c.bf16 %v3971_v63, %v3967_v62  ;;  %v4013_v63 = vld [vmem:[%s7782_s3 + $0x8b8] sm:$0xff] }
  0x58   : > { %3875 = vmatmul.mubr.msk.f32.vlgmr.msra.gmra.mrb[6].mxu0 %vm385_vm3, %v939_v31  ;;  %v3907_v31 = vld [vmem:[%s7782_s3 + $0x568] sm:$0xff] }
  0x59   : > { %1230 = vmatprep.mubr.f32.mxu0 %v5271_v7  ;;  %4522 = vmatpush1.bf16.msra.mxu0 %v4521_v3  ;;  %v4459_v33 = vpack.c.bf16 %v3907_v31, %v3903_v30  ;;  %v3929_v3 = vld [vmem:[%s7782_s3 + $0x618] sm:$0xff]  ;;  %v4479_v30 = vpack.c.bf16 %v3947_v28, %v3943_v27  ;;  %v4499_v27 = vpack.c.bf16 %v3987_v25, %v3983_v24 }
  0x5a   : > { %4524 = vmatprep.subr.bf16.mxu0 %v4523_v13  ;;  %v4543_v9 = vpack.c.bf16 %v3933_v5, %v3929_v3  ;;  %v3932_v13 = vld [vmem:[%s7782_s3 + $0x630] sm:$0xff]  ;;  %v3949_v31 = vld [vmem:[%s7782_s3 + $0x6b8] sm:$0xff]  ;;  %v3966_v3 = vld [vmem:[%s7782_s3 + $0x740] sm:$0xff] }
  0x5b   : > { %4460 = vmatprep.subr.bf16.mxu1 %v4459_v33  ;;  %v4545_v14 = vpack.c.bf16 %v3932_v13, %v3928_v12  ;;  %v3946_v33 = vld [vmem:[%s7782_s3 + $0x6a0] sm:$0xff]  ;;  %v3975_v12 = vld [vmem:[%s7782_s3 + $0x788] sm:$0xff]  ;;  %v3989_v28 = vld [vmem:[%s7782_s3 + $0x7f8] sm:$0xff] }
  0x5c   : > { %3876 = vmatmul.mubr.msk.f32.gmra.mrb[8].mxu0 %vm385_vm3, %v940_v34  ;;  %v3909_v34 = vld [vmem:[%s7782_s3 + $0x578] sm:$0xff]  ;;  %4462 = vmatpush1.bf16.msra.mxu1 %v4461_v38  ;;  %v3979_v13 = vld [vmem:[%s7782_s3 + $0x7a8] sm:$0xff] }
  0x5d   : > { %1236 = vmatprep.mubr.f32.mxu0 %v5271_v7  ;;  %4526 = vmatpush1.bf16.msra.mxu0 %v4525_v18  ;;  %v4531_v37 = vpack.c.bf16 %v3909_v34, %v3905_v32  ;;  %v4475_v18 = vpack.c.bf16 %v3939_v16, %v3935_v15  ;;  %v3942_v32 = vld [vmem:[%s7782_s3 + $0x680] sm:$0xff]  ;;  %v4495_v15 = vpack.c.bf16 %v3979_v13, %v3975_v12  ;;  %v3981_v16 = vld [vmem:[%s7782_s3 + $0x7b8] sm:$0xff] }
  0x5e   : > { %4528 = vmatprep.subr.bf16.mxu0 %v4527_v23  ;;  %4464 = vmatprep.subr.bf16.mxu1 %v4463_v45  ;;  %v4477_v23 = vpack.c.bf16 %v3938_v21, %v3934_v20  ;;  %v4481_v35 = vpack.c.bf16 %v3946_v33, %v3942_v32  ;;  %v3954_v45 = vld [vmem:[%s7782_s3 + $0x6e0] sm:$0xff]  ;;  %v3976_v21 = vld [vmem:[%s7782_s3 + $0x790] sm:$0xff] }
  0x5f   : > { %v4485_v47 = vpack.c.bf16 %v3954_v45, %v3950_v44  ;;  %v3984_v33 = vld [vmem:[%s7782_s3 + $0x7d0] sm:$0xff]  ;;  %v1261_v12 = vld [vmem:[%s7781_s2] sm:$0x3f] }
  0x60   : > { %3877 = vmatmul.mubr.msk.f32.gmra.mrb[10].mxu0 %vm385_vm3, %v941_v39  ;;  %v3904_v39 = vld [vmem:[%s7782_s3 + $0x550] sm:$0xff]  ;;  %4466 = vmatpush1.bf16.msra.mxu1 %v4465_v50 }
  0x61   : > { %4530 = vmatpush1.bf16.msra.mxu0 %v4529_v29  ;;  %v4533_v41 = vpack.c.bf16 %v3908_v40, %v3904_v39  ;;  %4468 = vmatprep.subr.bf16.mxu1 %v4467_v57  ;;  %v3945_v29 = vld [vmem:[%s7782_s3 + $0x698] sm:$0xff]  ;;  %v3951_v39 = vld [vmem:[%s7782_s3 + $0x6c8] sm:$0xff]  ;;  %v3962_v57 = vld [vmem:[%s7782_s3 + $0x720] sm:$0xff] }
  0x62   : > { %4532 = vmatprep.subr.bf16.mxu0 %v4531_v37  ;;  %v4551_v34 = vpack.c.bf16 %v3949_v31, %v3945_v29  ;;  %v3948_v37 = vld [vmem:[%s7782_s3 + $0x6b0] sm:$0xff]  ;;  %v3955_v40 = vld [vmem:[%s7782_s3 + $0x6e8] sm:$0xff]  ;;  %v4489_v58 = vpack.c.bf16 %v3962_v57, %v3958_v56  ;;  %v3982_v29 = vld [vmem:[%s7782_s3 + $0x7c0] sm:$0xff] }
  0x63   : > { %v4553_v38 = vpack.c.bf16 %v3948_v37, %v3944_v36  ;;  %v4483_v42 = vpack.c.bf16 %v3955_v40, %v3951_v39  ;;  %v3991_v36 = vld [vmem:[%s7782_s3 + $0x808] sm:$0xff]  ;;  %v3997_v40 = vld [vmem:[%s7782_s3 + $0x838] sm:$0xff]  ;;  %v3992_v45 = vld [vmem:[%s7782_s3 + $0x810] sm:$0xff] }
  0x64   : > { %4470 = vmatpush1.bf16.msra.mxu1 %v4469_v61  ;;  %v3995_v37 = vld [vmem:[%s7782_s3 + $0x828] sm:$0xff]  ;;  %v4000_v56 = vld [vmem:[%s7782_s3 + $0x850] sm:$0xff] }
  0x65   : > { %4534 = vmatpush1.bf16.msra.mxu0 %v4533_v41  ;;  %4472 = vmatprep.subr.bf16.mxu1 %v4471_v4  ;;  %v3953_v41 = vld [vmem:[%s7782_s3 + $0x6d8] sm:$0xff]  ;;  %v3970_v4 = vld [vmem:[%s7782_s3 + $0x760] sm:$0xff]  ;;  %v4503_v39 = vpack.c.bf16 %v3995_v37, %v3991_v36 }
  0x66   : > { %4536 = vmatprep.subr.bf16.mxu0 %v4535_v49  ;;  %v4555_v46 = vpack.c.bf16 %v3957_v43, %v3953_v41  ;;  %v3956_v49 = vld [vmem:[%s7782_s3 + $0x6f0] sm:$0xff]  ;;  %v4493_v6 = vpack.c.bf16 %v3970_v4, %v3966_v3  ;;  %v3990_v41 = vld [vmem:[%s7782_s3 + $0x800] sm:$0xff]  ;;  %v1263_v3 = vlaneseq }
  0x67   : > { %v4557_v50 = vpack.c.bf16 %v3956_v49, %v3952_v48  ;;  %v4003_v49 = vld [vmem:[%s7782_s3 + $0x868] sm:$0xff] }
  0x68   : > { %4474 = vmatpush1.bf16.msra.mxu1 %v4473_v11  ;;  %vm6137_vm4 = vcmp.lt.s32.totalorder %v1263_v3, 288  ;;  %vm3114_vm8 = vcmp.lt.s32.totalorder %v1263_v3, 240 }
  0x69   : > { %4538 = vmatpush1.bf16.msra.mxu0 %v4537_v53  ;;  %4476 = vmatprep.subr.bf16.mxu1 %v4475_v18  ;;  %v3961_v53 = vld [vmem:[%s7782_s3 + $0x718] sm:$0xff]  ;;  %v3978_v18 = vld [vmem:[%s7782_s3 + $0x7a0] sm:$0xff] }
  0x6a   : > { %4540 = vmatprep.subr.bf16.mxu0 %v4539_v60  ;;  %v4559_v10 = vpack.c.bf16 %v3965_v55, %v3961_v53  ;;  %v3964_v60 = vld [vmem:[%s7782_s3 + $0x730] sm:$0xff]  ;;  %v4497_v20 = vpack.c.bf16 %v3978_v18, %v3974_v17  ;;  %v4002_v55 = vld [vmem:[%s7782_s3 + $0x860] sm:$0xff] }
  0x6b   : > { %v4561_v61 = vpack.c.bf16 %v3964_v60, %v3960_v59  ;;  %v4007_v59 = vld [vmem:[%s7782_s3 + $0x888] sm:$0xff] }
  0x6c   : > { %4478 = vmatpush1.bf16.msra.mxu1 %v4477_v23  ;;  %v4011_v60 = vld [vmem:[%s7782_s3 + $0x8a8] sm:$0xff] }
  0x6d   : > { %4542 = vmatpush1.bf16.msra.mxu0 %v4541_v0  ;;  %4480 = vmatprep.subr.bf16.mxu1 %v4479_v30  ;;  %v3969_v0 = vld [vmem:[%s7782_s3 + $0x758] sm:$0xff]  ;;  %v3986_v30 = vld [vmem:[%s7782_s3 + $0x7e0] sm:$0xff]  ;;  %v4511_v62 = vpack.c.bf16 %v4011_v60, %v4007_v59 }
  0x6e   : > { %4544 = vmatprep.subr.bf16.mxu0 %v4543_v9  ;;  %v4563_v5 = vpack.c.bf16 %v3973_v2, %v3969_v0  ;;  %v3972_v9 = vld [vmem:[%s7782_s3 + $0x770] sm:$0xff]  ;;  %v4501_v32 = vpack.c.bf16 %v3986_v30, %v3982_v29 }
  0x6f   : > { %v4565_v11 = vpack.c.bf16 %v3972_v9, %v3968_v8 }
  0x70   : > { %4482 = vmatpush1.bf16.msra.mxu1 %v4481_v35 }
  0x71   : > { %4546 = vmatpush1.bf16.msra.mxu0 %v4545_v14  ;;  %4484 = vmatprep.subr.bf16.mxu1 %v4483_v42  ;;  %v3977_v14 = vld [vmem:[%s7782_s3 + $0x798] sm:$0xff]  ;;  %v3994_v42 = vld [vmem:[%s7782_s3 + $0x820] sm:$0xff] }
  0x72   : > { %4548 = vmatprep.subr.bf16.mxu0 %v4547_v22  ;;  %v4567_v19 = vpack.c.bf16 %v3981_v16, %v3977_v14  ;;  %v3980_v22 = vld [vmem:[%s7782_s3 + $0x7b0] sm:$0xff]  ;;  %v4505_v44 = vpack.c.bf16 %v3994_v42, %v3990_v41 }
  0x73   : > { %v4569_v23 = vpack.c.bf16 %v3980_v22, %v3976_v21 }
  0x74   : > { %4486 = vmatpush1.bf16.msra.mxu1 %v4485_v47  ;;  %v3999_v47 = vld [vmem:[%s7782_s3 + $0x848] sm:$0xff] }
  0x75   : > { %4550 = vmatpush1.bf16.msra.mxu0 %v4549_v26  ;;  %4488 = vmatprep.subr.bf16.mxu1 %v4487_v54  ;;  %v3985_v26 = vld [vmem:[%s7782_s3 + $0x7d8] sm:$0xff]  ;;  %v4507_v52 = vpack.c.bf16 %v4003_v49, %v3999_v47  ;;  %v3998_v54 = vld [vmem:[%s7782_s3 + $0x840] sm:$0xff] }
  0x76   : > { %4552 = vmatprep.subr.bf16.mxu0 %v4551_v34  ;;  %v4571_v31 = vpack.c.bf16 %v3989_v28, %v3985_v26  ;;  %v3988_v34 = vld [vmem:[%s7782_s3 + $0x7f0] sm:$0xff]  ;;  %v4509_v57 = vpack.c.bf16 %v4002_v55, %v3998_v54 }
  0x77   : > { %v4573_v35 = vpack.c.bf16 %v3988_v34, %v3984_v33 }
  0x78   : > { %4490 = vmatpush1.bf16.msra.mxu1 %v4489_v58 }
  0x79   : > { %4554 = vmatpush1.bf16.msra.mxu0 %v4553_v38  ;;  %4492 = vmatprep.subr.bf16.mxu1 %v4491_v1  ;;  %v3993_v38 = vld [vmem:[%s7782_s3 + $0x818] sm:$0xff] }
  0x7a   : > { %4556 = vmatprep.subr.bf16.mxu0 %v4555_v46  ;;  %v4575_v43 = vpack.c.bf16 %v3997_v40, %v3993_v38  ;;  %v3996_v46 = vld [vmem:[%s7782_s3 + $0x830] sm:$0xff]  ;;  %v5273_v38 = vmov 1966171168  }
  0x7b   : > { %v4577_v48 = vpack.c.bf16 %v3996_v46, %v3992_v45 }
  0x7c   : > { %4494 = vmatpush1.bf16.msra.mxu1 %v4493_v6  ;;  %v6108_v6 = vshrl.u32 %v1263_v3, 7  ;;  %v4245_v3 = vld [vmem:[%s7784_s5 + $0x3e8] sm:$0xff] }
  0x7d   : > { %4558 = vmatpush1.bf16.msra.mxu0 %v4557_v50  ;;  %4496 = vmatprep.subr.bf16.mxu1 %v4495_v15  ;;  %v4001_v50 = vld [vmem:[%s7782_s3 + $0x858] sm:$0xff] }
  0x7e   : > { %4560 = vmatprep.subr.bf16.mxu0 %v4559_v10  ;;  %v4579_v53 = vpack.c.bf16 %v4005_v51, %v4001_v50  ;;  %v4004_v10 = vld [vmem:[%s7782_s3 + $0x870] sm:$0xff]  ;;  %v6117_v14 = vsub.s32 0, %v6108_v6  ;;  %v1281_v28 = vsub.s32 4, %v6108_v6 }
  0x7f   : > { %v4581_v58 = vpack.c.bf16 %v4004_v10, %v4000_v56 }
  0x80   : > { %4498 = vmatpush1.bf16.msra.mxu1 %v4497_v20  ;;  %v1266_v16 = vrot.slane %v1261_v12, %v6117_v14  ;;  %v1282_v42 = vrot.slane %v1261_v12, %v1281_v28 }
  0x81   : > { %4562 = vmatpush1.bf16.msra.mxu0 %v4561_v61  ;;  %4500 = vmatprep.subr.bf16.mxu1 %v4499_v27  ;;  %v4009_v61 = vld [vmem:[%s7782_s3 + $0x898] sm:$0xff] }
  0x82   : > { %4564 = vmatprep.subr.bf16.mxu0 %v4563_v5  ;;  %v4583_v0 = vpack.c.bf16 %v4013_v63, %v4009_v61 }
  0x84   : > { %4502 = vmatpush1.bf16.msra.mxu1 %v4501_v32 }
  0x85   : > { %4566 = vmatpush1.bf16.msra.mxu0 %v4565_v11  ;;  %4504 = vmatprep.subr.bf16.mxu1 %v4503_v39  ;;  %v1277_v11 = vsub.s32 3, %v6108_v6  ;;  %v1373_v39 = vunpack.c.l.s4 %v5273_v38 }
  0x86   : > { %4568 = vmatprep.subr.bf16.mxu0 %v4567_v19  ;;  %v6121_v19 = vsub.s32 1, %v6108_v6 }
  0x87   : > { %v1278_v13 = vrot.slane %v1261_v12, %v1277_v11  ;;  %v1374_v54 = vunpack.c.0.s8 %v1373_v39 }
  0x88   : > { %4506 = vmatpush1.bf16.msra.mxu1 %v4505_v44  ;;  %v1270_v26 = vrot.slane %v1261_v12, %v6121_v19 }
  0x89   : > { %4570 = vmatpush1.bf16.msra.mxu0 %v4569_v23  ;;  %4508 = vmatprep.subr.bf16.mxu1 %v4507_v52  ;;  %v1273_v23 = vsub.s32 2, %v6108_v6 }
  0x8a   : > { %4572 = vmatprep.subr.bf16.mxu0 %v4571_v31 }
  0x8b   : > { %v1274_v34 = vrot.slane %v1261_v12, %v1273_v23 }
  0x8c   : > { %4510 = vmatpush1.bf16.msra.mxu1 %v4509_v57 }
  0x8d   : > { %4574 = vmatpush1.bf16.msra.mxu0 %v4573_v35  ;;  %4512 = vmatprep.subr.bf16.mxu1 %v4511_v62  ;;  %v1285_v35 = vsub.s32 5, %v6108_v6 }
  0x8e   : > { %4576 = vmatprep.subr.bf16.mxu0 %v4575_v43 }
  0x8f   : > { %v1286_v49 = vrot.slane %v1261_v12, %v1285_v35 }
  0x91   : > { %4578 = vmatpush1.bf16.msra.mxu0 %v4577_v48 }
  0x92   : > { %4580 = vmatprep.subr.bf16.mxu0 %v4579_v53 }
  0x95   : > { %4582 = vmatpush1.bf16.msra.mxu0 %v4581_v58 }
  0x96   : > { %4584 = vmatprep.subr.bf16.mxu0 %v4583_v0 }
 0x109   : > { %v1143_v1 = vpop.f32.mrb[0].mxu1 }
 0x10a   : > { %v1145_v2 = vpop.f32.mrb[1].mxu1  ;;  %v1295_v48 = vadd.f32 %v1274_v34, %v1143_v1 }
 0x10b   : > { %v1296_v15 = vadd.f32 %v1278_v13, %v1145_v2 }
 0x10c   : > { %v1313_v61 = vmul.f32 0.01, %v1295_v48 }
 0x10d   : > { %v1149_v4 = vpop.f32.mrb[2].mxu1  ;;  %v1314_v20 = vmul.f32 0.01, %v1296_v15 }
 0x10e   : > { %v1151_v5 = vpop.f32.mrb[3].mxu1  ;;  %v1301_v50 = vadd.f32 %v1274_v34, %v1149_v4 }
 0x10f   : > { %v1302_v17 = vadd.f32 %v1278_v13, %v1151_v5  ;;  %v1332_v29 = vmax.f32 %v1296_v15, %v1314_v20  ;;  %v6133_v5 = vsub.s32 %v1374_v54, %v6108_v6  ;;  %v1331_v20 = vmax.f32 %v1295_v48, %v1313_v61 }
 0x110   : > { %v1319_v0 = vmul.f32 0.01, %v1301_v50 }
 0x111   : > { %v1155_v8 = vpop.f32.mrb[4].mxu1  ;;  %v1320_v25 = vmul.f32 0.01, %v1302_v17 }
 0x112   : > { %v1157_v9 = vpop.f32.mrb[5].mxu1  ;;  %v6129_v51 = vadd.f32 %v1274_v34, %v1155_v8 }
 0x113   : > { %v1308_v30 = vadd.f32 %v1278_v13, %v1157_v9  ;;  %v1338_v40 = vmax.f32 %v1302_v17, %v1320_v25  ;;  %v1337_v25 = vmax.f32 %v1301_v50, %v1319_v0 }
 0x114   : > { %v1325_v1 = vmul.f32 0.01, %v6129_v51 }
 0x115   : > { %v1326_v43 = vmul.f32 0.01, %v1308_v30 }
 0x117   : > { %v1344_v57 = vmax.f32 %v1308_v30, %v1326_v43 }
 0x11f   : > { %v1060_v18 = vpop.f32.mrb[0].mxu0 }
 0x120   : > { %v1293_v21 = vadd.f32 %v1266_v16, %v1060_v18  ;;  %v1062_v22 = vpop.f32.mrb[1].mxu0 }
 0x121   : > { %v1294_v44 = vadd.f32 %v1270_v26, %v1062_v22 }
 0x122   : > { %v1311_v24 = vmul.f32 0.01, %v1293_v21 }
 0x123   : > { %v1066_v27 = vpop.f32.mrb[2].mxu0  ;;  %v1312_v10 = vmul.f32 0.01, %v1294_v44 }
 0x124   : > { %v1329_v31 = vmax.f32 %v1293_v21, %v1311_v24  ;;  %v1299_v32 = vadd.f32 %v1266_v16, %v1066_v27  ;;  %v1068_v33 = vpop.f32.mrb[3].mxu0 }
 0x125   : > { %v1300_v55 = vadd.f32 %v1270_v26, %v1068_v33  ;;  %v1330_v15 = vmax.f32 %v1294_v44, %v1312_v10 }
 0x126   : > { %v1347_v36 = vmax.f32 %v1329_v31, %v1332_v29  ;;  %v1317_v37 = vmul.f32 0.01, %v1299_v32  ;;  %v1343_v29 = vmax.f32 %v6129_v51, %v1325_v1 }
 0x127   : > { %v1072_v41 = vpop.f32.mrb[4].mxu0  ;;  %v1318_v8 = vmul.f32 0.01, %v1300_v55 }
 0x128   : > { %v1335_v45 = vmax.f32 %v1299_v32, %v1317_v37  ;;  %v1305_v46 = vadd.f32 %v1266_v16, %v1072_v41  ;;  %v1074_v47 = vpop.f32.mrb[5].mxu0  ;;  %v1359_v13 = vrot.slane %v1347_v36, 1 }
 0x129   : > { %v1306_v62 = vadd.f32 %v1270_v26, %v1074_v47  ;;  %v1336_v30 = vmax.f32 %v1300_v55, %v1318_v8 }
 0x12a   : > { %v1350_v52 = vmax.f32 %v1335_v45, %v1338_v40  ;;  %v1323_v53 = vmul.f32 0.01, %v1305_v46  ;;  %v1365_v34 = vmax.f32 %v1347_v36, %v1359_v13  ;;  %v4015_v40 = vld [vmem:[%s7782_s3 + $0x8c8] sm:$0xff] }
 0x12b   : > { %v1226_v56 = vpop.f32.mrb[6].mxu0  ;;  %v1324_v21 = vmul.f32 0.01, %v1306_v62 }
 0x12c   : > { %v1341_v58 = vmax.f32 %v1305_v46, %v1323_v53  ;;  %v1297_v59 = vadd.f32 %v1282_v42, %v1226_v56  ;;  %v1228_v60 = vpop.f32.mrb[7].mxu0  ;;  %v1442_v26 = vrot.slane %v1350_v52, 1 }
 0x12d   : > { %v1298_v63 = vadd.f32 %v1286_v49, %v1228_v60  ;;  %v1342_v41 = vmax.f32 %v1306_v62, %v1324_v21 }
 0x12e   : > { %v1353_v2 = vmax.f32 %v1341_v58, %v1344_v57  ;;  %v1315_v4 = vmul.f32 0.01, %v1297_v59  ;;  %v1448_v46 = vmax.f32 %v1350_v52, %v1442_v26 }
 0x12f   : > { %v1316_v9 = vmul.f32 0.01, %v1298_v63  ;;  %v1232_v12 = vpop.f32.mrb[8].mxu0 }
 0x130   : > { %v1333_v16 = vmax.f32 %v1297_v59, %v1315_v4  ;;  %v1303_v17 = vadd.f32 %v1282_v42, %v1232_v12  ;;  %v1234_v18 = vpop.f32.mrb[9].mxu0  ;;  %v1522_v51 = vrot.slane %v1353_v2, 1 }
 0x131   : > { %v1334_v22 = vmax.f32 %v1298_v63, %v1316_v9  ;;  %v1304_v24 = vadd.f32 %v1286_v49, %v1234_v18 }
 0x132   : > { %v1348_v27 = vmax.f32 %v1330_v15, %v1333_v16  ;;  %v1321_v28 = vmul.f32 0.01, %v1303_v17  ;;  %v1528_v63 = vmax.f32 %v1353_v2, %v1522_v51 }
 0x133   : > { %v1349_v31 = vmax.f32 %v1331_v20, %v1334_v22  ;;  %v1322_v32 = vmul.f32 0.01, %v1304_v24  ;;  %v1238_v33 = vpop.f32.mrb[10].mxu0 }
 0x134   : > { %v1360_v35 = vrot.slane %v1348_v27, 1  ;;  %v1339_v37 = vmax.f32 %v1303_v17, %v1321_v28  ;;  %v1309_v38 = vadd.f32 %v1282_v42, %v1238_v33  ;;  %v1240_v39 = vpop.f32.mrb[11].mxu0 }
 0x135   : > { %v1361_v43 = vrot.slane %v1349_v31, 1  ;;  %v1340_v44 = vmax.f32 %v1304_v24, %v1322_v32  ;;  %v1310_v45 = vadd.f32 %v1286_v49, %v1240_v39 }
 0x136   : > { %v1366_v47 = vmax.f32 %v1348_v27, %v1360_v35  ;;  %v1351_v48 = vmax.f32 %v1336_v30, %v1339_v37  ;;  %v1327_v50 = vmul.f32 0.01, %v1309_v38 }
 0x137   : > { %v1367_v53 = vmax.f32 %v1349_v31, %v1361_v43  ;;  %v1352_v36 = vmax.f32 %v1337_v25, %v1340_v44  ;;  %v1328_v54 = vmul.f32 0.01, %v1310_v45 }
 0x138   : > { %v1371_v55 = vcombine.low %v1365_v34, %v1366_v47  ;;  %v1406_v42 = vcombine.high %v1365_v34, %v1366_v47  ;;  %v1443_v56 = vrot.slane %v1351_v48, 1  ;;  %v1345_v57 = vmax.f32 %v1309_v38, %v1327_v50 }
 0x139   : > { %v1385_v10 = vrot.slane %v1367_v53, %v6133_v5  ;;  %v1407_v58 = vcombine.high %v1367_v53, %v1367_v53  ;;  %v1444_v59 = vrot.slane %v1352_v36, 1  ;;  %v1346_v60 = vmax.f32 %v1310_v45, %v1328_v54  ;;  %v4006_v53 = vld [vmem:[%s7782_s3 + $0x880] sm:$0xff] }
 0x13a   : > { %v1378_v61 = vrot.slane %v1371_v55, %v6133_v5  ;;  %v1414_v49 = vrot.slane %v1406_v42, %v6133_v5  ;;  %v1449_v52 = vmax.f32 %v1351_v48, %v1443_v56  ;;  %v1354_v62 = vmax.f32 %v1342_v41, %v1345_v57  ;;  %v4010_v55 = vld [vmem:[%s7782_s3 + $0x8a0] sm:$0xff]  ;;  %v4008_v42 = vld [vmem:[%s7782_s3 + $0x890] sm:$0xff] }
 0x13b   : > { %v1421_v0 = vrot.slane %v1407_v58, %v6133_v5  ;;  %v1450_v1 = vmax.f32 %v1352_v36, %v1444_v59  ;;  %v1355_v4 = vmax.f32 %v1343_v29, %v1346_v60  ;;  %v4012_v56 = vld [vmem:[%s7782_s3 + $0x8b0] sm:$0xff]  ;;  %v4019_v58 = vld [vmem:[%s7782_s3 + $0x8e8] sm:$0xff] }
 0x13c   : > { %v1386_v8 = vcombine.low %v1378_v61, %v1385_v10  ;;  %v1454_v9 = vcombine.low %v1448_v46, %v1449_v52  ;;  %v1486_v12 = vcombine.high %v1448_v46, %v1449_v52  ;;  %v1523_v13 = vrot.slane %v1354_v62, 1  ;;  %v4017_v52 = vld [vmem:[%s7782_s3 + $0x8d8] sm:$0xff] }
 0x13d   : > { %v1422_v15 = vcombine.low %v1414_v49, %v1421_v0  ;;  %v1468_v16 = vrot.slane %v1450_v1, %v6133_v5  ;;  %v1487_v17 = vcombine.high %v1450_v1, %v1450_v1  ;;  %v1524_v18 = vrot.slane %v1355_v4, 1  ;;  %v4014_v1 = vld [vmem:[%s7782_s3 + $0x8c0] sm:$0xff] }
 0x13e   : > { %v1393_v20 = vrot.slane %v1386_v8, %v6133_v5  ;;  %v1461_v21 = vrot.slane %v1454_v9, %v6133_v5  ;;  %v1494_v22 = vrot.slane %v1486_v12, %v6133_v5  ;;  %v1529_v2 = vmax.f32 %v1354_v62, %v1523_v13  ;;  %v4021_v62 = vld [vmem:[%s7782_s3 + $0x8f8] sm:$0xff]  ;;  %v4018_v9 = vld [vmem:[%s7782_s3 + $0x8e0] sm:$0xff]  ;;  %v4016_v12 = vld [vmem:[%s7782_s3 + $0x8d0] sm:$0xff] }
 0x13f   : > { %v1429_v24 = vrot.slane %v1422_v15, %v6133_v5  ;;  %v1501_v25 = vrot.slane %v1487_v17, %v6133_v5  ;;  %v1530_v26 = vmax.f32 %v1355_v4, %v1524_v18  ;;  %v4585_v0 = vpack.c.bf16 %v4012_v56, %v4008_v42  ;;  %v4020_v13 = vld [vmem:[%s7782_s3 + $0x8f0] sm:$0xff]  ;;  %v1606_v17 = vld [vmem:[%s7782_s3 + $0x8] sm:$0xff]  ;;  %v1621_v56 = vld [vmem:[%s7782_s3 + $0x80] sm:$0xff] }
 0x140   : > { %1399 = vst.msk [vmem:[#allocation2] ss:$8 sm:$0x7] %vm6137_vm4, %v1393_v20  ;;  %v1401_v27 = vcombine.high %v1393_v20, %v1393_v20  ;;  %v1469_v28 = vcombine.low %v1461_v21, %v1468_v16  ;;  %v1534_v29 = vcombine.low %v1528_v63, %v1529_v2  ;;  %v1566_v30 = vcombine.high %v1528_v63, %v1529_v2  ;;  %v1610_v18 = vld [vmem:[%s7782_s3 + $0x28] sm:$0xff]  ;;  %v1608_v21 = vld [vmem:[%s7782_s3 + $0x18] sm:$0xff] }
 0x141   : > { %1432 = vst.msk [vmem:[#allocation2 + $0x2] ss:$8 sm:$0x7] %vm6137_vm4, %v1429_v24  ;;  %v1434_v31 = vcombine.high %v1429_v24, %v1429_v24  ;;  %v1502_v32 = vcombine.low %v1494_v22, %v1501_v25  ;;  %v1548_v33 = vrot.slane %v1530_v26, %v6133_v5  ;;  %v1567_v34 = vcombine.high %v1530_v26, %v1530_v26  ;;  %v1612_v22 = vld [vmem:[%s7782_s3 + $0x38] sm:$0xff]  ;;  %v1605_v25 = vld [vmem:[%s7782_s3] sm:$0xff] }
 0x142   : > { %1404 = vst.msk [vmem:[#allocation2 + $0x1] ss:$8 sm:$0x7] %vm6137_vm4, %v1401_v27  ;;  %v1476_v35 = vrot.slane %v1469_v28, %v6133_v5  ;;  %v1541_v37 = vrot.slane %v1534_v29, %v6133_v5  ;;  %v1574_v38 = vrot.slane %v1566_v30, %v6133_v5  ;;  %v4513_v63 = vpack.c.bf16 %v4010_v55, %v4006_v53  ;;  %v1609_v26 = vld [vmem:[%s7782_s3 + $0x20] sm:$0xff]  ;;  %v1607_v28 = vld [vmem:[%s7782_s3 + $0x10] sm:$0xff]  ;;  %v1626_v53 = vld [vmem:[%s7782_s3 + $0xa8] sm:$0xff] }
 0x143   : > { %1437 = vst.msk [vmem:[#allocation2 + $0x3] ss:$8 sm:$0x7] %vm6137_vm4, %v1434_v31  ;;  %v1509_v39 = vrot.slane %v1502_v32, %v6133_v5  ;;  %v1581_v41 = vrot.slane %v1567_v34, %v6133_v5  ;;  %v4515_v15 = vpack.c.bf16 %v4019_v58, %v4015_v40  ;;  %v4587_v16 = vpack.c.bf16 %v4021_v62, %v4017_v52  ;;  %v1611_v29 = vld [vmem:[%s7782_s3 + $0x30] sm:$0xff]  ;;  %v1618_v34 = vld [vmem:[%s7782_s3 + $0x68] sm:$0xff]  ;;  %v1625_v40 = vld [vmem:[%s7782_s3 + $0xa0] sm:$0xff] }
 0x144   : > { %1479 = vst.msk [vmem:[#allocation2 + $0x4] ss:$8 sm:$0x7] %vm6137_vm4, %v1476_v35  ;;  %v1481_v43 = vcombine.high %v1476_v35, %v1476_v35  ;;  %v1549_v44 = vcombine.low %v1541_v37, %v1548_v33  ;;  %v4517_v2 = vpack.c.bf16 %v4018_v9, %v4014_v1  ;;  %v4589_v24 = vpack.c.bf16 %v4020_v13, %v4016_v12  ;;  %v1614_v33 = vld [vmem:[%s7782_s3 + $0x48] sm:$0xff]  ;;  %v1616_v35 = vld [vmem:[%s7782_s3 + $0x58] sm:$0xff]  ;;  %v1629_v1 = vld [vmem:[%s7782_s3 + $0xc0] sm:$0xff] }
 0x145   : > { %1512 = vst.msk [vmem:[#allocation2 + $0x6] ss:$8 sm:$0x7] %vm6137_vm4, %v1509_v39  ;;  %v1514_v45 = vcombine.high %v1509_v39, %v1509_v39  ;;  %v1582_v46 = vcombine.low %v1574_v38, %v1581_v41  ;;  %v4591_v31 = vpack.c.bf16 %v1610_v18, %v1606_v17  ;;  %v4663_v32 = vpack.c.bf16 %v1612_v22, %v1608_v21  ;;  %v1620_v37 = vld [vmem:[%s7782_s3 + $0x78] sm:$0xff]  ;;  %v1630_v58 = vld [vmem:[%s7782_s3 + $0xc8] sm:$0xff]  ;;  %v1631_v12 = vld [vmem:[%s7782_s3 + $0xd0] sm:$0xff] }
 0x146   : > { %1484 = vst.msk [vmem:[#allocation2 + $0x5] ss:$8 sm:$0x7] %vm6137_vm4, %v1481_v43  ;;  %v1556_v47 = vrot.slane %v1549_v44, %v6133_v5  ;;  %v4593_v39 = vpack.c.bf16 %v1609_v26, %v1605_v25  ;;  %v4665_v41 = vpack.c.bf16 %v1611_v29, %v1607_v28  ;;  %v1613_v43 = vld [vmem:[%s7782_s3 + $0x40] sm:$0xff]  ;;  %v1636_v52 = vld [vmem:[%s7782_s3 + $0xf8] sm:$0xff]  ;;  %v1635_v13 = vld [vmem:[%s7782_s3 + $0xf0] sm:$0xff] }
 0x147   : > { %1517 = vst.msk [vmem:[#allocation2 + $0x7] ss:$8 sm:$0x7] %vm6137_vm4, %v1514_v45  ;;  %v1589_v48 = vrot.slane %v1582_v46, %v6133_v5  ;;  %v1617_v44 = vld [vmem:[%s7782_s3 + $0x60] sm:$0xff]  ;;  %v1615_v45 = vld [vmem:[%s7782_s3 + $0x50] sm:$0xff]  ;;  %v1640_v17 = vld [vmem:[%s7782_s3 + $0x118] sm:$0xff]  ;;  %v4677_v21 = vpack.c.bf16 %v1635_v13, %v1631_v12 }
 0x148   : > { %1559 = vst.msk [vmem:[#allocation2 + $0x18] ss:$8 sm:$0x7] %vm6137_vm4, %v1556_v47  ;;  %v1561_v50 = vcombine.high %v1556_v47, %v1556_v47  ;;  %v1619_v46 = vld [vmem:[%s7782_s3 + $0x70] sm:$0xff]  ;;  %v4597_v55 = vpack.c.bf16 %v1617_v44, %v1613_v43  ;;  %v1644_v18 = vld [vmem:[%s7782_s3 + $0x138] sm:$0xff]  ;;  %v1637_v22 = vld [vmem:[%s7782_s3 + $0x100] sm:$0xff] }
 0x149   : > { %1592 = vst.msk [vmem:[#allocation2 + $0x1a] ss:$8 sm:$0x7] %vm6137_vm4, %v1589_v48  ;;  %v1594_v51 = vcombine.high %v1589_v48, %v1589_v48  ;;  %v4595_v48 = vpack.c.bf16 %v1618_v34, %v1614_v33  ;;  %v4669_v42 = vpack.c.bf16 %v1619_v46, %v1615_v45  ;;  %v4679_v25 = vpack.c.bf16 %v1644_v18, %v1640_v17  ;;  %v1639_v26 = vld [vmem:[%s7782_s3 + $0x110] sm:$0xff]  ;;  %v1646_v28 = vld [vmem:[%s7782_s3 + $0x148] sm:$0xff]  ;;  %v1645_v34 = vld [vmem:[%s7782_s3 + $0x140] sm:$0xff] }
 0x14a   : > { %1564 = vst.msk [vmem:[#allocation2 + $0x19] ss:$8 sm:$0x7] %vm6137_vm4, %v1561_v50  ;;  %v4667_v50 = vpack.c.bf16 %v1620_v37, %v1616_v35  ;;  %v1650_v29 = vld [vmem:[%s7782_s3 + $0x168] sm:$0xff]  ;;  %v1649_v35 = vld [vmem:[%s7782_s3 + $0x160] sm:$0xff]  ;;  %v1656_v45 = vld [vmem:[%s7782_s3 + $0x198] sm:$0xff] }
 0x14b   : > { %1597 = vst.msk [vmem:[#allocation2 + $0x1b] ss:$8 sm:$0x7] %vm6137_vm4, %v1594_v51  ;;  %v1622_v51 = vld [vmem:[%s7782_s3 + $0x88] sm:$0xff]  ;;  %v4611_v37 = vpack.c.bf16 %v1650_v29, %v1646_v28  ;;  %v1660_v46 = vld [vmem:[%s7782_s3 + $0x1b8] sm:$0xff]  ;;  %v1669_v12 = vld [vmem:[%s7782_s3 + $0x200] sm:$0xff] }
 0x14c   : > { %v1654_v43 = vld [vmem:[%s7782_s3 + $0x188] sm:$0xff]  ;;  %v1673_v13 = vld [vmem:[%s7782_s3 + $0x220] sm:$0xff]  ;;  %v1671_v17 = vld [vmem:[%s7782_s3 + $0x210] sm:$0xff] }
 0x14d   : > { %v1658_v44 = vld [vmem:[%s7782_s3 + $0x1a8] sm:$0xff]  ;;  %v1675_v18 = vld [vmem:[%s7782_s3 + $0x230] sm:$0xff] }
 0x14e   : > { %v1750_v36 = vld [vmem:[#allocation2 + $0x8] sm:$0xfe]  ;;  %v1749_v54 = vld [vmem:[#allocation2] sm:$0xfe]  ;;  %v1751_v27 = vld [vmem:[#allocation2 + $0x10] sm:$0xfe] }
 0x14f   : > { %v1910_v59 = vrot.slane %v1750_v36, 1  ;;  %v1907_v61 = vrot.slane %v1749_v54, 1  ;;  %v1913_v38 = vrot.slane %v1751_v27, 1  ;;  %v1624_v36 = vld [vmem:[%s7782_s3 + $0x98] sm:$0xff]  ;;  %v1600_v62 = vld [vmem:[#allocation2 + $0x8] sm:$0xff]  ;;  %v1643_v27 = vld [vmem:[%s7782_s3 + $0x130] sm:$0xff] }
 0x150   : > { %v1628_v54 = vld [vmem:[%s7782_s3 + $0xb8] sm:$0xff]  ;;  %v4681_v33 = vpack.c.bf16 %v1643_v27, %v1639_v26  ;;  %v1677_v26 = vld [vmem:[%s7782_s3 + $0x240] sm:$0xff] }
 0x151   : > { %v1753_v57 = vld [vmem:[#allocation2 + $0x20] sm:$0x7]  ;;  %v1752_v10 = vld [vmem:[#allocation2 + $0x18] sm:$0x7]  ;;  %v1754_v20 = vld [vmem:[#allocation2 + $0x28] sm:$0x7] }
 0x152   : > { %v1911_v60 = vrot.slane %v1753_v57, 1  ;;  %v1908_v49 = vrot.slane %v1752_v10, 1  ;;  %v1914_v30 = vrot.slane %v1754_v20, 1  ;;  %v1623_v57 = vld [vmem:[%s7782_s3 + $0x90] sm:$0xff]  ;;  %v1681_v27 = vld [vmem:[%s7782_s3 + $0x260] sm:$0xff] }
 0x153   : > { %v1627_v10 = vld [vmem:[%s7782_s3 + $0xb0] sm:$0xff] }
 0x154   : > { %v1912_v4 = vsel %vm1906_vm5, %v1910_v59, %v1911_v60  ;;  %v1909_v8 = vsel %vm1906_vm5, %v1907_v61, %v1908_v49  ;;  %v1915_v47 = vsel %vm1906_vm5, %v1913_v38, %v1914_v30  ;;  %v4599_v59 = vpack.c.bf16 %v1626_v53, %v1622_v51  ;;  %v1634_v61 = vld [vmem:[%s7782_s3 + $0xe8] sm:$0xff]  ;;  %v1657_v51 = vld [vmem:[%s7782_s3 + $0x1a0] sm:$0xff] }
 0x155   : > { %1989 = vmatprep.mubr.f32.mxu1 %v1912_v4  ;;  %2143 = vmatprep.mubr.f32.mxu0 %v1912_v4  ;;  %v1633_v4 = vld [vmem:[%s7782_s3 + $0xe0] sm:$0xff]  ;;  %v4615_v53 = vpack.c.bf16 %v1658_v44, %v1654_v43 }
 0x156   : > { %1990 = vmatmul.mubr.f32.vlgmr.msra.gmra.mrb[6].mxu1 %v1909_v8  ;;  %2144 = vmatmul.mubr.f32.vlgmr.msra.gmra.mrb[12].mxu0 %v1909_v8  ;;  %v4603_v8 = vpack.c.bf16 %v1634_v61, %v1630_v58  ;;  %v4605_v20 = vpack.c.bf16 %v1633_v4, %v1629_v1  ;;  %v1672_v1 = vld [vmem:[%s7782_s3 + $0x218] sm:$0xff] }
 0x157   : > { %4514 = vmatpush1.bf16.msra.mxu1 %v4513_v63  ;;  %4586 = vmatpush1.bf16.msra.mxu0 %v4585_v0  ;;  %v4601_v63 = vpack.c.bf16 %v1625_v40, %v1621_v56  ;;  %v4673_v0 = vpack.c.bf16 %v1627_v10, %v1623_v57  ;;  %v1666_v56 = vld [vmem:[%s7782_s3 + $0x1e8] sm:$0xff]  ;;  %v1664_v40 = vld [vmem:[%s7782_s3 + $0x1d8] sm:$0xff] }
 0x158   : > { %1995 = vmatprep.mubr.f32.mxu1 %v1911_v60  ;;  %2149 = vmatprep.mubr.f32.mxu0 %v1911_v60  ;;  %v4671_v60 = vpack.c.bf16 %v1628_v54, %v1624_v36  ;;  %v4687_v36 = vpack.c.bf16 %v1660_v46, %v1656_v45  ;;  %v1655_v54 = vld [vmem:[%s7782_s3 + $0x190] sm:$0xff]  ;;  %v1668_v57 = vld [vmem:[%s7782_s3 + $0x1f8] sm:$0xff] }
 0x159   : > { %4516 = vmatprep.subr.bf16.mxu1 %v4515_v15  ;;  %4588 = vmatprep.subr.bf16.mxu0 %v4587_v16  ;;  %v1638_v15 = vld [vmem:[%s7782_s3 + $0x108] sm:$0xff]  ;;  %v1676_v4 = vld [vmem:[%s7782_s3 + $0x238] sm:$0xff]  ;;  %v1687_v45 = vld [vmem:[%s7782_s3 + $0x290] sm:$0xff] }
 0x15a   : > { %1996 = vmatmul.mubr.f32.gmra.mrb[8].mxu1 %v1908_v49  ;;  %2150 = vmatmul.mubr.f32.gmra.mrb[14].mxu0 %v1908_v49  ;;  %v1632_v49 = vld [vmem:[%s7782_s3 + $0xd8] sm:$0xff]  ;;  %v1642_v16 = vld [vmem:[%s7782_s3 + $0x128] sm:$0xff]  ;;  %v1691_v46 = vld [vmem:[%s7782_s3 + $0x2b0] sm:$0xff] }
 0x15b   : > { %4518 = vmatpush1.bf16.msra.mxu1 %v4517_v2  ;;  %4590 = vmatpush1.bf16.msra.mxu0 %v4589_v24  ;;  %v4675_v9 = vpack.c.bf16 %v1636_v52, %v1632_v49  ;;  %v1641_v2 = vld [vmem:[%s7782_s3 + $0x120] sm:$0xff]  ;;  %v4607_v24 = vpack.c.bf16 %v1642_v16, %v1638_v15  ;;  %v4691_v49 = vpack.c.bf16 %v1668_v57, %v1664_v40  ;;  %v1663_v52 = vld [vmem:[%s7782_s3 + $0x1d0] sm:$0xff] }
 0x15c   : > { %2066 = vmatprep.mubr.f32.mxu1 %v5271_v7  ;;  %2220 = vmatprep.mubr.f32.mxu0 %v5271_v7  ;;  %v4695_v16 = vpack.c.bf16 %v1676_v4, %v1672_v1  ;;  %v1695_v40 = vld [vmem:[%s7782_s3 + $0x2d0] sm:$0xff] }
 0x15d   : > { %4592 = vmatprep.subr.bf16.mxu1 %v4591_v31  ;;  %4664 = vmatprep.subr.bf16.mxu0 %v4663_v32  ;;  %v1652_v31 = vld [vmem:[%s7782_s3 + $0x178] sm:$0xff]  ;;  %v4609_v32 = vpack.c.bf16 %v1641_v2, %v1637_v22  ;;  %v1699_v57 = vld [vmem:[%s7782_s3 + $0x2f0] sm:$0xff] }
 0x15e   : > { %4022 = vmatmul.mubr.msk.f32.vlgmr.msra.gmra.mrb[6].mxu1 %vm1920_vm6, %v1915_v47  ;;  %4024 = vmatmul.mubr.msk.f32.vlgmr.msra.gmra.mrb[12].mxu0 %vm1920_vm6, %v1915_v47  ;;  %v4613_v47 = vpack.c.bf16 %v1649_v35, %v1645_v34  ;;  %v1680_v22 = vld [vmem:[%s7782_s3 + $0x258] sm:$0xff]  ;;  %v1703_v1 = vld [vmem:[%s7782_s3 + $0x310] sm:$0xff] }
 0x15f   : > { %4594 = vmatpush1.bf16.msra.mxu1 %v4593_v39  ;;  %4666 = vmatpush1.bf16.msra.mxu0 %v4665_v41  ;;  %v1647_v39 = vld [vmem:[%s7782_s3 + $0x150] sm:$0xff]  ;;  %v1684_v2 = vld [vmem:[%s7782_s3 + $0x278] sm:$0xff] }
 0x160   : > { %2072 = vmatprep.mubr.f32.mxu1 %v5271_v7  ;;  %2226 = vmatprep.mubr.f32.mxu0 %v5271_v7  ;;  %v1651_v41 = vld [vmem:[%s7782_s3 + $0x170] sm:$0xff]  ;;  %v4699_v29 = vpack.c.bf16 %v1684_v2, %v1680_v22  ;;  %v1688_v34 = vld [vmem:[%s7782_s3 + $0x298] sm:$0xff] }
 0x161   : > { %4596 = vmatprep.subr.bf16.mxu1 %v4595_v48  ;;  %4668 = vmatprep.subr.bf16.mxu0 %v4667_v50  ;;  %v4685_v48 = vpack.c.bf16 %v1651_v41, %v1647_v39  ;;  %v1653_v50 = vld [vmem:[%s7782_s3 + $0x180] sm:$0xff]  ;;  %v1692_v35 = vld [vmem:[%s7782_s3 + $0x2b8] sm:$0xff]  ;;  %v1707_v4 = vld [vmem:[%s7782_s3 + $0x330] sm:$0xff] }
 0x162   : > { %4023 = vmatmul.mubr.msk.f32.gmra.mrb[8].mxu1 %vm1920_vm6, %v1914_v30  ;;  %4025 = vmatmul.mubr.msk.f32.gmra.mrb[14].mxu0 %vm1920_vm6, %v1914_v30  ;;  %v1648_v30 = vld [vmem:[%s7782_s3 + $0x158] sm:$0xff]  ;;  %v4617_v10 = vpack.c.bf16 %v1657_v51, %v1653_v50  ;;  %v1685_v39 = vld [vmem:[%s7782_s3 + $0x280] sm:$0xff]  ;;  %v4703_v44 = vpack.c.bf16 %v1692_v35, %v1688_v34  ;;  %v1711_v22 = vld [vmem:[%s7782_s3 + $0x350] sm:$0xff] }
 0x163   : > { %4598 = vmatpush1.bf16.msra.mxu1 %v4597_v55  ;;  %4670 = vmatpush1.bf16.msra.mxu0 %v4669_v42  ;;  %v4683_v38 = vpack.c.bf16 %v1652_v31, %v1648_v30  ;;  %v1659_v55 = vld [vmem:[%s7782_s3 + $0x1b0] sm:$0xff]  ;;  %v1662_v42 = vld [vmem:[%s7782_s3 + $0x1c8] sm:$0xff]  ;;  %v1689_v41 = vld [vmem:[%s7782_s3 + $0x2a0] sm:$0xff] }
 0x164   : > { %2303 = vmatprep.mubr.f32.mxu1 %v1600_v62  ;;  %2457 = vmatprep.mubr.f32.mxu0 %v1600_v62  ;;  %v4689_v58 = vpack.c.bf16 %v1659_v55, %v1655_v54  ;;  %v4619_v61 = vpack.c.bf16 %v1666_v56, %v1662_v42  ;;  %v1667_v62 = vld [vmem:[%s7782_s3 + $0x1f0] sm:$0xff]  ;;  %v1696_v50 = vld [vmem:[%s7782_s3 + $0x2d8] sm:$0xff]  ;;  %v1693_v54 = vld [vmem:[%s7782_s3 + $0x2c0] sm:$0xff] }
 0x165   : > { %4600 = vmatprep.subr.bf16.mxu1 %v4599_v59  ;;  %4672 = vmatprep.subr.bf16.mxu0 %v4671_v60  ;;  %v1661_v59 = vld [vmem:[%s7782_s3 + $0x1c0] sm:$0xff]  ;;  %v1679_v30 = vld [vmem:[%s7782_s3 + $0x250] sm:$0xff]  ;;  %v1700_v51 = vld [vmem:[%s7782_s3 + $0x2f8] sm:$0xff] }
 0x166   : > { %v1665_v60 = vld [vmem:[%s7782_s3 + $0x1e0] sm:$0xff]  ;;  %v1683_v31 = vld [vmem:[%s7782_s3 + $0x270] sm:$0xff]  ;;  %v4707_v56 = vpack.c.bf16 %v1700_v51, %v1696_v50 }
 0x167   : > { %4602 = vmatpush1.bf16.msra.mxu1 %v4601_v63  ;;  %4674 = vmatpush1.bf16.msra.mxu0 %v4673_v0  ;;  %v1670_v63 = vld [vmem:[%s7782_s3 + $0x208] sm:$0xff]  ;;  %v1697_v55 = vld [vmem:[%s7782_s3 + $0x2e0] sm:$0xff]  ;;  %v1715_v2 = vld [vmem:[%s7782_s3 + $0x370] sm:$0xff] }
 0x168   : > { %4604 = vmatprep.subr.bf16.mxu1 %v4603_v8  ;;  %4676 = vmatprep.subr.bf16.mxu0 %v4675_v9  ;;  %v1674_v0 = vld [vmem:[%s7782_s3 + $0x228] sm:$0xff]  ;;  %v4621_v8 = vpack.c.bf16 %v1665_v60, %v1661_v59  ;;  %v4693_v9 = vpack.c.bf16 %v1667_v62, %v1663_v52  ;;  %v1704_v59 = vld [vmem:[%s7782_s3 + $0x318] sm:$0xff]  ;;  %v1701_v52 = vld [vmem:[%s7782_s3 + $0x300] sm:$0xff] }
 0x169   : > { %v4623_v15 = vpack.c.bf16 %v1674_v0, %v1670_v63  ;;  %v1708_v60 = vld [vmem:[%s7782_s3 + $0x338] sm:$0xff]  ;;  %v1705_v62 = vld [vmem:[%s7782_s3 + $0x320] sm:$0xff]  ;;  %v1719_v34 = vld [vmem:[%s7782_s3 + $0x390] sm:$0xff] }
 0x16a   : > { %v4711_v0 = vpack.c.bf16 %v1708_v60, %v1704_v59  ;;  %v1723_v35 = vld [vmem:[%s7782_s3 + $0x3b0] sm:$0xff] }
 0x16b   : > { %4606 = vmatpush1.bf16.msra.mxu1 %v4605_v20  ;;  %4678 = vmatpush1.bf16.msra.mxu0 %v4677_v21  ;;  %v1678_v20 = vld [vmem:[%s7782_s3 + $0x248] sm:$0xff]  ;;  %v1727_v50 = vld [vmem:[%s7782_s3 + $0x3d0] sm:$0xff] }
 0x16c   : > { %4608 = vmatprep.subr.bf16.mxu1 %v4607_v24  ;;  %4680 = vmatprep.subr.bf16.mxu0 %v4679_v25  ;;  %v1682_v21 = vld [vmem:[%s7782_s3 + $0x268] sm:$0xff]  ;;  %v4625_v24 = vpack.c.bf16 %v1673_v13, %v1669_v12  ;;  %v4697_v25 = vpack.c.bf16 %v1675_v18, %v1671_v17  ;;  %v1712_v12 = vld [vmem:[%s7782_s3 + $0x358] sm:$0xff]  ;;  %v1709_v17 = vld [vmem:[%s7782_s3 + $0x340] sm:$0xff] }
 0x16d   : > { %v4627_v28 = vpack.c.bf16 %v1682_v21, %v1678_v20  ;;  %v1716_v13 = vld [vmem:[%s7782_s3 + $0x378] sm:$0xff]  ;;  %v1713_v18 = vld [vmem:[%s7782_s3 + $0x360] sm:$0xff]  ;;  %v1731_v51 = vld [vmem:[%s7782_s3 + $0x3f0] sm:$0xff] }
 0x16e   : > { %v4715_v21 = vpack.c.bf16 %v1716_v13, %v1712_v12  ;;  %v1735_v59 = vld [vmem:[%s7782_s3 + $0x410] sm:$0xff]  ;;  %v1599_v12 = vld [vmem:[#allocation2] sm:$0xff] }
 0x16f   : > { %4610 = vmatpush1.bf16.msra.mxu1 %v4609_v32  ;;  %4682 = vmatpush1.bf16.msra.mxu0 %v4681_v33  ;;  %v1686_v32 = vld [vmem:[%s7782_s3 + $0x288] sm:$0xff]  ;;  %v1739_v60 = vld [vmem:[%s7782_s3 + $0x430] sm:$0xff] }
 0x170   : > { %4612 = vmatprep.subr.bf16.mxu1 %v4611_v37  ;;  %4684 = vmatprep.subr.bf16.mxu0 %v4683_v38  ;;  %v1690_v33 = vld [vmem:[%s7782_s3 + $0x2a8] sm:$0xff]  ;;  %v4629_v37 = vpack.c.bf16 %v1681_v27, %v1677_v26  ;;  %v4701_v38 = vpack.c.bf16 %v1683_v31, %v1679_v30  ;;  %v1720_v26 = vld [vmem:[%s7782_s3 + $0x398] sm:$0xff]  ;;  %v1717_v30 = vld [vmem:[%s7782_s3 + $0x380] sm:$0xff] }
 0x171   : > { %v4631_v43 = vpack.c.bf16 %v1690_v33, %v1686_v32  ;;  %v1724_v27 = vld [vmem:[%s7782_s3 + $0x3b8] sm:$0xff]  ;;  %v1721_v31 = vld [vmem:[%s7782_s3 + $0x3a0] sm:$0xff] }
 0x172   : > { %v4719_v33 = vpack.c.bf16 %v1724_v27, %v1720_v26  ;;  %v1602_v26 = vld [vmem:[#allocation2 + $0x18] sm:$0x3] }
 0x173   : > { %4614 = vmatpush1.bf16.msra.mxu1 %v4613_v47  ;;  %4686 = vmatpush1.bf16.msra.mxu0 %v4685_v48  ;;  %v1694_v47 = vld [vmem:[%s7782_s3 + $0x2c8] sm:$0xff] }
 0x174   : > { %4616 = vmatprep.subr.bf16.mxu1 %v4615_v53  ;;  %4688 = vmatprep.subr.bf16.mxu0 %v4687_v36  ;;  %v1698_v48 = vld [vmem:[%s7782_s3 + $0x2e8] sm:$0xff]  ;;  %v4633_v53 = vpack.c.bf16 %v1689_v41, %v1685_v39  ;;  %v4705_v36 = vpack.c.bf16 %v1691_v46, %v1687_v45  ;;  %v1728_v39 = vld [vmem:[%s7782_s3 + $0x3d8] sm:$0xff]  ;;  %v1725_v45 = vld [vmem:[%s7782_s3 + $0x3c0] sm:$0xff] }
 0x175   : > { %v4635_v42 = vpack.c.bf16 %v1698_v48, %v1694_v47  ;;  %v1732_v41 = vld [vmem:[%s7782_s3 + $0x3f8] sm:$0xff]  ;;  %v1729_v46 = vld [vmem:[%s7782_s3 + $0x3e0] sm:$0xff] }
 0x176   : > { %v4723_v48 = vpack.c.bf16 %v1732_v41, %v1728_v39  ;;  %v4042_v39 = vld [vmem:[%s7782_s3 + $0x960] sm:$0xff] }
 0x177   : > { %4618 = vmatpush1.bf16.msra.mxu1 %v4617_v10  ;;  %4690 = vmatpush1.bf16.msra.mxu0 %v4689_v58  ;;  %v1702_v10 = vld [vmem:[%s7782_s3 + $0x308] sm:$0xff]  ;;  %v2551_v41 = vld [vmem:[#allocation2 + $0x20] sm:$0xf] }
 0x178   : > { %4620 = vmatprep.subr.bf16.mxu1 %v4619_v61  ;;  %4692 = vmatprep.subr.bf16.mxu0 %v4691_v49  ;;  %v1706_v58 = vld [vmem:[%s7782_s3 + $0x328] sm:$0xff]  ;;  %v4637_v61 = vpack.c.bf16 %v1697_v55, %v1693_v54  ;;  %v4709_v49 = vpack.c.bf16 %v1699_v57, %v1695_v40  ;;  %v1736_v54 = vld [vmem:[%s7782_s3 + $0x418] sm:$0xff] }
 0x179   : > { %v4639_v63 = vpack.c.bf16 %v1706_v58, %v1702_v10  ;;  %v1740_v55 = vld [vmem:[%s7782_s3 + $0x438] sm:$0xff]  ;;  %v1733_v10 = vld [vmem:[%s7782_s3 + $0x400] sm:$0xff] }
 0x17a   : > { %v4727_v57 = vpack.c.bf16 %v1740_v55, %v1736_v54  ;;  %v1737_v58 = vld [vmem:[%s7782_s3 + $0x420] sm:$0xff]  ;;  %v4049_v54 = vld [vmem:[%s7782_s3 + $0x998] sm:$0xff] }
 0x17b   : > { %4622 = vmatpush1.bf16.msra.mxu1 %v4621_v8  ;;  %4694 = vmatpush1.bf16.msra.mxu0 %v4693_v9  ;;  %v1710_v8 = vld [vmem:[%s7782_s3 + $0x348] sm:$0xff]  ;;  %v4053_v55 = vld [vmem:[%s7782_s3 + $0x9b8] sm:$0xff] }
 0x17c   : > { %4624 = vmatprep.subr.bf16.mxu1 %v4623_v15  ;;  %4696 = vmatprep.subr.bf16.mxu0 %v4695_v16  ;;  %v1714_v9 = vld [vmem:[%s7782_s3 + $0x368] sm:$0xff]  ;;  %v4641_v15 = vpack.c.bf16 %v1705_v62, %v1701_v52  ;;  %v4713_v16 = vpack.c.bf16 %v1707_v4, %v1703_v1  ;;  %v1744_v52 = vld [vmem:[%s7782_s3 + $0x458] sm:$0xff]  ;;  %v4729_v1 = vpack.c.bf16 %v1739_v60, %v1735_v59  ;;  %v1745_v4 = vld [vmem:[%s7782_s3 + $0x460] sm:$0xff] }
 0x17d   : > { %v4643_v20 = vpack.c.bf16 %v1714_v9, %v1710_v8  ;;  %v1748_v62 = vld [vmem:[%s7782_s3 + $0x478] sm:$0xff]  ;;  %v1743_v8 = vld [vmem:[%s7782_s3 + $0x450] sm:$0xff] }
 0x17e   : > { %v1747_v9 = vld [vmem:[%s7782_s3 + $0x470] sm:$0xff] }
 0x17f   : > { %4626 = vmatpush1.bf16.msra.mxu1 %v4625_v24  ;;  %4698 = vmatpush1.bf16.msra.mxu0 %v4697_v25  ;;  %v1718_v24 = vld [vmem:[%s7782_s3 + $0x388] sm:$0xff] }
 0x180   : > { %4628 = vmatprep.subr.bf16.mxu1 %v4627_v28  ;;  %4700 = vmatprep.subr.bf16.mxu0 %v4699_v29  ;;  %v1722_v25 = vld [vmem:[%s7782_s3 + $0x3a8] sm:$0xff]  ;;  %v4645_v28 = vpack.c.bf16 %v1713_v18, %v1709_v17  ;;  %v4717_v29 = vpack.c.bf16 %v1715_v2, %v1711_v22  ;;  %v1603_v18 = vld [vmem:[#allocation2 + $0x20] sm:$0x3]  ;;  %v4733_v2 = vpack.c.bf16 %v1747_v9, %v1743_v8 }
 0x181   : > { %v4647_v32 = vpack.c.bf16 %v1722_v25, %v1718_v24  ;;  %v4035_v17 = vld [vmem:[%s7782_s3 + $0x928] sm:$0xff]  ;;  %v4030_v24 = vld [vmem:[%s7782_s3 + $0x900] sm:$0xff] }
 0x182   : > { %v4034_v25 = vld [vmem:[%s7782_s3 + $0x920] sm:$0xff] }
 0x183   : > { %4630 = vmatpush1.bf16.msra.mxu1 %v4629_v37  ;;  %4702 = vmatpush1.bf16.msra.mxu0 %v4701_v38  ;;  %v1726_v37 = vld [vmem:[%s7782_s3 + $0x3c8] sm:$0xff]  ;;  %v4054_v9 = vld [vmem:[%s7782_s3 + $0x9c0] sm:$0xff] }
 0x184   : > { %4632 = vmatprep.subr.bf16.mxu1 %v4631_v43  ;;  %4704 = vmatprep.subr.bf16.mxu0 %v4703_v44  ;;  %v1730_v38 = vld [vmem:[%s7782_s3 + $0x3e8] sm:$0xff]  ;;  %v4649_v43 = vpack.c.bf16 %v1721_v31, %v1717_v30  ;;  %v4721_v44 = vpack.c.bf16 %v1723_v35, %v1719_v34  ;;  %v4036_v30 = vld [vmem:[%s7782_s3 + $0x930] sm:$0xff]  ;;  %v4041_v34 = vld [vmem:[%s7782_s3 + $0x958] sm:$0xff] }
 0x185   : > { %v4651_v47 = vpack.c.bf16 %v1730_v38, %v1726_v37  ;;  %v4039_v31 = vld [vmem:[%s7782_s3 + $0x948] sm:$0xff]  ;;  %v4045_v35 = vld [vmem:[%s7782_s3 + $0x978] sm:$0xff]  ;;  %v4038_v38 = vld [vmem:[%s7782_s3 + $0x940] sm:$0xff] }
 0x187   : > { %4634 = vmatpush1.bf16.msra.mxu1 %v4633_v53  ;;  %4706 = vmatpush1.bf16.msra.mxu0 %v4705_v36  ;;  %v1734_v53 = vld [vmem:[%s7782_s3 + $0x408] sm:$0xff] }
 0x188   : > { %4636 = vmatprep.subr.bf16.mxu1 %v4635_v42  ;;  %4708 = vmatprep.subr.bf16.mxu0 %v4707_v56  ;;  %v1738_v36 = vld [vmem:[%s7782_s3 + $0x428] sm:$0xff]  ;;  %v4653_v42 = vpack.c.bf16 %v1729_v46, %v1725_v45  ;;  %v4725_v56 = vpack.c.bf16 %v1731_v51, %v1727_v50  ;;  %v4040_v45 = vld [vmem:[%s7782_s3 + $0x950] sm:$0xff] }
 0x189   : > { %v4655_v40 = vpack.c.bf16 %v1738_v36, %v1734_v53  ;;  %v4044_v46 = vld [vmem:[%s7782_s3 + $0x970] sm:$0xff]  ;;  %v4047_v50 = vld [vmem:[%s7782_s3 + $0x988] sm:$0xff]  ;;  %v4741_v53 = vpack.c.bf16 %v4042_v39, %v4038_v38  ;;  %v6720_v36 = vrot.slane %v2551_v41, 2  ;;  %v4070_v38 = vld [vmem:[%s7782_s3 + $0xa40] sm:$0xff] }
 0x18a   : > { %v4051_v51 = vld [vmem:[%s7782_s3 + $0x9a8] sm:$0xff]  ;;  %v4074_v39 = vld [vmem:[%s7782_s3 + $0xa60] sm:$0xff]  ;;  %v4072_v41 = vld [vmem:[%s7782_s3 + $0xa50] sm:$0xff] }
 0x18b   : > { %4638 = vmatpush1.bf16.msra.mxu1 %v4637_v61  ;;  %4710 = vmatpush1.bf16.msra.mxu0 %v4709_v49  ;;  %v1742_v61 = vld [vmem:[%s7782_s3 + $0x448] sm:$0xff]  ;;  %v4743_v60 = vpack.c.bf16 %v4051_v51, %v4047_v50  ;;  %v4757_v50 = vpack.c.bf16 %v4074_v39, %v4070_v38  ;;  %v4113_v38 = vld [vmem:[%s7782_s3 + $0xb98] sm:$0xff] }
 0x18c   : > { %4640 = vmatprep.subr.bf16.mxu1 %v4639_v63  ;;  %4712 = vmatprep.subr.bf16.mxu0 %v4711_v0  ;;  %v1746_v49 = vld [vmem:[%s7782_s3 + $0x468] sm:$0xff]  ;;  %v4657_v63 = vpack.c.bf16 %v1737_v58, %v1733_v10  ;;  %v1741_v0 = vld [vmem:[%s7782_s3 + $0x440] sm:$0xff]  ;;  %v4052_v10 = vld [vmem:[%s7782_s3 + $0x9b0] sm:$0xff] }
 0x18d   : > { %v4659_v13 = vpack.c.bf16 %v1746_v49, %v1742_v61  ;;  %v4661_v22 = vpack.c.bf16 %v1745_v4, %v1741_v0  ;;  %v1604_v58 = vld [vmem:[#allocation2 + $0x28] sm:$0x3]  ;;  %v4117_v39 = vld [vmem:[%s7782_s3 + $0xbb8] sm:$0xff] }
 0x18e   : > { %v4055_v61 = vld [vmem:[%s7782_s3 + $0x9c8] sm:$0xff] }
 0x18f   : > { %4642 = vmatpush1.bf16.msra.mxu1 %v4641_v15  ;;  %4714 = vmatpush1.bf16.msra.mxu0 %v4713_v16  ;;  %v4731_v15 = vpack.c.bf16 %v1748_v62, %v1744_v52  ;;  %v4031_v16 = vld [vmem:[%s7782_s3 + $0x908] sm:$0xff]  ;;  %v4815_v52 = vpack.c.bf16 %v4053_v55, %v4049_v54  ;;  %v4057_v62 = vld [vmem:[%s7782_s3 + $0x9d8] sm:$0xff]  ;;  %v4078_v54 = vld [vmem:[%s7782_s3 + $0xa80] sm:$0xff] }
 0x190   : > { %4644 = vmatprep.subr.bf16.mxu1 %v4643_v20  ;;  %4716 = vmatprep.subr.bf16.mxu0 %v4715_v21  ;;  %v4033_v20 = vld [vmem:[%s7782_s3 + $0x918] sm:$0xff]  ;;  %v4735_v27 = vpack.c.bf16 %v4035_v17, %v4031_v16  ;;  %v4059_v49 = vld [vmem:[%s7782_s3 + $0x9e8] sm:$0xff]  ;;  %v4060_v16 = vld [vmem:[%s7782_s3 + $0x9f0] sm:$0xff] }
 0x191   : > { %v4037_v21 = vld [vmem:[%s7782_s3 + $0x938] sm:$0xff]  ;;  %v4747_v8 = vpack.c.bf16 %v4059_v49, %v4055_v61  ;;  %v4063_v17 = vld [vmem:[%s7782_s3 + $0xa08] sm:$0xff]  ;;  %v4082_v55 = vld [vmem:[%s7782_s3 + $0xaa0] sm:$0xff] }
 0x193   : > { %4646 = vmatpush1.bf16.msra.mxu1 %v4645_v28  ;;  %4718 = vmatpush1.bf16.msra.mxu0 %v4717_v29  ;;  %v4807_v28 = vpack.c.bf16 %v4037_v21, %v4033_v20  ;;  %v4032_v29 = vld [vmem:[%s7782_s3 + $0x910] sm:$0xff]  ;;  %v4065_v20 = vld [vmem:[%s7782_s3 + $0xa18] sm:$0xff] }
 0x194   : > { %4648 = vmatprep.subr.bf16.mxu1 %v4647_v32  ;;  %4720 = vmatprep.subr.bf16.mxu0 %v4719_v33  ;;  %v4043_v32 = vld [vmem:[%s7782_s3 + $0x968] sm:$0xff]  ;;  %v4737_v33 = vpack.c.bf16 %v4034_v25, %v4030_v24  ;;  %v4809_v37 = vpack.c.bf16 %v4036_v30, %v4032_v29  ;;  %v4069_v21 = vld [vmem:[%s7782_s3 + $0xa38] sm:$0xff]  ;;  %v4062_v25 = vld [vmem:[%s7782_s3 + $0xa00] sm:$0xff] }
 0x195   : > { %v4068_v29 = vld [vmem:[%s7782_s3 + $0xa30] sm:$0xff]  ;;  %v4071_v30 = vld [vmem:[%s7782_s3 + $0xa48] sm:$0xff] }
 0x197   : > { %4650 = vmatpush1.bf16.msra.mxu1 %v4649_v43  ;;  %4722 = vmatpush1.bf16.msra.mxu0 %v4721_v44  ;;  %v1601_v43 = vld [vmem:[#allocation2 + $0x10] sm:$0xff]  ;;  %v4739_v44 = vpack.c.bf16 %v4043_v32, %v4039_v31  ;;  %v4075_v31 = vld [vmem:[%s7782_s3 + $0xa68] sm:$0xff]  ;;  %v4073_v32 = vld [vmem:[%s7782_s3 + $0xa58] sm:$0xff] }
 0x198   : > { %4652 = vmatprep.subr.bf16.mxu1 %v4651_v47  ;;  %4724 = vmatprep.subr.bf16.mxu0 %v4723_v48  ;;  %v4811_v47 = vpack.c.bf16 %v4045_v35, %v4041_v34  ;;  %v2548_v48 = vld [vmem:[#allocation2 + $0x8] sm:$0xfc] }
 0x199   : > { %v2708_v59 = vrot.slane %v2548_v48, 2  ;;  %v4085_v48 = vld [vmem:[%s7782_s3 + $0xab8] sm:$0xff] }
 0x19b   : > { %4654 = vmatpush1.bf16.msra.mxu1 %v4653_v42  ;;  %4726 = vmatpush1.bf16.msra.mxu0 %v4725_v56  ;;  %v4046_v42 = vld [vmem:[%s7782_s3 + $0x980] sm:$0xff]  ;;  %v4813_v56 = vpack.c.bf16 %v4044_v46, %v4040_v45  ;;  %v2710_v0 = vsel %vm2704_vm7, %v2708_v59, %v6720_v36  ;;  %v4079_v45 = vld [vmem:[%s7782_s3 + $0xa88] sm:$0xff]  ;;  %v4093_v59 = vld [vmem:[%s7782_s3 + $0xaf8] sm:$0xff] }
 0x19c   : > { %4656 = vmatprep.subr.bf16.mxu1 %v4655_v40  ;;  %4728 = vmatprep.subr.bf16.mxu0 %v4727_v57  ;;  %v4050_v40 = vld [vmem:[%s7782_s3 + $0x9a0] sm:$0xff]  ;;  %v4048_v57 = vld [vmem:[%s7782_s3 + $0x990] sm:$0xff]  ;;  %v4083_v46 = vld [vmem:[%s7782_s3 + $0xaa8] sm:$0xff] }
 0x19d   : > { %v4817_v4 = vpack.c.bf16 %v4052_v10, %v4048_v57  ;;  %v4087_v57 = vld [vmem:[%s7782_s3 + $0xac8] sm:$0xff] }
 0x19e   : > { %2304 = vmatmul.mubr.f32.vlgmr.msra.gmra.mrb[6].mxu1 %v1599_v12  ;;  %2458 = vmatmul.mubr.f32.vlgmr.msra.gmra.mrb[12].mxu0 %v1599_v12  ;;  %v4058_v12 = vld [vmem:[%s7782_s3 + $0x9e0] sm:$0xff]  ;;  %v4091_v10 = vld [vmem:[%s7782_s3 + $0xae8] sm:$0xff] }
 0x19f   : > { %2309 = vmatprep.mubr.f32.mxu1 %v1603_v18  ;;  %4658 = vmatpush1.bf16.msra.mxu1 %v4657_v63  ;;  %v4061_v63 = vld [vmem:[%s7782_s3 + $0x9f8] sm:$0xff]  ;;  %v4763_v49 = vpack.c.bf16 %v4091_v10, %v4087_v57  ;;  %v4118_v57 = vld [vmem:[%s7782_s3 + $0xbc0] sm:$0xff] }
 0x1a0   : > { %2463 = vmatprep.mubr.f32.mxu0 %v1603_v18  ;;  %4730 = vmatpush1.bf16.msra.mxu0 %v4729_v1  ;;  %v4745_v1 = vpack.c.bf16 %v4050_v40, %v4046_v42  ;;  %v4067_v18 = vld [vmem:[%s7782_s3 + $0xa28] sm:$0xff]  ;;  %v4080_v42 = vld [vmem:[%s7782_s3 + $0xa90] sm:$0xff]  ;;  %v4122_v10 = vld [vmem:[%s7782_s3 + $0xbe0] sm:$0xff] }
 0x1a1   : > { %4660 = vmatprep.subr.bf16.mxu1 %v4659_v13  ;;  %4732 = vmatprep.subr.bf16.mxu0 %v4731_v15  ;;  %v4056_v13 = vld [vmem:[%s7782_s3 + $0x9d0] sm:$0xff]  ;;  %v4819_v15 = vpack.c.bf16 %v4061_v63, %v4057_v62  ;;  %v4751_v24 = vpack.c.bf16 %v4067_v18, %v4063_v17  ;;  %v4090_v62 = vld [vmem:[%s7782_s3 + $0xae0] sm:$0xff] }
 0x1a2   : > { %2310 = vmatmul.mubr.f32.gmra.mrb[8].mxu1 %v1602_v26  ;;  %2464 = vmatmul.mubr.f32.gmra.mrb[14].mxu0 %v1602_v26  ;;  %v4066_v26 = vld [vmem:[%s7782_s3 + $0xa20] sm:$0xff]  ;;  %v4084_v40 = vld [vmem:[%s7782_s3 + $0xab0] sm:$0xff] }
 0x1a3   : > { %4662 = vmatpush1.bf16.msra.mxu1 %v4661_v22  ;;  %2380 = vmatprep.mubr.f32.mxu1 %v5271_v7  ;;  %v4749_v22 = vpack.c.bf16 %v4058_v12, %v4054_v9  ;;  %v4753_v34 = vpack.c.bf16 %v4066_v26, %v4062_v25  ;;  %v4833_v61 = vpack.c.bf16 %v4084_v40, %v4080_v42  ;;  %v4088_v63 = vld [vmem:[%s7782_s3 + $0xad0] sm:$0xff]  ;;  %v4097_v9 = vld [vmem:[%s7782_s3 + $0xb18] sm:$0xff]  ;;  %v4094_v17 = vld [vmem:[%s7782_s3 + $0xb00] sm:$0xff] }
 0x1a4   : > { %4734 = vmatpush1.bf16.msra.mxu0 %v4733_v2  ;;  %2534 = vmatprep.mubr.f32.mxu0 %v5271_v7  ;;  %v4821_v2 = vpack.c.bf16 %v4060_v16, %v4056_v13  ;;  %v4101_v12 = vld [vmem:[%s7782_s3 + $0xb38] sm:$0xff]  ;;  %v4098_v18 = vld [vmem:[%s7782_s3 + $0xb20] sm:$0xff] }
 0x1a5   : > { %4736 = vmatprep.subr.bf16.mxu1 %v4735_v27  ;;  %4808 = vmatprep.subr.bf16.mxu0 %v4807_v28  ;;  %v4064_v27 = vld [vmem:[%s7782_s3 + $0xa10] sm:$0xff]  ;;  %v4823_v28 = vpack.c.bf16 %v4069_v21, %v4065_v20  ;;  %v4839_v21 = vpack.c.bf16 %v4101_v12, %v4097_v9  ;;  %v4105_v25 = vld [vmem:[%s7782_s3 + $0xb58] sm:$0xff] }
 0x1a6   : > { %4026 = vmatmul.mubr.msk.f32.vlgmr.msra.gmra.mrb[6].mxu1 %vm1920_vm6, %v1601_v43  ;;  %v4825_v35 = vpack.c.bf16 %v4068_v29, %v4064_v27  ;;  %v4096_v20 = vld [vmem:[%s7782_s3 + $0xb10] sm:$0xff]  ;;  %v4109_v26 = vld [vmem:[%s7782_s3 + $0xb78] sm:$0xff]  ;;  %v4769_v27 = vpack.c.bf16 %v4098_v18, %v4094_v17 }
 0x1a7   : > { %4028 = vmatmul.mubr.msk.f32.vlgmr.msra.gmra.mrb[12].mxu0 %vm1920_vm6, %v1601_v43  ;;  %4738 = vmatpush1.bf16.msra.mxu1 %v4737_v33  ;;  %v4077_v33 = vld [vmem:[%s7782_s3 + $0xa78] sm:$0xff]  ;;  %v4128_v9 = vld [vmem:[%s7782_s3 + $0xc10] sm:$0xff] }
 0x1a8   : > { %4810 = vmatpush1.bf16.msra.mxu0 %v4809_v37  ;;  %2386 = vmatprep.mubr.f32.mxu1 %v5271_v7  ;;  %v4755_v37 = vpack.c.bf16 %v4075_v31, %v4071_v30  ;;  %v4827_v43 = vpack.c.bf16 %v4077_v33, %v4073_v32  ;;  %v4102_v30 = vld [vmem:[%s7782_s3 + $0xb40] sm:$0xff]  ;;  %v4104_v32 = vld [vmem:[%s7782_s3 + $0xb50] sm:$0xff]  ;;  %v4843_v33 = vpack.c.bf16 %v4109_v26, %v4105_v25  ;;  %v4137_v17 = vld [vmem:[%s7782_s3 + $0xc58] sm:$0xff] }
 0x1a9   : > { %2540 = vmatprep.mubr.f32.mxu0 %v5271_v7  ;;  %4740 = vmatprep.subr.bf16.mxu1 %v4739_v44  ;;  %v4076_v44 = vld [vmem:[%s7782_s3 + $0xa70] sm:$0xff]  ;;  %v4106_v31 = vld [vmem:[%s7782_s3 + $0xb60] sm:$0xff]  ;;  %v4141_v18 = vld [vmem:[%s7782_s3 + $0xc78] sm:$0xff] }
 0x1aa   : > { %4027 = vmatmul.mubr.msk.f32.gmra.mrb[8].mxu1 %vm1920_vm6, %v1604_v58  ;;  %4812 = vmatprep.subr.bf16.mxu0 %v4811_v47  ;;  %v4081_v47 = vld [vmem:[%s7782_s3 + $0xa98] sm:$0xff]  ;;  %v4829_v51 = vpack.c.bf16 %v4076_v44, %v4072_v41  ;;  %v4773_v41 = vpack.c.bf16 %v4106_v31, %v4102_v30  ;;  %v4136_v25 = vld [vmem:[%s7782_s3 + $0xc50] sm:$0xff]  ;;  %v4859_v26 = vpack.c.bf16 %v4141_v18, %v4137_v17 }
 0x1ab   : > { %4029 = vmatmul.mubr.msk.f32.gmra.mrb[14].mxu0 %vm1920_vm6, %v1604_v58  ;;  %4742 = vmatpush1.bf16.msra.mxu1 %v4741_v53  ;;  %v4759_v53 = vpack.c.bf16 %v4083_v46, %v4079_v45  ;;  %v4089_v58 = vld [vmem:[%s7782_s3 + $0xad8] sm:$0xff]  ;;  %v4110_v45 = vld [vmem:[%s7782_s3 + $0xb80] sm:$0xff] }
 0x1ac   : > { %2786 = vmatprep.mubr.f32.mxu1 %v2710_v0  ;;  %4814 = vmatpush1.bf16.msra.mxu0 %v4813_v56  ;;  %v4831_v56 = vpack.c.bf16 %v4085_v48, %v4081_v47  ;;  %v4114_v46 = vld [vmem:[%s7782_s3 + $0xba0] sm:$0xff]  ;;  %v4112_v47 = vld [vmem:[%s7782_s3 + $0xb90] sm:$0xff]  ;;  %v4847_v48 = vpack.c.bf16 %v4117_v39, %v4113_v38  ;;  %v4145_v30 = vld [vmem:[%s7782_s3 + $0xc98] sm:$0xff] }
 0x1ad   : > { %2940 = vmatprep.mubr.f32.mxu0 %v2710_v0  ;;  %4744 = vmatprep.subr.bf16.mxu1 %v4743_v60  ;;  %v4761_v60 = vpack.c.bf16 %v4082_v55, %v4078_v54  ;;  %v4835_v0 = vpack.c.bf16 %v4093_v59, %v4089_v58  ;;  %v4121_v54 = vld [vmem:[%s7782_s3 + $0xbd8] sm:$0xff]  ;;  %v4777_v42 = vpack.c.bf16 %v4114_v46, %v4110_v45  ;;  %v4120_v58 = vld [vmem:[%s7782_s3 + $0xbd0] sm:$0xff] }
 0x1ae   : > { %4816 = vmatprep.subr.bf16.mxu0 %v4815_v52  ;;  %v4086_v52 = vld [vmem:[%s7782_s3 + $0xac0] sm:$0xff]  ;;  %v4125_v55 = vld [vmem:[%s7782_s3 + $0xbf8] sm:$0xff]  ;;  %v4144_v38 = vld [vmem:[%s7782_s3 + $0xc90] sm:$0xff] }
 0x1af   : > { %4746 = vmatpush1.bf16.msra.mxu1 %v4745_v1  ;;  %v4092_v1 = vld [vmem:[%s7782_s3 + $0xaf0] sm:$0xff]  ;;  %v4765_v13 = vpack.c.bf16 %v4090_v62, %v4086_v52  ;;  %v4851_v59 = vpack.c.bf16 %v4125_v55, %v4121_v54  ;;  %v4129_v52 = vld [vmem:[%s7782_s3 + $0xc18] sm:$0xff] }
 0x1b0   : > { %4818 = vmatpush1.bf16.msra.mxu0 %v4817_v4  ;;  %4748 = vmatprep.subr.bf16.mxu1 %v4747_v8  ;;  %v4095_v4 = vld [vmem:[%s7782_s3 + $0xb08] sm:$0xff]  ;;  %v4133_v62 = vld [vmem:[%s7782_s3 + $0xc38] sm:$0xff]  ;;  %v4152_v54 = vld [vmem:[%s7782_s3 + $0xcd0] sm:$0xff] }
 0x1b1   : > { %4820 = vmatprep.subr.bf16.mxu0 %v4819_v15  ;;  %v4099_v8 = vld [vmem:[%s7782_s3 + $0xb28] sm:$0xff]  ;;  %v4837_v15 = vpack.c.bf16 %v4092_v1, %v4088_v63  ;;  %v4781_v63 = vpack.c.bf16 %v4122_v10, %v4118_v57  ;;  %v4855_v12 = vpack.c.bf16 %v4133_v62, %v4129_v52  ;;  %v4149_v31 = vld [vmem:[%s7782_s3 + $0xcb8] sm:$0xff] }
 0x1b2   : > { %v4767_v16 = vpack.c.bf16 %v4099_v8, %v4095_v4  ;;  %v4126_v4 = vld [vmem:[%s7782_s3 + $0xc00] sm:$0xff]  ;;  %v4863_v39 = vpack.c.bf16 %v4149_v31, %v4145_v30  ;;  %v4153_v45 = vld [vmem:[%s7782_s3 + $0xcd8] sm:$0xff] }
 0x1b3   : > { %4750 = vmatpush1.bf16.msra.mxu1 %v4749_v22  ;;  %v4100_v22 = vld [vmem:[%s7782_s3 + $0xb30] sm:$0xff]  ;;  %v4130_v8 = vld [vmem:[%s7782_s3 + $0xc20] sm:$0xff]  ;;  %v4157_v46 = vld [vmem:[%s7782_s3 + $0xcf8] sm:$0xff] }
 0x1b4   : > { %4822 = vmatpush1.bf16.msra.mxu0 %v4821_v2  ;;  %4752 = vmatprep.subr.bf16.mxu1 %v4751_v24  ;;  %v4103_v2 = vld [vmem:[%s7782_s3 + $0xb48] sm:$0xff]  ;;  %v4867_v55 = vpack.c.bf16 %v4157_v46, %v4153_v45  ;;  %v2550_v57 = vld [vmem:[#allocation2 + $0x18] sm:$0xf] }
 0x1b5   : > { %4824 = vmatprep.subr.bf16.mxu0 %v4823_v28  ;;  %v4107_v24 = vld [vmem:[%s7782_s3 + $0xb68] sm:$0xff]  ;;  %v4841_v28 = vpack.c.bf16 %v4100_v22, %v4096_v20  ;;  %v4785_v20 = vpack.c.bf16 %v4130_v8, %v4126_v4  ;;  %v4161_v10 = vld [vmem:[%s7782_s3 + $0xd18] sm:$0xff]  ;;  %v2706_v52 = vrot.slane %v2550_v57, 2  ;;  %v4164_v4 = vld [vmem:[%s7782_s3 + $0xd30] sm:$0xff] }
 0x1b6   : > { %v4771_v29 = vpack.c.bf16 %v4107_v24, %v4103_v2  ;;  %v4134_v2 = vld [vmem:[%s7782_s3 + $0xc40] sm:$0xff]  ;;  %v4167_v8 = vld [vmem:[%s7782_s3 + $0xd48] sm:$0xff]  ;;  %v4181_v30 = vld [vmem:[%s7784_s5 + $0x1f8] sm:$0xff] }
 0x1b7   : > { %4754 = vmatpush1.bf16.msra.mxu1 %v4753_v34  ;;  %v4108_v34 = vld [vmem:[%s7782_s3 + $0xb70] sm:$0xff]  ;;  %v4138_v24 = vld [vmem:[%s7782_s3 + $0xc60] sm:$0xff]  ;;  %v4183_v46 = vld [vmem:[%s7784_s5 + $0x208] sm:$0xff] }
 0x1b8   : > { %4826 = vmatpush1.bf16.msra.mxu0 %v4825_v35  ;;  %4756 = vmatprep.subr.bf16.mxu1 %v4755_v37  ;;  %v4111_v35 = vld [vmem:[%s7782_s3 + $0xb88] sm:$0xff] }
 0x1b9   : > { %4828 = vmatprep.subr.bf16.mxu0 %v4827_v43  ;;  %v4115_v37 = vld [vmem:[%s7782_s3 + $0xba8] sm:$0xff]  ;;  %v4845_v43 = vpack.c.bf16 %v4108_v34, %v4104_v32  ;;  %v4789_v32 = vpack.c.bf16 %v4138_v24, %v4134_v2  ;;  %v4168_v2 = vld [vmem:[%s7782_s3 + $0xd50] sm:$0xff] }
 0x1ba   : > { %v4775_v44 = vpack.c.bf16 %v4115_v37, %v4111_v35  ;;  %v4142_v35 = vld [vmem:[%s7782_s3 + $0xc80] sm:$0xff]  ;;  %v3187_v57 = vld [vmem:[%s7784_s5 + $0x48] sm:$0xff] }
 0x1bb   : > { %4758 = vmatpush1.bf16.msra.mxu1 %v4757_v50  ;;  %v4116_v50 = vld [vmem:[%s7782_s3 + $0xbb0] sm:$0xff]  ;;  %v4146_v37 = vld [vmem:[%s7782_s3 + $0xca0] sm:$0xff] }
 0x1bc   : > { %4830 = vmatpush1.bf16.msra.mxu0 %v4829_v51  ;;  %4760 = vmatprep.subr.bf16.mxu1 %v4759_v53  ;;  %v4119_v51 = vld [vmem:[%s7782_s3 + $0xbc8] sm:$0xff] }
 0x1bd   : > { %4832 = vmatprep.subr.bf16.mxu0 %v4831_v56  ;;  %v4123_v53 = vld [vmem:[%s7782_s3 + $0xbe8] sm:$0xff]  ;;  %v4849_v56 = vpack.c.bf16 %v4116_v50, %v4112_v47  ;;  %v4793_v47 = vpack.c.bf16 %v4146_v37, %v4142_v35  ;;  %v3178_v37 = vld [vmem:[%s7784_s5] sm:$0xff] }
 0x1be   : > { %v4779_v40 = vpack.c.bf16 %v4123_v53, %v4119_v51  ;;  %v4150_v51 = vld [vmem:[%s7782_s3 + $0xcc0] sm:$0xff] }
 0x1bf   : > { %4762 = vmatpush1.bf16.msra.mxu1 %v4761_v60  ;;  %v4124_v60 = vld [vmem:[%s7782_s3 + $0xbf0] sm:$0xff]  ;;  %v4154_v53 = vld [vmem:[%s7782_s3 + $0xce0] sm:$0xff] }
 0x1c0   : > { %4834 = vmatpush1.bf16.msra.mxu0 %v4833_v61  ;;  %4764 = vmatprep.subr.bf16.mxu1 %v4763_v49  ;;  %v4127_v61 = vld [vmem:[%s7782_s3 + $0xc08] sm:$0xff] }
 0x1c1   : > { %4836 = vmatprep.subr.bf16.mxu0 %v4835_v0  ;;  %v4131_v49 = vld [vmem:[%s7782_s3 + $0xc28] sm:$0xff]  ;;  %v4853_v0 = vpack.c.bf16 %v4124_v60, %v4120_v58  ;;  %v4165_v58 = vld [vmem:[%s7782_s3 + $0xd38] sm:$0xff] }
 0x1c2   : > { %v4783_v1 = vpack.c.bf16 %v4131_v49, %v4127_v61  ;;  %v2547_v61 = vld [vmem:[#allocation2] sm:$0xfc]  ;;  %v4871_v62 = vpack.c.bf16 %v4165_v58, %v4161_v10  ;;  %v3189_v10 = vld [vmem:[%s7784_s5 + $0x58] sm:$0xff]  ;;  %v4187_v58 = vld [vmem:[%s7784_s5 + $0x228] sm:$0xff] }
 0x1c3   : > { %4766 = vmatpush1.bf16.msra.mxu1 %v4765_v13  ;;  %v4132_v13 = vld [vmem:[%s7782_s3 + $0xc30] sm:$0xff] }
 0x1c4   : > { %4838 = vmatpush1.bf16.msra.mxu0 %v4837_v15  ;;  %4768 = vmatprep.subr.bf16.mxu1 %v4767_v16  ;;  %v4135_v15 = vld [vmem:[%s7782_s3 + $0xc48] sm:$0xff] }
 0x1c5   : > { %4840 = vmatprep.subr.bf16.mxu0 %v4839_v21  ;;  %v4139_v16 = vld [vmem:[%s7782_s3 + $0xc68] sm:$0xff]  ;;  %v4857_v21 = vpack.c.bf16 %v4132_v13, %v4128_v9  ;;  %v4169_v13 = vld [vmem:[%s7782_s3 + $0xd58] sm:$0xff] }
 0x1c6   : > { %v4787_v22 = vpack.c.bf16 %v4139_v16, %v4135_v15  ;;  %v4171_v9 = vld [vmem:[%s7782_s3 + $0xd68] sm:$0xff]  ;;  %v4173_v15 = vld [vmem:[%s7782_s3 + $0xd78] sm:$0xff] }
 0x1c7   : > { %4770 = vmatpush1.bf16.msra.mxu1 %v4769_v27  ;;  %v4140_v27 = vld [vmem:[%s7782_s3 + $0xc70] sm:$0xff]  ;;  %v4875_v24 = vpack.c.bf16 %v4173_v15, %v4169_v13 }
 0x1c8   : > { %4842 = vmatpush1.bf16.msra.mxu0 %v4841_v28  ;;  %4772 = vmatprep.subr.bf16.mxu1 %v4771_v29  ;;  %v4143_v28 = vld [vmem:[%s7782_s3 + $0xc88] sm:$0xff] }
 0x1c9   : > { %4844 = vmatprep.subr.bf16.mxu0 %v4843_v33  ;;  %v4147_v29 = vld [vmem:[%s7782_s3 + $0xca8] sm:$0xff]  ;;  %v4861_v33 = vpack.c.bf16 %v4140_v27, %v4136_v25  ;;  %v4172_v25 = vld [vmem:[%s7782_s3 + $0xd70] sm:$0xff]  ;;  %v3181_v27 = vld [vmem:[%s7784_s5 + $0x18] sm:$0xff] }
 0x1ca   : > { %v4791_v34 = vpack.c.bf16 %v4147_v29, %v4143_v28  ;;  %v2552_v28 = vld [vmem:[#allocation2 + $0x28] sm:$0xf] }
 0x1cb   : > { %4774 = vmatpush1.bf16.msra.mxu1 %v4773_v41  ;;  %v4148_v41 = vld [vmem:[%s7782_s3 + $0xcb0] sm:$0xff]  ;;  %v4179_v29 = vld [vmem:[%s7784_s5 + $0x1e8] sm:$0xff]  ;;  %v2712_v35 = vrot.slane %v2552_v28, 2 }
 0x1cc   : > { %4846 = vmatpush1.bf16.msra.mxu0 %v4845_v43  ;;  %4776 = vmatprep.subr.bf16.mxu1 %v4775_v44  ;;  %v4151_v43 = vld [vmem:[%s7782_s3 + $0xcc8] sm:$0xff] }
 0x1cd   : > { %4848 = vmatprep.subr.bf16.mxu0 %v4847_v48  ;;  %v4155_v44 = vld [vmem:[%s7782_s3 + $0xce8] sm:$0xff]  ;;  %v4865_v48 = vpack.c.bf16 %v4148_v41, %v4144_v38  ;;  %v3180_v38 = vld [vmem:[%s7784_s5 + $0x10] sm:$0xff] }
 0x1ce   : > { %v4795_v50 = vpack.c.bf16 %v4155_v44, %v4151_v43  ;;  %v4180_v41 = vld [vmem:[%s7784_s5 + $0x1f0] sm:$0xff]  ;;  %v3183_v43 = vld [vmem:[%s7784_s5 + $0x28] sm:$0xff]  ;;  %v3185_v44 = vld [vmem:[%s7784_s5 + $0x38] sm:$0xff] }
 0x1cf   : > { %4778 = vmatpush1.bf16.msra.mxu1 %v4777_v42  ;;  %v4156_v42 = vld [vmem:[%s7782_s3 + $0xcf0] sm:$0xff] }
 0x1d0   : > { %4850 = vmatpush1.bf16.msra.mxu0 %v4849_v56  ;;  %4780 = vmatprep.subr.bf16.mxu1 %v4779_v40  ;;  %v4159_v56 = vld [vmem:[%s7782_s3 + $0xd08] sm:$0xff]  ;;  %v4869_v60 = vpack.c.bf16 %v4156_v42, %v4152_v54  ;;  %v3182_v54 = vld [vmem:[%s7784_s5 + $0x20] sm:$0xff] }
 0x1d1   : > { %4852 = vmatprep.subr.bf16.mxu0 %v4851_v59  ;;  %v4163_v40 = vld [vmem:[%s7782_s3 + $0xd28] sm:$0xff]  ;;  %v4797_v59 = vpack.c.bf16 %v4154_v53, %v4150_v51  ;;  %v4943_v53 = vpack.c.bf16 %v3185_v44, %v3183_v43  ;;  %v4182_v42 = vld [vmem:[%s7784_s5 + $0x200] sm:$0xff] }
 0x1d2   : > { %v4799_v49 = vpack.c.bf16 %v4163_v40, %v4159_v56  ;;  %v4184_v40 = vld [vmem:[%s7784_s5 + $0x210] sm:$0xff]  ;;  %v3198_v44 = vld [vmem:[%s7784_s5 + $0xa0] sm:$0xff] }
 0x1d3   : > { %4782 = vmatpush1.bf16.msra.mxu1 %v4781_v63  ;;  %v4158_v63 = vld [vmem:[%s7782_s3 + $0xd00] sm:$0xff] }
 0x1d4   : > { %4854 = vmatpush1.bf16.msra.mxu0 %v4853_v0  ;;  %4784 = vmatprep.subr.bf16.mxu1 %v4783_v1  ;;  %v4162_v0 = vld [vmem:[%s7782_s3 + $0xd20] sm:$0xff]  ;;  %v4160_v1 = vld [vmem:[%s7782_s3 + $0xd10] sm:$0xff] }
 0x1d5   : > { %4856 = vmatprep.subr.bf16.mxu0 %v4855_v12  ;;  %v2705_v12 = vrot.slane %v2547_v61, 2  ;;  %v4801_v16 = vpack.c.bf16 %v4162_v0, %v4158_v63  ;;  %v4873_v18 = vpack.c.bf16 %v4164_v4, %v4160_v1  ;;  %v4885_v61 = vpack.c.bf16 %v4184_v40, %v4182_v42  ;;  %v4186_v63 = vld [vmem:[%s7784_s5 + $0x220] sm:$0xff]  ;;  %v4188_v1 = vld [vmem:[%s7784_s5 + $0x230] sm:$0xff]  ;;  %v3191_v4 = vld [vmem:[%s7784_s5 + $0x68] sm:$0xff] }
 0x1d6   : > { %v4889_v15 = vpack.c.bf16 %v4188_v1, %v4186_v63  ;;  %v3202_v40 = vld [vmem:[%s7784_s5 + $0xc0] sm:$0xff] }
 0x1d7   : > { %4786 = vmatpush1.bf16.msra.mxu1 %v4785_v20  ;;  %v2707_v17 = vsel %vm2704_vm7, %v2705_v12, %v2706_v52  ;;  %v4803_v20 = vpack.c.bf16 %v4171_v9, %v4167_v8  ;;  %v3193_v8 = vld [vmem:[%s7784_s5 + $0x78] sm:$0xff]  ;;  %v4191_v9 = vld [vmem:[%s7784_s5 + $0x248] sm:$0xff]  ;;  %v3206_v63 = vld [vmem:[%s7784_s5 + $0xe0] sm:$0xff] }
 0x1d8   : > { %4858 = vmatpush1.bf16.msra.mxu0 %v4857_v21  ;;  %4788 = vmatprep.subr.bf16.mxu1 %v4787_v22  ;;  %v4166_v21 = vld [vmem:[%s7782_s3 + $0xd40] sm:$0xff]  ;;  %v4193_v12 = vld [vmem:[%s7784_s5 + $0x258] sm:$0xff] }
 0x1d9   : > { %4860 = vmatprep.subr.bf16.mxu0 %v4859_v26  ;;  %v4170_v22 = vld [vmem:[%s7782_s3 + $0xd60] sm:$0xff]  ;;  %v3179_v26 = vld [vmem:[%s7784_s5 + $0x8] sm:$0xff] }
 0x1da   : > { %v4805_v31 = vpack.c.bf16 %v4170_v22, %v4166_v21  ;;  %v4891_v21 = vpack.c.bf16 %v4193_v12, %v4191_v9  ;;  %v4192_v22 = vld [vmem:[%s7784_s5 + $0x250] sm:$0xff]  ;;  %v4206_v12 = vld [vmem:[%s7784_s5 + $0x2c0] sm:$0xff] }
 0x1db   : > { %4790 = vmatpush1.bf16.msra.mxu1 %v4789_v32  ;;  %v2549_v32 = vld [vmem:[#allocation2 + $0x10] sm:$0xfc] }
 0x1dc   : > { %4862 = vmatpush1.bf16.msra.mxu0 %v4861_v33  ;;  %4792 = vmatprep.subr.bf16.mxu1 %v4791_v34  ;;  %v4877_v33 = vpack.c.bf16 %v4172_v25, %v4168_v2  ;;  %v4939_v34 = vpack.c.bf16 %v3181_v27, %v3179_v26  ;;  %v2711_v45 = vrot.slane %v2549_v32, 2  ;;  %v3195_v2 = vld [vmem:[%s7784_s5 + $0x88] sm:$0xff]  ;;  %v4197_v26 = vld [vmem:[%s7784_s5 + $0x278] sm:$0xff]  ;;  %v4194_v32 = vld [vmem:[%s7784_s5 + $0x260] sm:$0xff] }
 0x1dd   : > { %4864 = vmatprep.subr.bf16.mxu0 %v4863_v39  ;;  %v4879_v39 = vpack.c.bf16 %v4181_v30, %v4179_v29  ;;  %v4195_v25 = vld [vmem:[%s7784_s5 + $0x268] sm:$0xff]  ;;  %v3194_v30 = vld [vmem:[%s7784_s5 + $0x80] sm:$0xff] }
 0x1df   : > { %4794 = vmatpush1.bf16.msra.mxu1 %v4793_v47  ;;  %v4185_v47 = vld [vmem:[%s7784_s5 + $0x218] sm:$0xff] }
 0x1e0   : > { %4866 = vmatpush1.bf16.msra.mxu0 %v4865_v48  ;;  %4796 = vmatprep.subr.bf16.mxu1 %v4795_v50  ;;  %v4941_v48 = vpack.c.bf16 %v3180_v38, %v3178_v37  ;;  %v2713_v50 = vsel %vm2704_vm7, %v2711_v45, %v2712_v35  ;;  %v4883_v56 = vpack.c.bf16 %v4185_v47, %v4183_v46  ;;  %v3201_v37 = vld [vmem:[%s7784_s5 + $0xb8] sm:$0xff]  ;;  %v4199_v38 = vld [vmem:[%s7784_s5 + $0x288] sm:$0xff]  ;;  %v3200_v45 = vld [vmem:[%s7784_s5 + $0xb0] sm:$0xff] }
 0x1e1   : > { %4868 = vmatprep.subr.bf16.mxu0 %v4867_v55  ;;  %v3184_v55 = vld [vmem:[%s7784_s5 + $0x30] sm:$0xff]  ;;  %v4198_v46 = vld [vmem:[%s7784_s5 + $0x280] sm:$0xff] }
 0x1e3   : > { %4798 = vmatpush1.bf16.msra.mxu1 %v4797_v59  ;;  %v4189_v59 = vld [vmem:[%s7784_s5 + $0x238] sm:$0xff] }
 0x1e4   : > { %4870 = vmatpush1.bf16.msra.mxu0 %v4869_v60  ;;  %4800 = vmatprep.subr.bf16.mxu1 %v4799_v49  ;;  %v4945_v60 = vpack.c.bf16 %v3184_v55, %v3182_v54  ;;  %v4947_v49 = vpack.c.bf16 %v3189_v10, %v3187_v57  ;;  %v4887_v0 = vpack.c.bf16 %v4189_v59, %v4187_v58  ;;  %v4205_v54 = vld [vmem:[%s7784_s5 + $0x2b8] sm:$0xff]  ;;  %v3204_v57 = vld [vmem:[%s7784_s5 + $0xd0] sm:$0xff]  ;;  %v4202_v10 = vld [vmem:[%s7784_s5 + $0x2a0] sm:$0xff] }
 0x1e5   : > { %4872 = vmatprep.subr.bf16.mxu0 %v4871_v62  ;;  %v3188_v62 = vld [vmem:[%s7784_s5 + $0x50] sm:$0xff]  ;;  %v4961_v55 = vpack.c.bf16 %v3200_v45, %v3198_v44  ;;  %v3221_v44 = vld [vmem:[%s7784_s5 + $0x158] sm:$0xff]  ;;  %v3218_v45 = vld [vmem:[%s7784_s5 + $0x140] sm:$0xff] }
 0x1e6   : > { %2787 = vmatmul.mubr.f32.vlgmr.msra.gmra.mrb[6].mxu1 %v2707_v17  ;;  %v4204_v59 = vld [vmem:[%s7784_s5 + $0x2b0] sm:$0xff] }
 0x1e7   : > { %2941 = vmatmul.mubr.f32.vlgmr.msra.gmra.mrb[12].mxu0 %v2707_v17  ;;  %2792 = vmatprep.mubr.f32.mxu1 %v6720_v36  ;;  %v3190_v17 = vld [vmem:[%s7784_s5 + $0x60] sm:$0xff] }
 0x1e8   : > { %4802 = vmatpush1.bf16.msra.mxu1 %v4801_v16  ;;  %2946 = vmatprep.mubr.f32.mxu0 %v6720_v36  ;;  %v4178_v36 = vld [vmem:[%s7784_s5 + $0x1e0] sm:$0xff]  ;;  %v4951_v16 = vpack.c.bf16 %v3193_v8, %v3191_v4  ;;  %v4207_v4 = vld [vmem:[%s7784_s5 + $0x2c8] sm:$0xff]  ;;  %v4209_v8 = vld [vmem:[%s7784_s5 + $0x2d8] sm:$0xff] }
 0x1e9   : > { %4874 = vmatpush1.bf16.msra.mxu0 %v4873_v18  ;;  %4804 = vmatprep.subr.bf16.mxu1 %v4803_v20  ;;  %v4881_v51 = vpack.c.bf16 %v4180_v41, %v4178_v36  ;;  %v3192_v18 = vld [vmem:[%s7784_s5 + $0x70] sm:$0xff]  ;;  %v4190_v20 = vld [vmem:[%s7784_s5 + $0x240] sm:$0xff]  ;;  %v4907_v9 = vpack.c.bf16 %v4209_v8, %v4207_v4 }
 0x1ea   : > { %2793 = vmatmul.mubr.f32.gmra.mrb[8].mxu1 %v2706_v52  ;;  %4876 = vmatprep.subr.bf16.mxu0 %v4875_v24  ;;  %v3197_v24 = vld [vmem:[%s7784_s5 + $0x98] sm:$0xff]  ;;  %v4953_v27 = vpack.c.bf16 %v3192_v18, %v3190_v17  ;;  %v4893_v28 = vpack.c.bf16 %v4192_v22, %v4190_v20  ;;  %v3210_v18 = vld [vmem:[%s7784_s5 + $0x100] sm:$0xff]  ;;  %v3212_v20 = vld [vmem:[%s7784_s5 + $0x110] sm:$0xff] }
 0x1eb   : > { %2947 = vmatmul.mubr.f32.gmra.mrb[14].mxu0 %v2706_v52  ;;  %2863 = vmatprep.mubr.f32.mxu1 %v5271_v7  ;;  %v3186_v52 = vld [vmem:[%s7784_s5 + $0x40] sm:$0xff]  ;;  %v4955_v29 = vpack.c.bf16 %v3197_v24, %v3195_v2  ;;  %v3213_v17 = vld [vmem:[%s7784_s5 + $0x118] sm:$0xff]  ;;  %v4973_v22 = vpack.c.bf16 %v3212_v20, %v3210_v18  ;;  %v4211_v2 = vld [vmem:[%s7784_s5 + $0x2e8] sm:$0xff] }
 0x1ec   : > { %4806 = vmatpush1.bf16.msra.mxu1 %v4805_v31  ;;  %3017 = vmatprep.mubr.f32.mxu0 %v5271_v7  ;;  %v4949_v13 = vpack.c.bf16 %v3188_v62, %v3186_v52  ;;  %v3196_v31 = vld [vmem:[%s7784_s5 + $0x90] sm:$0xff]  ;;  %v4905_v52 = vpack.c.bf16 %v4204_v59, %v4202_v10  ;;  %v4213_v24 = vld [vmem:[%s7784_s5 + $0x2f8] sm:$0xff]  ;;  %v3226_v8 = vld [vmem:[%s7784_s5 + $0x180] sm:$0xff] }
 0x1ed   : > { %4878 = vmatpush1.bf16.msra.mxu0 %v4877_v33  ;;  %4940 = vmatprep.subr.bf16.mxu1 %v4939_v34  ;;  %v4895_v33 = vpack.c.bf16 %v4197_v26, %v4195_v25  ;;  %v4196_v34 = vld [vmem:[%s7784_s5 + $0x270] sm:$0xff]  ;;  %v4957_v36 = vpack.c.bf16 %v3196_v31, %v3194_v30  ;;  %v4911_v25 = vpack.c.bf16 %v4213_v24, %v4211_v2  ;;  %v4210_v26 = vld [vmem:[%s7784_s5 + $0x2e0] sm:$0xff]  ;;  %v3217_v30 = vld [vmem:[%s7784_s5 + $0x138] sm:$0xff] }
 0x1ee   : > { %4880 = vmatprep.subr.bf16.mxu0 %v4879_v39  ;;  %v4201_v39 = vld [vmem:[%s7784_s5 + $0x298] sm:$0xff]  ;;  %v4897_v41 = vpack.c.bf16 %v4196_v34, %v4194_v32  ;;  %v3214_v31 = vld [vmem:[%s7784_s5 + $0x120] sm:$0xff]  ;;  %v3216_v32 = vld [vmem:[%s7784_s5 + $0x130] sm:$0xff] }
 0x1ef   : > { %4174 = vmatmul.mubr.msk.f32.vlgmr.msra.gmra.mrb[6].mxu1 %vm1920_vm6, %v2713_v50  ;;  %v4899_v47 = vpack.c.bf16 %v4201_v39, %v4199_v38  ;;  %v4977_v34 = vpack.c.bf16 %v3216_v32, %v3214_v31  ;;  %v4214_v39 = vld [vmem:[%s7784_s5 + $0x300] sm:$0xff]  ;;  %v3224_v10 = vld [vmem:[%s7784_s5 + $0x170] sm:$0xff]  ;;  %v3231_v20 = vld [vmem:[%s7784_s5 + $0x1a8] sm:$0xff] }
 0x1f0   : > { %4176 = vmatmul.mubr.msk.f32.vlgmr.msra.gmra.mrb[12].mxu0 %vm1920_vm6, %v2713_v50  ;;  %2869 = vmatprep.mubr.f32.mxu1 %v5271_v7  ;;  %v3203_v50 = vld [vmem:[%s7784_s5 + $0xc8] sm:$0xff] }
 0x1f1   : > { %3023 = vmatprep.mubr.f32.mxu0 %v5271_v7  ;;  %4942 = vmatpush1.bf16.msra.mxu1 %v4941_v48  ;;  %v4200_v48 = vld [vmem:[%s7784_s5 + $0x290] sm:$0xff]  ;;  %v3235_v31 = vld [vmem:[%s7784_s5 + $0x1c8] sm:$0xff] }
 0x1f2   : > { %4882 = vmatpush1.bf16.msra.mxu0 %v4881_v51  ;;  %4944 = vmatprep.subr.bf16.mxu1 %v4943_v53  ;;  %v3205_v51 = vld [vmem:[%s7784_s5 + $0xd8] sm:$0xff]  ;;  %v4203_v53 = vld [vmem:[%s7784_s5 + $0x2a8] sm:$0xff]  ;;  %v4901_v42 = vpack.c.bf16 %v4200_v48, %v4198_v46  ;;  %v3220_v46 = vld [vmem:[%s7784_s5 + $0x150] sm:$0xff] }
 0x1f3   : > { %4175 = vmatmul.mubr.msk.f32.gmra.mrb[8].mxu1 %vm1920_vm6, %v2712_v35  ;;  %4884 = vmatprep.subr.bf16.mxu0 %v4883_v56  ;;  %v4963_v56 = vpack.c.bf16 %v3205_v51, %v3203_v50  ;;  %v4903_v58 = vpack.c.bf16 %v4205_v54, %v4203_v53  ;;  %v4981_v48 = vpack.c.bf16 %v3220_v46, %v3218_v45  ;;  %v4219_v50 = vld [vmem:[%s7784_s5 + $0x328] sm:$0xff]  ;;  %v4221_v51 = vld [vmem:[%s7784_s5 + $0x338] sm:$0xff]  ;;  %v4218_v54 = vld [vmem:[%s7784_s5 + $0x320] sm:$0xff] }
 0x1f4   : > { %4177 = vmatmul.mubr.msk.f32.gmra.mrb[14].mxu0 %vm1920_vm6, %v2712_v35  ;;  %v3199_v35 = vld [vmem:[%s7784_s5 + $0xa8] sm:$0xff]  ;;  %v4919_v53 = vpack.c.bf16 %v4221_v51, %v4219_v50  ;;  %v4234_v45 = vld [vmem:[%s7784_s5 + $0x3a0] sm:$0xff]  ;;  %v4236_v46 = vld [vmem:[%s7784_s5 + $0x3b0] sm:$0xff] }
 0x1f5   : > { %4946 = vmatpush1.bf16.msra.mxu1 %v4945_v60  ;;  %v4959_v43 = vpack.c.bf16 %v3201_v37, %v3199_v35  ;;  %v3207_v60 = vld [vmem:[%s7784_s5 + $0xe8] sm:$0xff]  ;;  %v4217_v37 = vld [vmem:[%s7784_s5 + $0x318] sm:$0xff]  ;;  %v4937_v50 = vpack.c.bf16 %v4236_v46, %v4234_v45  ;;  %v3038_v51 = vld [vmem:[%s7783_s4] sm:$0xf] }
 0x1f6   : > { %4886 = vmatpush1.bf16.msra.mxu0 %v4885_v61  ;;  %4948 = vmatprep.subr.bf16.mxu1 %v4947_v49  ;;  %v3209_v61 = vld [vmem:[%s7784_s5 + $0xf8] sm:$0xff]  ;;  %v4965_v49 = vpack.c.bf16 %v3204_v57, %v3202_v40  ;;  %v4215_v35 = vld [vmem:[%s7784_s5 + $0x308] sm:$0xff]  ;;  %v3222_v57 = vld [vmem:[%s7784_s5 + $0x160] sm:$0xff] }
 0x1f7   : > { %4888 = vmatprep.subr.bf16.mxu0 %v4887_v0  ;;  %v4967_v62 = vpack.c.bf16 %v3209_v61, %v3207_v60  ;;  %v3208_v0 = vld [vmem:[%s7784_s5 + $0xf0] sm:$0xff]  ;;  %v4915_v38 = vpack.c.bf16 %v4217_v37, %v4215_v35  ;;  %v3225_v40 = vld [vmem:[%s7784_s5 + $0x178] sm:$0xff]  ;;  %v4985_v59 = vpack.c.bf16 %v3224_v10, %v3222_v57  ;;  %v4223_v60 = vld [vmem:[%s7784_s5 + $0x348] sm:$0xff] }
 0x1f8   : > { %v4969_v1 = vpack.c.bf16 %v3208_v0, %v3206_v63  ;;  %v4225_v61 = vld [vmem:[%s7784_s5 + $0x358] sm:$0xff]  ;;  %v3227_v63 = vld [vmem:[%s7784_s5 + $0x188] sm:$0xff]  ;;  %v3236_v37 = vld [vmem:[%s7784_s5 + $0x1d0] sm:$0xff] }
 0x1f9   : > { %4950 = vmatpush1.bf16.msra.mxu1 %v4949_v13  ;;  %v4208_v13 = vld [vmem:[%s7784_s5 + $0x2d0] sm:$0xff]  ;;  %v3229_v0 = vld [vmem:[%s7784_s5 + $0x198] sm:$0xff] }
 0x1fa   : > { %4890 = vmatpush1.bf16.msra.mxu0 %v4889_v15  ;;  %4952 = vmatprep.subr.bf16.mxu1 %v4951_v16  ;;  %v3211_v15 = vld [vmem:[%s7784_s5 + $0x108] sm:$0xff]  ;;  %v4909_v16 = vpack.c.bf16 %v4208_v13, %v4206_v12  ;;  %v4987_v4 = vpack.c.bf16 %v3229_v0, %v3227_v63 }
 0x1fb   : > { %4892 = vmatprep.subr.bf16.mxu0 %v4891_v21  ;;  %v4971_v21 = vpack.c.bf16 %v3213_v17, %v3211_v15  ;;  %v4227_v12 = vld [vmem:[%s7784_s5 + $0x368] sm:$0xff]  ;;  %v4229_v15 = vld [vmem:[%s7784_s5 + $0x378] sm:$0xff]  ;;  %v4228_v17 = vld [vmem:[%s7784_s5 + $0x370] sm:$0xff] }
 0x1fc   : > { %v4927_v18 = vpack.c.bf16 %v4229_v15, %v4227_v12 }
 0x1fd   : > { %4954 = vmatpush1.bf16.msra.mxu1 %v4953_v27  ;;  %v4212_v27 = vld [vmem:[%s7784_s5 + $0x2f0] sm:$0xff] }
 0x1fe   : > { %4894 = vmatpush1.bf16.msra.mxu0 %v4893_v28  ;;  %4956 = vmatprep.subr.bf16.mxu1 %v4955_v29  ;;  %v3215_v28 = vld [vmem:[%s7784_s5 + $0x128] sm:$0xff]  ;;  %v4913_v29 = vpack.c.bf16 %v4212_v27, %v4210_v26  ;;  %v4233_v27 = vld [vmem:[%s7784_s5 + $0x398] sm:$0xff] }
 0x1ff   : > { %4896 = vmatprep.subr.bf16.mxu0 %v4895_v33  ;;  %v4975_v33 = vpack.c.bf16 %v3217_v30, %v3215_v28  ;;  %v4231_v26 = vld [vmem:[%s7784_s5 + $0x388] sm:$0xff]  ;;  %v4232_v30 = vld [vmem:[%s7784_s5 + $0x390] sm:$0xff] }
 0x200   : > { %v4931_v28 = vpack.c.bf16 %v4233_v27, %v4231_v26 }
 0x201   : > { %4958 = vmatpush1.bf16.msra.mxu1 %v4957_v36  ;;  %v4216_v36 = vld [vmem:[%s7784_s5 + $0x310] sm:$0xff] }
 0x202   : > { %4898 = vmatpush1.bf16.msra.mxu0 %v4897_v41  ;;  %4960 = vmatprep.subr.bf16.mxu1 %v4959_v43  ;;  %v3219_v41 = vld [vmem:[%s7784_s5 + $0x148] sm:$0xff]  ;;  %v4917_v43 = vpack.c.bf16 %v4216_v36, %v4214_v39  ;;  %v4237_v39 = vld [vmem:[%s7784_s5 + $0x3b8] sm:$0xff] }
 0x203   : > { %4900 = vmatprep.subr.bf16.mxu0 %v4899_v47  ;;  %v4979_v47 = vpack.c.bf16 %v3221_v44, %v3219_v41  ;;  %v4241_v41 = vld [vmem:[%s7784_s5 + $0x3c8] sm:$0xff] }
 0x205   : > { %4962 = vmatpush1.bf16.msra.mxu1 %v4961_v55  ;;  %v4220_v55 = vld [vmem:[%s7784_s5 + $0x330] sm:$0xff] }
 0x206   : > { %4902 = vmatpush1.bf16.msra.mxu0 %v4901_v42  ;;  %4964 = vmatprep.subr.bf16.mxu1 %v4963_v56  ;;  %v3223_v42 = vld [vmem:[%s7784_s5 + $0x168] sm:$0xff]  ;;  %v4921_v56 = vpack.c.bf16 %v4220_v55, %v4218_v54  ;;  %v3051_v54 = vrot.slane %v3038_v51, %v1273_v23  ;;  %v3047_v55 = vrot.slane %v3038_v51, %v6121_v19 }
 0x207   : > { %4904 = vmatprep.subr.bf16.mxu0 %v4903_v58  ;;  %v4983_v58 = vpack.c.bf16 %v3225_v40, %v3223_v42  ;;  %v3055_v42 = vrot.slane %v3038_v51, %v1277_v11 }
 0x209   : > { %4966 = vmatpush1.bf16.msra.mxu1 %v4965_v49  ;;  %v4222_v49 = vld [vmem:[%s7784_s5 + $0x340] sm:$0xff] }
 0x20a   : > { %4906 = vmatpush1.bf16.msra.mxu0 %v4905_v52  ;;  %4968 = vmatprep.subr.bf16.mxu1 %v4967_v62  ;;  %v4923_v52 = vpack.c.bf16 %v4225_v61, %v4223_v60  ;;  %v4224_v62 = vld [vmem:[%s7784_s5 + $0x350] sm:$0xff] }
 0x20b   : > { %4908 = vmatprep.subr.bf16.mxu0 %v4907_v9  ;;  %v3228_v9 = vld [vmem:[%s7784_s5 + $0x190] sm:$0xff] }
 0x20c   : > { %v4989_v13 = vpack.c.bf16 %v3228_v9, %v3226_v8 }
 0x20d   : > { %4970 = vmatpush1.bf16.msra.mxu1 %v4969_v1  ;;  %v4925_v1 = vpack.c.bf16 %v4224_v62, %v4222_v49 }
 0x20e   : > { %4910 = vmatpush1.bf16.msra.mxu0 %v4909_v16  ;;  %4972 = vmatprep.subr.bf16.mxu1 %v4971_v21  ;;  %v4226_v16 = vld [vmem:[%s7784_s5 + $0x360] sm:$0xff]  ;;  %v3233_v21 = vld [vmem:[%s7784_s5 + $0x1b8] sm:$0xff] }
 0x20f   : > { %4912 = vmatprep.subr.bf16.mxu0 %v4911_v25  ;;  %v4929_v2 = vpack.c.bf16 %v4228_v17, %v4226_v16  ;;  %v4991_v24 = vpack.c.bf16 %v3233_v21, %v3231_v20  ;;  %v3232_v25 = vld [vmem:[%s7784_s5 + $0x1b0] sm:$0xff] }
 0x211   : > { %4974 = vmatpush1.bf16.msra.mxu1 %v4973_v22  ;;  %v3230_v22 = vld [vmem:[%s7784_s5 + $0x1a0] sm:$0xff] }
 0x212   : > { %4914 = vmatpush1.bf16.msra.mxu0 %v4913_v29  ;;  %4976 = vmatprep.subr.bf16.mxu1 %v4975_v33  ;;  %v4230_v29 = vld [vmem:[%s7784_s5 + $0x380] sm:$0xff]  ;;  %v4993_v32 = vpack.c.bf16 %v3232_v25, %v3230_v22  ;;  %v3237_v33 = vld [vmem:[%s7784_s5 + $0x1d8] sm:$0xff] }
 0x213   : > { %4916 = vmatprep.subr.bf16.mxu0 %v4915_v38  ;;  %v4995_v35 = vpack.c.bf16 %v3237_v33, %v3235_v31  ;;  %v4235_v38 = vld [vmem:[%s7784_s5 + $0x3a8] sm:$0xff]  ;;  %v4933_v36 = vpack.c.bf16 %v4232_v30, %v4230_v29  ;;  %v4242_v29 = vld [vmem:[%s7784_s5 + $0x3d0] sm:$0xff]  ;;  %v4244_v31 = vld [vmem:[%s7784_s5 + $0x3e0] sm:$0xff] }
 0x214   : > { %v4935_v44 = vpack.c.bf16 %v4237_v39, %v4235_v38  ;;  %v4249_v33 = vld [vmem:[%s7784_s5 + $0x408] sm:$0xff] }
 0x215   : > { %4978 = vmatpush1.bf16.msra.mxu1 %v4977_v34  ;;  %v3234_v34 = vld [vmem:[%s7784_s5 + $0x1c0] sm:$0xff] }
 0x216   : > { %4918 = vmatpush1.bf16.msra.mxu0 %v4917_v43  ;;  %4980 = vmatprep.subr.bf16.mxu1 %v4979_v47  ;;  %v4243_v43 = vld [vmem:[%s7784_s5 + $0x3d8] sm:$0xff]  ;;  %v4997_v47 = vpack.c.bf16 %v3236_v37, %v3234_v34 }
 0x217   : > { %4920 = vmatprep.subr.bf16.mxu0 %v4919_v53  ;;  %v3043_v53 = vrot.slane %v3038_v51, %v6117_v14  ;;  %v4253_v51 = vld [vmem:[%s7784_s5 + $0x428] sm:$0xff] }
 0x219   : > { %4982 = vmatpush1.bf16.msra.mxu1 %v4981_v48  ;;  %v4999_v48 = vpack.c.bf16 %v4243_v43, %v4241_v41  ;;  %v4251_v43 = vld [vmem:[%s7784_s5 + $0x418] sm:$0xff] }
 0x21a   : > { %4922 = vmatpush1.bf16.msra.mxu0 %v4921_v56  ;;  %4984 = vmatprep.subr.bf16.mxu1 %v4983_v58 }
 0x21b   : > { %4924 = vmatprep.subr.bf16.mxu0 %v4923_v52 }
 0x21d   : > { %4986 = vmatpush1.bf16.msra.mxu1 %v4985_v59 }
 0x21e   : > { %4988 = vmatprep.subr.bf16.mxu1 %v4987_v4  ;;  %4926 = vmatpush1.bf16.msra.mxu0 %v4925_v1 }
 0x21f   : > { %4928 = vmatprep.subr.bf16.mxu0 %v4927_v18 }
 0x221   : > { %4990 = vmatpush1.bf16.msra.mxu1 %v4989_v13 }
 0x222   : > { %4992 = vmatprep.subr.bf16.mxu1 %v4991_v24  ;;  %4930 = vmatpush1.bf16.msra.mxu0 %v4929_v2 }
 0x223   : > { %4932 = vmatprep.subr.bf16.mxu0 %v4931_v28  ;;  %v4240_v28 = vld [vmem:[%s7784_s5 + $0x3c0] sm:$0xff] }
 0x224   : > { %v5001_v30 = vpack.c.bf16 %v4242_v29, %v4240_v28  ;;  %v4276_v29 = vld [vmem:[%s7784_s5 + $0x4e0] sm:$0xff] }
 0x225   : > { %4994 = vmatpush1.bf16.msra.mxu1 %v4993_v32  ;;  %v4246_v32 = vld [vmem:[%s7784_s5 + $0x3f0] sm:$0xff] }
 0x226   : > { %4996 = vmatprep.subr.bf16.mxu1 %v4995_v35  ;;  %4934 = vmatpush1.bf16.msra.mxu0 %v4933_v36  ;;  %v5005_v46 = vpack.c.bf16 %v4246_v32, %v4244_v31 }
 0x227   : > { %4936 = vmatprep.subr.bf16.mxu0 %v4935_v44 }
 0x229   : > { %4998 = vmatpush1.bf16.msra.mxu1 %v4997_v47  ;;  %v5007_v47 = vpack.c.bf16 %v4251_v43, %v4249_v33  ;;  %v4280_v33 = vld [vmem:[%s7784_s5 + $0x500] sm:$0xff]  ;;  %v4289_v43 = vld [vmem:[%s7784_s5 + $0x548] sm:$0xff] }
 0x22a   : > { %5000 = vmatprep.subr.bf16.mxu1 %v4999_v48  ;;  %4938 = vmatpush1.bf16.msra.mxu0 %v4937_v50  ;;  %v4248_v48 = vld [vmem:[%s7784_s5 + $0x400] sm:$0xff]  ;;  %v4250_v50 = vld [vmem:[%s7784_s5 + $0x410] sm:$0xff] }
 0x2c2   : > { %v2865_v56 = vpop.f32.mrb[6].mxu1 }
 0x2c3   : > { %v3060_v40 = vadd.f32 %v3043_v53, %v2865_v56  ;;  %v3019_v57 = vpop.f32.mrb[12].mxu0  ;;  %v2867_v10 = vpop.f32.mrb[7].mxu1  ;;  %v4255_v53 = vld [vmem:[%s7784_s5 + $0x438] sm:$0xff]  ;;  %v4254_v56 = vld [vmem:[%s7784_s5 + $0x430] sm:$0xff] }
 0x2c4   : > { %v3062_v58 = vadd.f32 %v3051_v54, %v3019_v57  ;;  %v3061_v59 = vadd.f32 %v3047_v55, %v2867_v10  ;;  %v3021_v60 = vpop.f32.mrb[13].mxu0  ;;  %v5009_v54 = vpack.c.bf16 %v4250_v50, %v4248_v48  ;;  %v5011_v55 = vpack.c.bf16 %v4255_v53, %v4253_v51  ;;  %v4259_v57 = vld [vmem:[%s7784_s5 + $0x458] sm:$0xff]  ;;  %v4290_v48 = vld [vmem:[%s7784_s5 + $0x550] sm:$0xff]  ;;  %v4293_v50 = vld [vmem:[%s7784_s5 + $0x568] sm:$0xff] }
 0x2c5   : > { %v3068_v61 = vmul.f32 0.01, %v3060_v40  ;;  %v3063_v49 = vadd.f32 %v3055_v42, %v3021_v60  ;;  %v4252_v42 = vld [vmem:[%s7784_s5 + $0x420] sm:$0xff]  ;;  %v4258_v60 = vld [vmem:[%s7784_s5 + $0x450] sm:$0xff]  ;;  %v4295_v51 = vld [vmem:[%s7784_s5 + $0x578] sm:$0xff] }
 0x2c6   : > { %v3070_v52 = vmul.f32 0.01, %v3062_v58  ;;  %v3069_v62 = vmul.f32 0.01, %v3061_v59  ;;  %v2871_v63 = vpop.f32.mrb[8].mxu1  ;;  %v5013_v10 = vpack.c.bf16 %v4254_v56, %v4252_v42  ;;  %v4294_v42 = vld [vmem:[%s7784_s5 + $0x570] sm:$0xff] }
 0x2c7   : > { %v3076_v0 = vmax.f32 %v3060_v40, %v3068_v61  ;;  %v3071_v1 = vmul.f32 0.01, %v3063_v49  ;;  %v3025_v23 = vpop.f32.mrb[14].mxu0  ;;  %v2873_v4 = vpop.f32.mrb[9].mxu1  ;;  %v4257_v40 = vld [vmem:[%s7784_s5 + $0x448] sm:$0xff]  ;;  %v4260_v63 = vld [vmem:[%s7784_s5 + $0x460] sm:$0xff] }
 0x2c8   : > { %v3078_v8 = vmax.f32 %v3062_v58, %v3070_v52  ;;  %v3077_v9 = vmax.f32 %v3061_v59, %v3069_v62  ;;  %v3027_v6 = vpop.f32.mrb[15].mxu0  ;;  %v5015_v58 = vpack.c.bf16 %v4259_v57, %v4257_v40  ;;  %v4256_v59 = vld [vmem:[%s7784_s5 + $0x440] sm:$0xff]  ;;  %v4261_v61 = vld [vmem:[%s7784_s5 + $0x468] sm:$0xff]  ;;  %v4267_v23 = vld [vmem:[%s7784_s5 + $0x498] sm:$0xff] }
 0x2c9   : > { %v3079_v11 = vmax.f32 %v3063_v49, %v3071_v1  ;;  %v4263_v49 = vld [vmem:[%s7784_s5 + $0x478] sm:$0xff]  ;;  %v5017_v52 = vpack.c.bf16 %v4258_v60, %v4256_v59  ;;  %v4265_v1 = vld [vmem:[%s7784_s5 + $0x488] sm:$0xff]  ;;  %v4266_v6 = vld [vmem:[%s7784_s5 + $0x490] sm:$0xff] }
 0x2ca   : > { %v3084_v12 = vmax.f32 %v3076_v0, %v3078_v8  ;;  %v5019_v62 = vpack.c.bf16 %v4263_v49, %v4261_v61  ;;  %v4262_v0 = vld [vmem:[%s7784_s5 + $0x470] sm:$0xff]  ;;  %v5023_v8 = vpack.c.bf16 %v4267_v23, %v4265_v1  ;;  %v4297_v56 = vld [vmem:[%s7784_s5 + $0x588] sm:$0xff]  ;;  %v4299_v40 = vld [vmem:[%s7784_s5 + $0x598] sm:$0xff] }
 0x2cb   : > { %v3085_v13 = vmax.f32 %v3077_v9, %v3079_v11  ;;  %v5021_v4 = vpack.c.bf16 %v4262_v0, %v4260_v63  ;;  %v4264_v9 = vld [vmem:[%s7784_s5 + $0x480] sm:$0xff]  ;;  %v4269_v11 = vld [vmem:[%s7784_s5 + $0x4a8] sm:$0xff]  ;;  %v4298_v59 = vld [vmem:[%s7784_s5 + $0x590] sm:$0xff]  ;;  %v5274_v0 = vmov 0.0|0.0  }
 0x2cc   : > { %v3090_v15 = vrot.slane %v3084_v12, 1  ;;  %v3624_v63 = vld [vmem:[%s7786_s7 + $0x10] sm:$0xff]  ;;  %5059 = vmatprep.subr.bf16.mxu0 %v5274_v0  ;;  %v3625_v23 = vld [vmem:[%s7786_s7 + $0x18] sm:$0xff] }
 0x2cd   : > { %v3091_v16 = vrot.slane %v3085_v13, 1 }
 0x2ce   : > { %v3094_v17 = vmax.f32 %v3084_v12, %v3090_v15  ;;  %v4271_v12 = vld [vmem:[%s7784_s5 + $0x4b8] sm:$0xff] }
 0x2cf   : > { %v3095_v18 = vmax.f32 %v3085_v13, %v3091_v16  ;;  %v5025_v13 = vpack.c.bf16 %v4266_v6, %v4264_v9  ;;  %v5027_v15 = vpack.c.bf16 %v4271_v12, %v4269_v11  ;;  %v4268_v16 = vld [vmem:[%s7784_s5 + $0x4a0] sm:$0xff]  ;;  %v3627_v9 = vld [vmem:[%s7786_s7 + $0x28] sm:$0xff]  ;;  %v3628_v11 = vld [vmem:[%s7786_s7 + $0x30] sm:$0xff] }
 0x2d0   : > { %v3629_v12 = vld [vmem:[%s7786_s7 + $0x38] sm:$0xff] }
 0x2d1   : > { %v3098_v20 = vcombine.low %v3094_v17, %v3095_v18  ;;  %v3123_v21 = vcombine.high %v3094_v17, %v3095_v18  ;;  %v4270_v17 = vld [vmem:[%s7784_s5 + $0x4b0] sm:$0xff]  ;;  %v4273_v18 = vld [vmem:[%s7784_s5 + $0x4c8] sm:$0xff] }
 0x2d3   : > { %v3105_v22 = vrot.slane %v3098_v20, %v6133_v5  ;;  %v3130_v2 = vrot.slane %v3123_v21, %v6133_v5  ;;  %v4275_v20 = vld [vmem:[%s7784_s5 + $0x4d8] sm:$0xff]  ;;  %v5029_v21 = vpack.c.bf16 %v4270_v17, %v4268_v16  ;;  %v3631_v16 = vld [vmem:[%s7786_s7 + $0x48] sm:$0xff] }
 0x2d5   : > { %v3112_v24 = vrot.slane %v3105_v22, %v6133_v5  ;;  %v3137_v25 = vrot.slane %v3130_v2, %v6133_v5  ;;  %v4247_v5 = vld [vmem:[%s7784_s5 + $0x3f8] sm:$0xff]  ;;  %v5031_v22 = vpack.c.bf16 %v4275_v20, %v4273_v18  ;;  %v4272_v2 = vld [vmem:[%s7784_s5 + $0x4c0] sm:$0xff]  ;;  %v3632_v18 = vld [vmem:[%s7786_s7 + $0x50] sm:$0xff] }
 0x2d6   : > { %v5003_v41 = vpack.c.bf16 %v4247_v5, %v4245_v3  ;;  %v4278_v3 = vld [vmem:[%s7784_s5 + $0x4f0] sm:$0xff]  ;;  %v4281_v5 = vld [vmem:[%s7784_s5 + $0x508] sm:$0xff]  ;;  %v3633_v20 = vld [vmem:[%s7786_s7 + $0x58] sm:$0xff] }
 0x2d7   : > { %3116 = vst.msk [vmem:[#allocation3] ss:$8 sm:$0x3] %vm3114_vm8, %v3112_v24  ;;  %v3118_v26 = vcombine.high %v3112_v24, %v3112_v24  ;;  %3140 = vst.msk [vmem:[#allocation3 + $0x2] ss:$8 sm:$0x3] %vm3114_vm8, %v3137_v25  ;;  %v3142_v27 = vcombine.high %v3137_v25, %v3137_v25  ;;  %v5037_v31 = vpack.c.bf16 %v4278_v3, %v4276_v29 }
 0x2d8   : > { %v4274_v24 = vld [vmem:[%s7784_s5 + $0x4d0] sm:$0xff]  ;;  %v4277_v25 = vld [vmem:[%s7784_s5 + $0x4e8] sm:$0xff]  ;;  %v3597_v29 = vld [vmem:[%s7785_s6] sm:$0x3] }
 0x2d9   : > { %3121 = vst.msk [vmem:[#allocation3 + $0x1] ss:$8 sm:$0x3] %vm3114_vm8, %v3118_v26  ;;  %3145 = vst.msk [vmem:[#allocation3 + $0x3] ss:$8 sm:$0x3] %vm3114_vm8, %v3142_v27  ;;  %v5033_v27 = vpack.c.bf16 %v4274_v24, %v4272_v2  ;;  %v3602_v3 = vrot.slane %v3597_v29, %v6117_v14 }
 0x2da   : > { %v4279_v26 = vld [vmem:[%s7784_s5 + $0x4f8] sm:$0xff]  ;;  %v3636_v24 = vld [vmem:[%s7786_s7 + $0x70] sm:$0xff]  ;;  %v3638_v14 = vld [vmem:[%s7787_s8] sm:$0x1] }
 0x2db   : > { %v5035_v28 = vpack.c.bf16 %v4279_v26, %v4277_v25  ;;  %v3637_v25 = vld [vmem:[%s7786_s7 + $0x78] sm:$0xff] }
 0x2dc   : > { %v5081_v26 = vpack.c.bf16 %v3637_v25, %v3636_v24 }
 0x2e0   : > { %v3177_v34 = vld [vmem:[#allocation3 + $0x8] sm:$0x3]  ;;  %v3176_v35 = vld [vmem:[#allocation3] sm:$0x3]  ;;  %v3455_v39 = vld [vmem:[#allocation3 + $0x8] sm:$0xc] }
 0x2e1   : > { %v3239_v37 = vld [vmem:[#allocation3 + $0x8] sm:$0x6]  ;;  %4239 = vmatprep.mubr.msk.f32.mxu1 %vm3306_vm9, %v3177_v34  ;;  %v3238_v36 = vld [vmem:[#allocation3] sm:$0x6]  ;;  %v3520_v44 = vrot.slane %v3455_v39, 2 }
 0x2e2   : > { %v3304_v38 = vrot.slane %v3239_v37, 1  ;;  %3448 = vmatmul.mubr.f32.vlgmr.msra.gmra.mrb[10].mxu1 %v3176_v35  ;;  %v3303_v45 = vrot.slane %v3238_v36, 1  ;;  %v4282_v34 = vld [vmem:[%s7784_s5 + $0x510] sm:$0xff]  ;;  %v4285_v35 = vld [vmem:[%s7784_s5 + $0x528] sm:$0xff]  ;;  %v4287_v37 = vld [vmem:[%s7784_s5 + $0x538] sm:$0xff] }
 0x2e3   : > { %5002 = vmatpush1.bf16.msra.mxu1 %v5001_v30  ;;  %4300 = vmatprep.mubr.msk.f32.mxu1 %vm3306_vm9, %v3520_v44  ;;  %v4283_v30 = vld [vmem:[%s7784_s5 + $0x518] sm:$0xff]  ;;  %v5043_v39 = vpack.c.bf16 %v4287_v37, %v4285_v35  ;;  %v4284_v36 = vld [vmem:[%s7784_s5 + $0x520] sm:$0xff]  ;;  %v3454_v61 = vld [vmem:[#allocation3] sm:$0xc] }
 0x2e4   : > { %4238 = vmatprep.mubr.msk.f32.mxu0 %vm3306_vm9, %v3304_v38  ;;  %5004 = vmatprep.subr.bf16.mxu1 %v5003_v41  ;;  %v5039_v32 = vpack.c.bf16 %v4283_v30, %v4281_v5  ;;  %v5041_v38 = vpack.c.bf16 %v4282_v34, %v4280_v33  ;;  %v4286_v41 = vld [vmem:[%s7784_s5 + $0x530] sm:$0xff]  ;;  %v4291_v44 = vld [vmem:[%s7784_s5 + $0x558] sm:$0xff]  ;;  %v3519_v49 = vrot.slane %v3454_v61, 2  ;;  %v3606_v30 = vrot.slane %v3597_v29, %v6121_v19 }
 0x2e5   : > { %3374 = vmatmul.mubr.f32.vlgmr.msra.gmra.mrb[16].mxu0 %v3303_v45  ;;  %v5045_v45 = vpack.c.bf16 %v4286_v41, %v4284_v36 }
 0x2e6   : > { %4354 = vmatprep.mubr.msk.f32.mxu0 %vm5275_vm10, %v5271_v7  ;;  %v3635_v7 = vld [vmem:[%s7786_s7 + $0x68] sm:$0xff] }
 0x2e7   : > { %5006 = vmatpush1.bf16.msra.mxu1 %v5005_v46  ;;  %v5047_v46 = vpack.c.bf16 %v4291_v44, %v4289_v43 }
 0x2e8   : > { %5008 = vmatprep.subr.bf16.mxu1 %v5007_v47  ;;  %v4288_v47 = vld [vmem:[%s7784_s5 + $0x540] sm:$0xff] }
 0x2e9   : > { %v5049_v53 = vpack.c.bf16 %v4290_v48, %v4288_v47 }
 0x2eb   : > { %5010 = vmatpush1.bf16.msra.mxu1 %v5009_v54  ;;  %v5051_v54 = vpack.c.bf16 %v4295_v51, %v4293_v50 }
 0x2ec   : > { %5012 = vmatprep.subr.bf16.mxu1 %v5011_v55  ;;  %v4292_v55 = vld [vmem:[%s7784_s5 + $0x560] sm:$0xff] }
 0x2ed   : > { %v5053_v57 = vpack.c.bf16 %v4294_v42, %v4292_v55 }
 0x2ef   : > { %5014 = vmatpush1.bf16.msra.mxu1 %v5013_v10  ;;  %v5055_v10 = vpack.c.bf16 %v4299_v40, %v4297_v56 }
 0x2f0   : > { %5016 = vmatprep.subr.bf16.mxu1 %v5015_v58  ;;  %v4296_v58 = vld [vmem:[%s7784_s5 + $0x580] sm:$0xff] }
 0x2f1   : > { %v5057_v60 = vpack.c.bf16 %v4298_v59, %v4296_v58 }
 0x2f3   : > { %5018 = vmatpush1.bf16.msra.mxu1 %v5017_v52  ;;  %v3622_v52 = vld [vmem:[%s7786_s7] sm:$0xff] }
 0x2f4   : > { %5020 = vmatprep.subr.bf16.mxu1 %v5019_v62  ;;  %v3623_v62 = vld [vmem:[%s7786_s7 + $0x8] sm:$0xff] }
 0x2f5   : > { %v5060_v1 = vpack.c.bf16 %v3623_v62, %v3622_v52 }
 0x2f7   : > { %5022 = vmatpush1.bf16.msra.mxu1 %v5021_v4  ;;  %5061 = vmatpush3.bf16.msra.mxu0 %v5060_v1  ;;  %v5063_v4 = vpack.c.bf16 %v3625_v23, %v3624_v63 }
 0x2f8   : > { %5024 = vmatprep.subr.bf16.mxu1 %v5023_v8  ;;  %5062 = vmatprep.subr.bf16.mxu0 %v5274_v0  ;;  %v3626_v8 = vld [vmem:[%s7786_s7 + $0x20] sm:$0xff] }
 0x2f9   : > { %v5066_v6 = vpack.c.bf16 %v3627_v9, %v3626_v8 }
 0x2fb   : > { %5026 = vmatpush1.bf16.msra.mxu1 %v5025_v13  ;;  %5064 = vmatpush3.bf16.msra.mxu0 %v5063_v4  ;;  %v5069_v13 = vpack.c.bf16 %v3629_v12, %v3628_v11 }
 0x2fc   : > { %5028 = vmatprep.subr.bf16.mxu1 %v5027_v15  ;;  %5065 = vmatprep.subr.bf16.mxu0 %v5274_v0  ;;  %v3630_v15 = vld [vmem:[%s7786_s7 + $0x40] sm:$0xff] }
 0x2fd   : > { %v5072_v17 = vpack.c.bf16 %v3631_v16, %v3630_v15 }
 0x2ff   : > { %5030 = vmatpush1.bf16.msra.mxu1 %v5029_v21  ;;  %5067 = vmatpush3.bf16.msra.mxu0 %v5066_v6  ;;  %v5075_v21 = vpack.c.bf16 %v3633_v20, %v3632_v18 }
 0x300   : > { %5032 = vmatprep.subr.bf16.mxu1 %v5031_v22  ;;  %5068 = vmatprep.subr.bf16.mxu0 %v5274_v0  ;;  %v3634_v22 = vld [vmem:[%s7786_s7 + $0x60] sm:$0xff] }
 0x301   : > { %v5078_v2 = vpack.c.bf16 %v3635_v7, %v3634_v22 }
 0x303   : > { %5034 = vmatpush1.bf16.msra.mxu1 %v5033_v27  ;;  %5070 = vmatpush3.bf16.msra.mxu0 %v5069_v13 }
 0x304   : > { %5036 = vmatprep.subr.bf16.mxu1 %v5035_v28  ;;  %5071 = vmatprep.subr.bf16.mxu0 %v5274_v0 }
 0x307   : > { %5038 = vmatpush1.bf16.msra.mxu1 %v5037_v31  ;;  %5073 = vmatpush3.bf16.msra.mxu0 %v5072_v17 }
 0x308   : > { %5040 = vmatprep.subr.bf16.mxu1 %v5039_v32  ;;  %5074 = vmatprep.subr.bf16.mxu0 %v5274_v0 }
 0x30b   : > { %5042 = vmatpush1.bf16.msra.mxu1 %v5041_v38  ;;  %5076 = vmatpush3.bf16.msra.mxu0 %v5075_v21 }
 0x30c   : > { %5044 = vmatprep.subr.bf16.mxu1 %v5043_v39  ;;  %5077 = vmatprep.subr.bf16.mxu0 %v5274_v0 }
 0x30f   : > { %5046 = vmatpush1.bf16.msra.mxu1 %v5045_v45  ;;  %5079 = vmatpush3.bf16.msra.mxu0 %v5078_v2 }
 0x310   : > { %5048 = vmatprep.subr.bf16.mxu1 %v5047_v46  ;;  %5080 = vmatprep.subr.bf16.mxu0 %v5274_v0 }
 0x313   : > { %5050 = vmatpush1.bf16.msra.mxu1 %v5049_v53  ;;  %5082 = vmatpush3.bf16.msra.mxu0 %v5081_v26 }
 0x314   : > { %5052 = vmatprep.subr.bf16.mxu1 %v5051_v54 }
 0x317   : > { %5054 = vmatpush1.bf16.msra.mxu1 %v5053_v57 }
 0x318   : > { %5056 = vmatprep.subr.bf16.mxu1 %v5055_v10 }
 0x31b   : > { %5058 = vmatpush1.bf16.msra.mxu1 %v5057_v60 }
 0x31e   : > { %3589 = vmatmul.mubr.f32.vlgmr.msra.gmra.mrb[10].mxu1 %v3519_v49 }
 0x3b8   : > { %v3375_v27 = vpop.f32.mrb[16].mxu0 }
 0x3b9   : > { %v3377_v28 = vpop.f32.mrb[17].mxu0 }
 0x3f1   : > { %v3590_v5 = vpop.f32.mrb[10].mxu1 }
 0x3f2   : > { %v5083_v31 = vadd.f32 %v3590_v5, %v3375_v27  ;;  %v3592_v32 = vpop.f32.mrb[11].mxu1 }
 0x3f3   : > { %v5084_v33 = vadd.f32 %v3592_v32, %v3377_v28 }
 0x3f4   : > { %v3609_v34 = vadd.f32 %v5083_v31, %v3602_v3 }
 0x3f5   : > { %v3610_v35 = vadd.f32 %v5084_v33, %v3606_v30 }
 0x3f6   : > { %v3611_v37 = vmul.f32 0.01, %v3609_v34 }
 0x3f7   : > { %v3612_v38 = vmul.f32 0.01, %v3610_v35 }
 0x3f8   : > { %v3613_v39 = vmax.f32 %v3609_v34, %v3611_v37 }
 0x3f9   : > { %v3614_v36 = vmax.f32 %v3610_v35, %v3612_v38 }
 0x3fb   : > { %v3615_v41 = vmax.f32 %v3613_v39, %v3614_v36 }
 0x3fd   : > { %v3617_v43 = vrot.slane %v3615_v41, 1 }
 0x3ff   : > { %v3619_v44 = vmax.f32 %v3615_v41, %v3617_v43 }
 0x401   : > { %3620 = vst [vmem:[#allocation4] sm:$0x1] %v3619_v44 }
 0x408   : > { %v3621_v45 = vld [vmem:[#allocation4] sm:$0x1] }
 0x409   : > { %4355 = vmatmul.mubr.f32.vlgmr.msra.gmra.mrb[18].mxu0 %v3621_v45 }
 0x4dc   : > { %v3705_v19 = vpop.f32.mrb[18].mxu0 }
 0x4dd   : > { %v3706_v46 = vadd.f32 %v3705_v19, %v3638_v14  ;;  %v4356_v47 = vpop.f32.mrb[19].mxu0 }
 0x4df   : > { %3710 = vst.msk [vmem:[%s324_s16] sm:$0x1] %vm3709_vm11, %v3706_v46 }
 0x4e0   : > { %5220 = shalt.err (!%p5217_p3)
}
 0x4e1   : > { %s5221_s28 = scalar_lea.hbm %s7737_s22, 16  ;;  %s5225_s14 = scalar_lea.hbm %s7788_s9, 32 }
 0x4e2   : > { %p5222_p4 = scmp.ne.s32.totalorder %s7737_s22, %s5221_s28  ;;  %p5226_p9 = scmp.lt.u32.totalorder %s7737_s22, %s7788_s9 }
 0x4e3   : > { %p5227_p10 = scmp.lt.u32.totalorder %s5225_s14, %s5221_s28  ;;  %p5229_p12 = scmp.lt.u32.totalorder %s5221_s28, %s7737_s22 }
 0x4e4   : > { %p5223_p7 = pnand %p5222_p4, %p5365_p5 }
 0x4e5   : > { %p5228_p11 = por %p5227_p10, %p5226_p9 }
 0x4e6   : > { %p5224_p8 = pneg %p5223_p7 }
 0x4e7   : > { %p5230_p13 = por %p5229_p12, %p5228_p11 }
 0x4e9   : > { %p5231_p0 = pnand %p5230_p13, %p5224_p8 }
 0x4eb   : > { %5234 = shalt.err (!%p5231_p0)
}
 0x4ec   : > { %5163 = dma.vmem_to_hbm [thread:$0]  (%p5365_p5), %s7739_s17, 16, %s7737_s22, %s3712_s23  }
 0x4ed PF: > { %p5169_p1 = scmp.ge.s32.totalorder %s5269_s12, 2  ;;  %s3736_s21 = sand.u32 1, %s5257_s30  }
 0x4ee   : > { %s3737_s25 = scalar_lea.sflag [#allocation6], %s3736_s21 }
 0x4ef   : > { %p5166_p2 = pnand %p5169_p1, %p5369_p6 }
 0x4f1   : > { %5252 = dma.done.wait (!%p5166_p2), %s3737_s25, 16  }
 0x4f2   : > { %5254 = vsyncadd (!%p5166_p2), %s3737_s25, 4294967280  ;;  %p19_p3 = scmp.ge.s32.totalorder %s5352_s15, 4   ;;  %s7797_s30 = smov %s5261_s10 }
 0x4f3   : > { %s7798_s10 = smov %s5265_s11  ;;  %s7799_s11 = smov %s5363_s18 }
 0x4f4   : > { %s7800_s12 = smov %s5352_s15  ;;  %21 = sbr.rel (!%p19_p3) target bundleno = 5 (0x5), region = 112 }
 0x4fb   :  { %3741 = vsyncpa [#allocation6], 1 }
 0x4fc   :  { %3743 = vsyncpa [#allocation6 + $0x1], 1 }

</bundles_post_ra>
